<compile_context>
chip_gen: v7x
topology: tpu7x:2x2x1
jax: 0.10.0
libtpu: 0.0.40
codegen_flags: <defaults>
</compile_context>

<pallas_src>
import jax
import jax.numpy as jnp
from jax.experimental import pallas as pl
from jax.experimental.pallas import tpu as pltpu


def _round_up(x, m):
    return (x + m - 1) // m * m


# -----------------------------------------------------------------------------------
# Pass 1: conv3x3 -> ReLU -> conv3x3 on one (batch, row-tile) block, plus the per-image
# channel mean of the conv2 output (accumulated across row tiles).
# -----------------------------------------------------------------------------------
def rcab_conv_kernel(xt_ref, w1_ref, b1_ref, w2_ref, b2_ref,
                     h_ref, mean_ref, col_ref, pad_ref, acc_ref):
    # xt_ref  : (TH+4, Wp2a, Cp) bf16  x row-tile with 2-row halo + zero col padding
    # w{1,2}  : (9*Cp, Cp) bf16 im2col conv weights ; b{1,2}: (1, Cp) f32
    # h_ref   : (TH, W, Cp) bf16       conv2 output tile (pre-gating)
    # mean_ref: (1, Cp) f32            per-image channel mean (accumulated over tiles)
    # col_ref : ((TH+2)*W, 3*Cp) bf16  per-kh im2col slab (scratch)
    # pad_ref : (TH+2, Wp2a, Cp) bf16  conv2 input: h tile + halo (scratch)
    # acc_ref : ((TH+2)*W, Cp) f32     matmul accumulator (scratch)
    TH, W, Cp = h_ref.shape
    i = pl.program_id(1)
    n_tiles = pl.num_programs(1)

    def conv3x3(src_ref, out_rows, w_ref, b_ref):
        rows = out_rows * W
        # 3x3 conv as 3 accumulating matmuls over kh (K = 3*Cp each): only a
        # (rows, 3*Cp) col slab is materialized per step, and the im2col stores (vst)
        # of step kh overlap the MXU work of step kh-1.
        for kh in range(3):
            for kw in range(3):
                # Lane block [kw*Cp, (kw+1)*Cp) -> aligned, unmasked stores.
                col_ref[:rows, kw * Cp:(kw + 1) * Cp] = (
                    src_ref[kh:kh + out_rows, kw:kw + W, :].reshape(rows, Cp))
            part = jnp.dot(col_ref[:rows, :],
                           w_ref[kh * 3 * Cp:(kh + 1) * 3 * Cp, :],
                           preferred_element_type=jnp.float32)
            if kh == 0:
                acc_ref[:rows, :] = part
            else:
                acc_ref[:rows, :] = acc_ref[:rows, :] + part
        return acc_ref[:rows, :] + b_ref[...]

    # conv1 + ReLU over the haloed tile: produces TH+2 rows of h (the +-1 row halo that
    # conv2 needs), written straight into the conv2 input scratch interior.
    h1 = jnp.maximum(conv3x3(xt_ref, TH + 2, w1_ref, b1_ref), 0.0)
    pad_ref[:, 1:W + 1, :] = h1.reshape(TH + 2, W, Cp).astype(jnp.bfloat16)

    # Column halo of the conv2 input: a 3x3 tap only ever reads columns 0 and W+1 of
    # the padding, so only those two thin strips are zeroed.  Done every iteration
    # (cheap) so it stays correct under megacore batch splitting, where "first grid
    # step on this core" is not program_id == 0.
    zcol = jnp.zeros((TH + 2, 1, Cp), jnp.bfloat16)
    pad_ref[:, 0:1, :] = zcol
    pad_ref[:, W + 1:W + 2, :] = zcol

    # Row halo: at the image boundary the neighbouring h rows do not exist and conv2's
    # "same" padding treats them as zero.
    @pl.when(i == 0)
    def _():
        pad_ref[0:1, 1:W + 1, :] = jnp.zeros((1, W, Cp), jnp.bfloat16)

    @pl.when(i == n_tiles - 1)
    def _():
        pad_ref[TH + 1:TH + 2, 1:W + 1, :] = jnp.zeros((1, W, Cp), jnp.bfloat16)

    # conv2 over the haloed h tile -> the TH output rows of this tile.
    h2 = conv3x3(pad_ref, TH, w2_ref, b2_ref)                      # (TH*W, Cp) f32
    h_ref[...] = h2.reshape(TH, W, Cp).astype(h_ref.dtype)

    # Global-average-pool accumulation, finalized into a mean on the last tile.
    @pl.when(i == 0)
    def _():
        mean_ref[...] = jnp.zeros_like(mean_ref)

    mean_ref[...] += jnp.sum(h2, axis=0, keepdims=True)

    @pl.when(i == n_tiles - 1)
    def _():
        total = n_tiles * TH * W
        mean_ref[...] = mean_ref[...] * (1.0 / jnp.asarray(total, jnp.float32))


# -----------------------------------------------------------------------------------
# Pass 2: channel-attention gate (tiny matmuls, recomputed per tile) + residual add.
# -----------------------------------------------------------------------------------
def rcab_gate_kernel(mean_ref, cw1_ref, cb1_ref, cw2_ref, cb2_ref,
                     h_ref, x_ref, o_ref):
    # mean_ref: (1, Cp) f32 ; cw1: (Cp, Crp) ; cb1: (1, Crp) ; cw2: (Crp, Cp) ; cb2: (1, Cp)
    # h_ref / x_ref / o_ref: (TH, W, Cp) bf16
    z = jnp.maximum(
        jnp.dot(mean_ref[...], cw1_ref[...],
                preferred_element_type=jnp.float32) + cb1_ref[...], 0.0)
    s = jax.nn.sigmoid(
        jnp.dot(z, cw2_ref[...], preferred_element_type=jnp.float32) + cb2_ref[...])
    gate = s.reshape(1, 1, s.shape[-1])
    o_ref[...] = (h_ref[...].astype(jnp.float32) * gate
                  + x_ref[...].astype(jnp.float32)).astype(o_ref.dtype)


def _pick_tile_h(H, W, Wp2a, Cp, budget_bytes):
    """Largest divisor of H whose pass-1 per-step working set fits the VMEM budget."""
    weights = 2 * 2 * 9 * Cp * Cp * 2            # w1m, w2m, double-buffered, bf16
    best = 1
    for th in range(1, H + 1):
        if H % th:
            continue
        col = (th + 2) * W * 3 * Cp * 2          # im2col slab (bf16)
        acc = (th + 2) * W * Cp * 4              # f32 accumulator
        pad = (th + 2) * Wp2a * Cp * 2           # conv2 input scratch (bf16)
        xt = 2 * (th + 4) * Wp2a * Cp * 2        # double-buffered input block (bf16)
        hb = 2 * th * W * Cp * 2                 # double-buffered h output block
        tmp = 2 * (th + 2) * W * Cp * 4          # headroom for f32 value temporaries
        if weights + col + acc + pad + xt + hb + tmp <= budget_bytes:
            best = th
    return best


def rcab_forward(x_nchw, params, tile_h=None):
    """x_nchw: (N, C, H, W) float32. params: dict from init_params (HWIO conv weights)."""
    N, C, H, W = x_nchw.shape
    Cr = params["cw1"].shape[1]
    Cp = _round_up(C, 128)                 # lane-dense channel count
    Crp = _round_up(Cr, 128)
    Wp2a = _round_up(W + 2, 8)             # sublane-aligned padded row width

    # Per-generation VMEM budget: v7x has 64 MiB physical VMEM vs 128 MiB on v5e/v6e.
    try:
        vmem_phys = int(pltpu.get_tpu_info().vmem_capacity_bytes)
    except Exception:
        vmem_phys = 64 * 1024 * 1024
    vmem_limit = min(vmem_phys * 3 // 4, 100 * 1024 * 1024)

    if tile_h is None:
        tile_h = _pick_tile_h(H, W, Wp2a, Cp, budget_bytes=int(vmem_limit * 0.6))
    assert H % tile_h == 0, "tile_h must divide H"
    TH, n_th = tile_h, H // tile_h

    x_nhwc = jnp.transpose(x_nchw, (0, 2, 3, 1))
    # Residual input (channel-padded NHWC, bf16) for pass 2.
    x_res = jnp.pad(x_nhwc, ((0, 0), (0, 0), (0, 0), (0, Cp - C))).astype(jnp.bfloat16)
    # Conv input: 2-row halo (conv1 must also produce conv2's row halo), 1 zero column
    # on the left, right-padded so rows are sublane(8)-aligned, channels padded to Cp.
    xp = jnp.pad(x_nhwc, ((0, 0), (2, 2), (1, Wp2a - W - 1), (0, Cp - C))
                 ).astype(jnp.bfloat16)
    # Pre-extract per-tile haloed row windows so every BlockSpec stays plain Blocked
    # (fully pipelined).  Costs 4 duplicated rows per tile in HBM.
    # TODO(synk): use element-offset indexing / manual DMA for the halo to drop the
    # duplicated rows.
    xt = jnp.stack([xp[:, i * TH:i * TH + TH + 4] for i in range(n_th)], axis=1)
    # xt: (N, n_th, TH+4, Wp2a, Cp)

    def conv_w(w):   # (3,3,C,C) HWIO -> (9*Cp, Cp) bf16 im2col weight matrix
        wp = jnp.pad(w, ((0, 0), (0, 0), (0, Cp - C), (0, Cp - C)))
        return wp.reshape(9 * Cp, Cp).astype(jnp.bfloat16)

    def vec(b, n):   # (k,) -> (1, n) f32, zero-padded
        return jnp.pad(b, (0, n - b.shape[0])).reshape(1, n).astype(jnp.float32)

    # TODO(synk): for C < 128 (e.g. n_feat=64), pack multiple taps' real channels into
    # each 128-lane block of the col slab instead of padding every tap to Cp.
    w1m, w2m = conv_w(params["w1"]), conv_w(params["w2"])
    b1, b2 = vec(params["b1"], Cp), vec(params["b2"], Cp)
    cw1 = jnp.pad(params["cw1"], ((0, Cp - C), (0, Crp - Cr))).astype(jnp.float32)
    cw2 = jnp.pad(params["cw2"], ((0, Crp - Cr), (0, Cp - C))).astype(jnp.float32)
    cb1, cb2 = vec(params["cb1"], Crp), vec(params["cb2"], Cp)

    # ---------------- Pass 1: convs + pooled mean, tiled over (batch, row-tile) -----
    # TODO(synk): pipeline_mode=pl.Buffered(1) on the constant-index weight inputs
    # would return ~0.6 MiB of VMEM; left at the default double-buffering.
    h_hbm, mean = pl.pallas_call(
        rcab_conv_kernel,
        out_shape=(jax.ShapeDtypeStruct((N, H, W, Cp), jnp.bfloat16),
                   jax.ShapeDtypeStruct((N, 1, Cp), jnp.float32)),
        grid_spec=pltpu.PrefetchScalarGridSpec(
            num_scalar_prefetch=0,
            grid=(N, n_th),
            in_specs=[
                pl.BlockSpec((None, None, TH + 4, Wp2a, Cp),
                             lambda n, i: (n, i, 0, 0, 0)),            # xt
                pl.BlockSpec((9 * Cp, Cp), lambda n, i: (0, 0)),       # w1
                pl.BlockSpec((1, Cp), lambda n, i: (0, 0)),            # b1
                pl.BlockSpec((9 * Cp, Cp), lambda n, i: (0, 0)),       # w2
                pl.BlockSpec((1, Cp), lambda n, i: (0, 0)),            # b2
            ],
            out_specs=[
                pl.BlockSpec((None, TH, W, Cp), lambda n, i: (n, i, 0, 0)),  # h
                pl.BlockSpec((None, 1, Cp), lambda n, i: (n, 0, 0)),         # mean
            ],
            scratch_shapes=[
                pltpu.VMEM(((TH + 2) * W, 3 * Cp), jnp.bfloat16),   # im2col slab
                pltpu.VMEM((TH + 2, Wp2a, Cp), jnp.bfloat16),       # conv2 input
                pltpu.VMEM(((TH + 2) * W, Cp), jnp.float32),        # f32 accumulator
            ],
        ),
        compiler_params=pltpu.CompilerParams(
            dimension_semantics=("parallel", "arbitrary"),
            vmem_limit_bytes=vmem_limit,
        ),
    )(xt, w1m, b1, w2m, b2)

    # ---------------- Pass 2: channel-attention gating + residual (streaming) -------
    out = pl.pallas_call(
        rcab_gate_kernel,
        out_shape=jax.ShapeDtypeStruct((N, H, W, Cp), jnp.bfloat16),
        grid_spec=pltpu.PrefetchScalarGridSpec(
            num_scalar_prefetch=0,
            grid=(N, n_th),
            in_specs=[
                pl.BlockSpec((None, 1, Cp), lambda n, i: (n, 0, 0)),         # mean
                pl.BlockSpec((Cp, Crp), lambda n, i: (0, 0)),                # CA w1
                pl.BlockSpec((1, Crp), lambda n, i: (0, 0)),                 # CA b1
                pl.BlockSpec((Crp, Cp), lambda n, i: (0, 0)),                # CA w2
                pl.BlockSpec((1, Cp), lambda n, i: (0, 0)),                  # CA b2
                pl.BlockSpec((None, TH, W, Cp), lambda n, i: (n, i, 0, 0)),  # h
                pl.BlockSpec((None, TH, W, Cp), lambda n, i: (n, i, 0, 0)),  # x
            ],
            out_specs=pl.BlockSpec((None, TH, W, Cp), lambda n, i: (n, i, 0, 0)),
        ),
        compiler_params=pltpu.CompilerParams(
            dimension_semantics=("parallel", "parallel"),
            vmem_limit_bytes=vmem_limit,
        ),
    )(mean, cw1, cb1, cw2, cb2, h_hbm, x_res)

    # TODO(synk): in a full NHWC/bf16 model keep the channel-padded layout end to end
    # and drop this slice + transpose + f32 upcast at the module boundary.
    return jnp.transpose(out[..., :C].astype(jnp.float32), (0, 3, 1, 2))


def init_params(key, n_feat, reduction):
    """Deterministic synthetic params. Conv weights stored HWIO: (3,3,Cin,Cout)."""
    c, cr = n_feat, n_feat // reduction
    ks = jax.random.split(key, 8)
    s = 0.05
    return {
        "w1": s * jax.random.normal(ks[0], (3, 3, c, c), jnp.float32),
        "b1": s * jax.random.normal(ks[1], (c,), jnp.float32),
        "w2": s * jax.random.normal(ks[2], (3, 3, c, c), jnp.float32),
        "b2": s * jax.random.normal(ks[3], (c,), jnp.float32),
        "cw1": s * jax.random.normal(ks[4], (c, cr), jnp.float32),
        "cb1": s * jax.random.normal(ks[5], (cr,), jnp.float32),
        "cw2": s * jax.random.normal(ks[6], (cr, c), jnp.float32),
        "cb2": s * jax.random.normal(ks[7], (c,), jnp.float32),
    }


def rcab_reference(x_nchw, p):
    """Pure-JAX f32 reference (mirrors the PyTorch module) for validation."""
    x = jnp.transpose(x_nchw, (0, 2, 3, 1))

    def conv(inp, w, b):
        o = jax.lax.conv_general_dilated(inp, w, (1, 1), "SAME",
                                         dimension_numbers=("NHWC", "HWIO", "NHWC"))
        return o + b

    h = jax.nn.relu(conv(x, p["w1"], p["b1"]))
    h = conv(h, p["w2"], p["b2"])
    y = jnp.mean(h, axis=(1, 2), keepdims=True)
    z = jax.nn.relu(jnp.einsum("nhwc,cr->nhwr", y, p["cw1"]) + p["cb1"])
    z = jax.nn.sigmoid(jnp.einsum("nhwr,rc->nhwc", z, p["cw2"]) + p["cb2"])
    out = h * z + x
    return jnp.transpose(out, (0, 3, 1, 2))


if __name__ == "__main__":
    # Small shapes consistent with the module: n_feat must be divisible by reduction.
    N, C, H, W = 2, 16, 16, 16
    REDUCTION = 4

    key = jax.random.PRNGKey(0)
    kx, kp = jax.random.split(key)
    x = jax.random.normal(kx, (N, C, H, W), jnp.float32)
    params = init_params(kp, C, REDUCTION)

    # tile_h=8 -> 2 row tiles per image: exercises the halo propagation between conv1
    # and conv2 and the cross-tile pooled-mean accumulation even at this small size.
    out = jax.block_until_ready(rcab_forward(x, params, tile_h=8))
    ref = jax.block_until_ready(rcab_reference(x, params))

    assert out.shape == (N, C, H, W)
    # bf16 matmul operands and bf16 storage of h / x / out (f32 accumulation) vs a
    # pure-f32 reference -> widened tolerance; bf16 casts are the dominant error source.
    assert jnp.allclose(out, ref, atol=2e-2, rtol=2e-2), "mismatch vs JAX reference"

    print("KERNEL_OK")
</pallas_src>

<mosaic_0001>
module attributes {stable_mosaic.version = 11 : i64} {
  func.func @rcab_conv_kernel(%arg0: i32, %arg1: i32, %arg2: memref<1x1x12x24x128xbf16, #tpu.memory_space<vmem>>, %arg3: memref<1152x128xbf16, #tpu.memory_space<vmem>>, %arg4: memref<1x128xf32, #tpu.memory_space<vmem>>, %arg5: memref<1152x128xbf16, #tpu.memory_space<vmem>>, %arg6: memref<1x128xf32, #tpu.memory_space<vmem>>, %arg7: memref<1x8x16x128xbf16, #tpu.memory_space<vmem>>, %arg8: memref<1x1x128xf32, #tpu.memory_space<vmem>>, %arg9: memref<160x384xbf16, #tpu.memory_space<vmem>>, %arg10: memref<10x24x128xbf16, #tpu.memory_space<vmem>>, %arg11: memref<160x128xf32, #tpu.memory_space<vmem>>) attributes {dimension_semantics = [#tpu.dimension_semantics<parallel>, #tpu.dimension_semantics<arbitrary>], iteration_bounds = array<i64: 2, 2>, scalar_prefetch = 0 : i64, scratch_operands = 3 : i64, tpu.core_type = #tpu.core_type<tc>, window_params = [{transform_indices = @transform_0, window_bounds = array<i64: 1, 1, 12, 24, 128>}, {pipeline_mode = #tpu.pipeline_mode<synchronous>, transform_indices = @transform_1, window_bounds = array<i64: 1152, 128>}, {pipeline_mode = #tpu.pipeline_mode<synchronous>, transform_indices = @transform_2, window_bounds = array<i64: 1, 128>}, {pipeline_mode = #tpu.pipeline_mode<synchronous>, transform_indices = @transform_3, window_bounds = array<i64: 1152, 128>}, {pipeline_mode = #tpu.pipeline_mode<synchronous>, transform_indices = @transform_4, window_bounds = array<i64: 1, 128>}, {transform_indices = @transform_5, window_bounds = array<i64: 1, 8, 16, 128>}, {transform_indices = @transform_6, window_bounds = array<i64: 1, 1, 128>}]} {
    %c0 = arith.constant 0 : index
    %c0_0 = arith.constant 0 : index
    %c0_1 = arith.constant 0 : index
    %c0_2 = arith.constant 0 : index
    %c0_3 = arith.constant 0 : index
    %0 = vector.load %arg2[%c0, %c0_0, %c0_1, %c0_2, %c0_3] : memref<1x1x12x24x128xbf16, #tpu.memory_space<vmem>>, vector<1x1x10x16x128xbf16>
    %1 = vector.shape_cast %0 : vector<1x1x10x16x128xbf16> to vector<10x16x128xbf16>
    %2 = vector.shape_cast %1 : vector<10x16x128xbf16> to vector<160x128xbf16>
    %c0_4 = arith.constant 0 : index
    %c0_5 = arith.constant 0 : index
    %3 = vector.load %arg9[%c0_4, %c0_5] : memref<160x384xbf16, #tpu.memory_space<vmem>>, vector<160x128xbf16>
    tpu.vector_store %arg9[%c0_4, %c0_5], %2 {strides = array<i32>} : memref<160x384xbf16, #tpu.memory_space<vmem>>, vector<160x128xbf16>,
    %c0_6 = arith.constant 0 : index
    %c0_7 = arith.constant 0 : index
    %c0_8 = arith.constant 0 : index
    %c1 = arith.constant 1 : index
    %c0_9 = arith.constant 0 : index
    %4 = vector.load %arg2[%c0_6, %c0_7, %c0_8, %c1, %c0_9] : memref<1x1x12x24x128xbf16, #tpu.memory_space<vmem>>, vector<1x1x10x16x128xbf16>
    %5 = vector.shape_cast %4 : vector<1x1x10x16x128xbf16> to vector<10x16x128xbf16>
    %6 = vector.shape_cast %5 : vector<10x16x128xbf16> to vector<160x128xbf16>
    %c0_10 = arith.constant 0 : index
    %c128 = arith.constant 128 : index
    %7 = vector.load %arg9[%c0_10, %c128] : memref<160x384xbf16, #tpu.memory_space<vmem>>, vector<160x128xbf16>
    tpu.vector_store %arg9[%c0_10, %c128], %6 {strides = array<i32>} : memref<160x384xbf16, #tpu.memory_space<vmem>>, vector<160x128xbf16>,
    %c0_11 = arith.constant 0 : index
    %c0_12 = arith.constant 0 : index
    %c0_13 = arith.constant 0 : index
    %c2 = arith.constant 2 : index
    %c0_14 = arith.constant 0 : index
    %8 = vector.load %arg2[%c0_11, %c0_12, %c0_13, %c2, %c0_14] : memref<1x1x12x24x128xbf16, #tpu.memory_space<vmem>>, vector<1x1x10x16x128xbf16>
    %9 = vector.shape_cast %8 : vector<1x1x10x16x128xbf16> to vector<10x16x128xbf16>
    %10 = vector.shape_cast %9 : vector<10x16x128xbf16> to vector<160x128xbf16>
    %c0_15 = arith.constant 0 : index
    %c256 = arith.constant 256 : index
    %11 = vector.load %arg9[%c0_15, %c256] : memref<160x384xbf16, #tpu.memory_space<vmem>>, vector<160x128xbf16>
    tpu.vector_store %arg9[%c0_15, %c256], %10 {strides = array<i32>} : memref<160x384xbf16, #tpu.memory_space<vmem>>, vector<160x128xbf16>,
    %c0_16 = arith.constant 0 : index
    %c0_17 = arith.constant 0 : index
    %12 = vector.load %arg9[%c0_16, %c0_17] : memref<160x384xbf16, #tpu.memory_space<vmem>>, vector<160x384xbf16>
    %c0_18 = arith.constant 0 : index
    %c0_19 = arith.constant 0 : index
    %13 = vector.load %arg3[%c0_18, %c0_19] : memref<1152x128xbf16, #tpu.memory_space<vmem>>, vector<384x128xbf16>
    %cst = arith.constant dense<0.000000e+00> : vector<160x128xf32>
    %14 = tpu.matmul %12, %13, %cst {dimension_numbers = #tpu.dot_dimension_numbers<[1], [0], [0], [1], [0, 0, 1, 1], [], []>} : vector<160x384xbf16>, vector<384x128xbf16>, vector<160x128xf32> -> vector<160x128xf32>
    %c0_20 = arith.constant 0 : index
    %c0_21 = arith.constant 0 : index
    %15 = vector.load %arg11[%c0_20, %c0_21] : memref<160x128xf32, #tpu.memory_space<vmem>>, vector<160x128xf32>
    tpu.vector_store %arg11[%c0_20, %c0_21], %14 {strides = array<i32>} : memref<160x128xf32, #tpu.memory_space<vmem>>, vector<160x128xf32>,
    %c0_22 = arith.constant 0 : index
    %c0_23 = arith.constant 0 : index
    %c1_24 = arith.constant 1 : index
    %c0_25 = arith.constant 0 : index
    %c0_26 = arith.constant 0 : index
    %16 = vector.load %arg2[%c0_22, %c0_23, %c1_24, %c0_25, %c0_26] : memref<1x1x12x24x128xbf16, #tpu.memory_space<vmem>>, vector<1x1x10x16x128xbf16>
    %17 = vector.shape_cast %16 : vector<1x1x10x16x128xbf16> to vector<10x16x128xbf16>
    %18 = vector.shape_cast %17 : vector<10x16x128xbf16> to vector<160x128xbf16>
    %c0_27 = arith.constant 0 : index
    %c0_28 = arith.constant 0 : index
    %19 = vector.load %arg9[%c0_27, %c0_28] : memref<160x384xbf16, #tpu.memory_space<vmem>>, vector<160x128xbf16>
    tpu.vector_store %arg9[%c0_27, %c0_28], %18 {strides = array<i32>} : memref<160x384xbf16, #tpu.memory_space<vmem>>, vector<160x128xbf16>,
    %c0_29 = arith.constant 0 : index
    %c0_30 = arith.constant 0 : index
    %c1_31 = arith.constant 1 : index
    %c1_32 = arith.constant 1 : index
    %c0_33 = arith.constant 0 : index
    %20 = vector.load %arg2[%c0_29, %c0_30, %c1_31, %c1_32, %c0_33] : memref<1x1x12x24x128xbf16, #tpu.memory_space<vmem>>, vector<1x1x10x16x128xbf16>
    %21 = vector.shape_cast %20 : vector<1x1x10x16x128xbf16> to vector<10x16x128xbf16>
    %22 = vector.shape_cast %21 : vector<10x16x128xbf16> to vector<160x128xbf16>
    %c0_34 = arith.constant 0 : index
    %c128_35 = arith.constant 128 : index
    %23 = vector.load %arg9[%c0_34, %c128_35] : memref<160x384xbf16, #tpu.memory_space<vmem>>, vector<160x128xbf16>
    tpu.vector_store %arg9[%c0_34, %c128_35], %22 {strides = array<i32>} : memref<160x384xbf16, #tpu.memory_space<vmem>>, vector<160x128xbf16>,
    %c0_36 = arith.constant 0 : index
    %c0_37 = arith.constant 0 : index
    %c1_38 = arith.constant 1 : index
    %c2_39 = arith.constant 2 : index
    %c0_40 = arith.constant 0 : index
    %24 = vector.load %arg2[%c0_36, %c0_37, %c1_38, %c2_39, %c0_40] : memref<1x1x12x24x128xbf16, #tpu.memory_space<vmem>>, vector<1x1x10x16x128xbf16>
    %25 = vector.shape_cast %24 : vector<1x1x10x16x128xbf16> to vector<10x16x128xbf16>
    %26 = vector.shape_cast %25 : vector<10x16x128xbf16> to vector<160x128xbf16>
    %c0_41 = arith.constant 0 : index
    %c256_42 = arith.constant 256 : index
    %27 = vector.load %arg9[%c0_41, %c256_42] : memref<160x384xbf16, #tpu.memory_space<vmem>>, vector<160x128xbf16>
    tpu.vector_store %arg9[%c0_41, %c256_42], %26 {strides = array<i32>} : memref<160x384xbf16, #tpu.memory_space<vmem>>, vector<160x128xbf16>,
    %c0_43 = arith.constant 0 : index
    %c0_44 = arith.constant 0 : index
    %28 = vector.load %arg9[%c0_43, %c0_44] : memref<160x384xbf16, #tpu.memory_space<vmem>>, vector<160x384xbf16>
    %c384 = arith.constant 384 : index
    %c0_45 = arith.constant 0 : index
    %29 = vector.load %arg3[%c384, %c0_45] : memref<1152x128xbf16, #tpu.memory_space<vmem>>, vector<384x128xbf16>
    %cst_46 = arith.constant dense<0.000000e+00> : vector<160x128xf32>
    %30 = tpu.matmul %28, %29, %cst_46 {dimension_numbers = #tpu.dot_dimension_numbers<[1], [0], [0], [1], [0, 0, 1, 1], [], []>} : vector<160x384xbf16>, vector<384x128xbf16>, vector<160x128xf32> -> vector<160x128xf32>
    %c0_47 = arith.constant 0 : index
    %c0_48 = arith.constant 0 : index
    %31 = vector.load %arg11[%c0_47, %c0_48] : memref<160x128xf32, #tpu.memory_space<vmem>>, vector<160x128xf32>
    %32 = arith.addf %31, %30 : vector<160x128xf32>
    %c0_49 = arith.constant 0 : index
    %c0_50 = arith.constant 0 : index
    %33 = vector.load %arg11[%c0_49, %c0_50] : memref<160x128xf32, #tpu.memory_space<vmem>>, vector<160x128xf32>
    tpu.vector_store %arg11[%c0_49, %c0_50], %32 {strides = array<i32>} : memref<160x128xf32, #tpu.memory_space<vmem>>, vector<160x128xf32>,
    %c0_51 = arith.constant 0 : index
    %c0_52 = arith.constant 0 : index
    %c2_53 = arith.constant 2 : index
    %c0_54 = arith.constant 0 : index
    %c0_55 = arith.constant 0 : index
    %34 = vector.load %arg2[%c0_51, %c0_52, %c2_53, %c0_54, %c0_55] : memref<1x1x12x24x128xbf16, #tpu.memory_space<vmem>>, vector<1x1x10x16x128xbf16>
    %35 = vector.shape_cast %34 : vector<1x1x10x16x128xbf16> to vector<10x16x128xbf16>
    %36 = vector.shape_cast %35 : vector<10x16x128xbf16> to vector<160x128xbf16>
    %c0_56 = arith.constant 0 : index
    %c0_57 = arith.constant 0 : index
    %37 = vector.load %arg9[%c0_56, %c0_57] : memref<160x384xbf16, #tpu.memory_space<vmem>>, vector<160x128xbf16>
    tpu.vector_store %arg9[%c0_56, %c0_57], %36 {strides = array<i32>} : memref<160x384xbf16, #tpu.memory_space<vmem>>, vector<160x128xbf16>,
    %c0_58 = arith.constant 0 : index
    %c0_59 = arith.constant 0 : index
    %c2_60 = arith.constant 2 : index
    %c1_61 = arith.constant 1 : index
    %c0_62 = arith.constant 0 : index
    %38 = vector.load %arg2[%c0_58, %c0_59, %c2_60, %c1_61, %c0_62] : memref<1x1x12x24x128xbf16, #tpu.memory_space<vmem>>, vector<1x1x10x16x128xbf16>
    %39 = vector.shape_cast %38 : vector<1x1x10x16x128xbf16> to vector<10x16x128xbf16>
    %40 = vector.shape_cast %39 : vector<10x16x128xbf16> to vector<160x128xbf16>
    %c0_63 = arith.constant 0 : index
    %c128_64 = arith.constant 128 : index
    %41 = vector.load %arg9[%c0_63, %c128_64] : memref<160x384xbf16, #tpu.memory_space<vmem>>, vector<160x128xbf16>
    tpu.vector_store %arg9[%c0_63, %c128_64], %40 {strides = array<i32>} : memref<160x384xbf16, #tpu.memory_space<vmem>>, vector<160x128xbf16>,
    %c0_65 = arith.constant 0 : index
    %c0_66 = arith.constant 0 : index
    %c2_67 = arith.constant 2 : index
    %c2_68 = arith.constant 2 : index
    %c0_69 = arith.constant 0 : index
    %42 = vector.load %arg2[%c0_65, %c0_66, %c2_67, %c2_68, %c0_69] : memref<1x1x12x24x128xbf16, #tpu.memory_space<vmem>>, vector<1x1x10x16x128xbf16>
    %43 = vector.shape_cast %42 : vector<1x1x10x16x128xbf16> to vector<10x16x128xbf16>
    %44 = vector.shape_cast %43 : vector<10x16x128xbf16> to vector<160x128xbf16>
    %c0_70 = arith.constant 0 : index
    %c256_71 = arith.constant 256 : index
    %45 = vector.load %arg9[%c0_70, %c256_71] : memref<160x384xbf16, #tpu.memory_space<vmem>>, vector<160x128xbf16>
    tpu.vector_store %arg9[%c0_70, %c256_71], %44 {strides = array<i32>} : memref<160x384xbf16, #tpu.memory_space<vmem>>, vector<160x128xbf16>,
    %c0_72 = arith.constant 0 : index
    %c0_73 = arith.constant 0 : index
    %46 = vector.load %arg9[%c0_72, %c0_73] : memref<160x384xbf16, #tpu.memory_space<vmem>>, vector<160x384xbf16>
    %c768 = arith.constant 768 : index
    %c0_74 = arith.constant 0 : index
    %47 = vector.load %arg3[%c768, %c0_74] : memref<1152x128xbf16, #tpu.memory_space<vmem>>, vector<384x128xbf16>
    %cst_75 = arith.constant dense<0.000000e+00> : vector<160x128xf32>
    %48 = tpu.matmul %46, %47, %cst_75 {dimension_numbers = #tpu.dot_dimension_numbers<[1], [0], [0], [1], [0, 0, 1, 1], [], []>} : vector<160x384xbf16>, vector<384x128xbf16>, vector<160x128xf32> -> vector<160x128xf32>
    %c0_76 = arith.constant 0 : index
    %c0_77 = arith.constant 0 : index
    %49 = vector.load %arg11[%c0_76, %c0_77] : memref<160x128xf32, #tpu.memory_space<vmem>>, vector<160x128xf32>
    %50 = arith.addf %49, %48 : vector<160x128xf32>
    %c0_78 = arith.constant 0 : index
    %c0_79 = arith.constant 0 : index
    %51 = vector.load %arg11[%c0_78, %c0_79] : memref<160x128xf32, #tpu.memory_space<vmem>>, vector<160x128xf32>
    tpu.vector_store %arg11[%c0_78, %c0_79], %50 {strides = array<i32>} : memref<160x128xf32, #tpu.memory_space<vmem>>, vector<160x128xf32>,
    %c0_80 = arith.constant 0 : index
    %c0_81 = arith.constant 0 : index
    %52 = vector.load %arg11[%c0_80, %c0_81] : memref<160x128xf32, #tpu.memory_space<vmem>>, vector<160x128xf32>
    %c0_82 = arith.constant 0 : index
    %c0_83 = arith.constant 0 : index
    %53 = vector.load %arg4[%c0_82, %c0_83] : memref<1x128xf32, #tpu.memory_space<vmem>>, vector<1x128xf32>
    %54 = vector.broadcast %53 : vector<1x128xf32> to vector<160x128xf32>
    %55 = arith.addf %52, %54 : vector<160x128xf32>
    %cst_84 = arith.constant 0.000000e+00 : f32
    %56 = vector.broadcast %cst_84 : f32 to vector<160x128xf32>
    %57 = arith.maximumf %55, %56 : vector<160x128xf32>
    %58 = vector.shape_cast %57 : vector<160x128xf32> to vector<10x16x128xf32>
    %59 = arith.truncf %58 : vector<10x16x128xf32> to vector<10x16x128xbf16>
    %c0_85 = arith.constant 0 : index
    %c1_86 = arith.constant 1 : index
    %c0_87 = arith.constant 0 : index
    %60 = vector.load %arg10[%c0_85, %c1_86, %c0_87] : memref<10x24x128xbf16, #tpu.memory_space<vmem>>, vector<10x16x128xbf16>
    tpu.vector_store %arg10[%c0_85, %c1_86, %c0_87], %59 {strides = array<i32>} : memref<10x24x128xbf16, #tpu.memory_space<vmem>>, vector<10x16x128xbf16>,
    %cst_88 = arith.constant 0.000000e+00 : bf16
    %61 = vector.broadcast %cst_88 : bf16 to vector<10x1x128xbf16>
    %c0_89 = arith.constant 0 : index
    %c0_90 = arith.constant 0 : index
    %c0_91 = arith.constant 0 : index
    %62 = vector.load %arg10[%c0_89, %c0_90, %c0_91] : memref<10x24x128xbf16, #tpu.memory_space<vmem>>, vector<10x1x128xbf16>
    tpu.vector_store %arg10[%c0_89, %c0_90, %c0_91], %61 {strides = array<i32>} : memref<10x24x128xbf16, #tpu.memory_space<vmem>>, vector<10x1x128xbf16>,
    %c0_92 = arith.constant 0 : index
    %c17 = arith.constant 17 : index
    %c0_93 = arith.constant 0 : index
    %63 = vector.load %arg10[%c0_92, %c17, %c0_93] : memref<10x24x128xbf16, #tpu.memory_space<vmem>>, vector<10x1x128xbf16>
    tpu.vector_store %arg10[%c0_92, %c17, %c0_93], %61 {strides = array<i32>} : memref<10x24x128xbf16, #tpu.memory_space<vmem>>, vector<10x1x128xbf16>,
    %c0_i32 = arith.constant 0 : i32
    %64 = arith.cmpi eq, %arg1, %c0_i32 : i32
    %65 = arith.extui %64 : i1 to i32
    %c0_i32_94 = arith.constant 0 : i32
    %66 = arith.cmpi ne, %65, %c0_i32_94 : i32
    scf.if %66 {
      %cst_185 = arith.constant 0.000000e+00 : bf16
      %136 = vector.broadcast %cst_185 : bf16 to vector<1x16x128xbf16>
      %c0_186 = arith.constant 0 : index
      %c1_187 = arith.constant 1 : index
      %c0_188 = arith.constant 0 : index
      %137 = vector.load %arg10[%c0_186, %c1_187, %c0_188] : memref<10x24x128xbf16, #tpu.memory_space<vmem>>, vector<1x16x128xbf16>
      tpu.vector_store %arg10[%c0_186, %c1_187, %c0_188], %136 {strides = array<i32>} : memref<10x24x128xbf16, #tpu.memory_space<vmem>>, vector<1x16x128xbf16>,
    } else {
    }
    %c1_i32 = arith.constant 1 : i32
    %67 = arith.cmpi eq, %arg1, %c1_i32 : i32
    %68 = arith.extui %67 : i1 to i32
    %c0_i32_95 = arith.constant 0 : i32
    %69 = arith.cmpi ne, %68, %c0_i32_95 : i32
    scf.if %69 {
      %cst_185 = arith.constant 0.000000e+00 : bf16
      %136 = vector.broadcast %cst_185 : bf16 to vector<1x16x128xbf16>
      %c9 = arith.constant 9 : index
      %c1_186 = arith.constant 1 : index
      %c0_187 = arith.constant 0 : index
      %137 = vector.load %arg10[%c9, %c1_186, %c0_187] : memref<10x24x128xbf16, #tpu.memory_space<vmem>>, vector<1x16x128xbf16>
      tpu.vector_store %arg10[%c9, %c1_186, %c0_187], %136 {strides = array<i32>} : memref<10x24x128xbf16, #tpu.memory_space<vmem>>, vector<1x16x128xbf16>,
    } else {
    }
    %c0_96 = arith.constant 0 : index
    %c0_97 = arith.constant 0 : index
    %c0_98 = arith.constant 0 : index
    %70 = vector.load %arg10[%c0_96, %c0_97, %c0_98] : memref<10x24x128xbf16, #tpu.memory_space<vmem>>, vector<8x16x128xbf16>
    %71 = vector.shape_cast %70 : vector<8x16x128xbf16> to vector<128x128xbf16>
    %c0_99 = arith.constant 0 : index
    %c0_100 = arith.constant 0 : index
    %72 = vector.load %arg9[%c0_99, %c0_100] : memref<160x384xbf16, #tpu.memory_space<vmem>>, vector<128x128xbf16>
    tpu.vector_store %arg9[%c0_99, %c0_100], %71 {strides = array<i32>} : memref<160x384xbf16, #tpu.memory_space<vmem>>, vector<128x128xbf16>,
    %c0_101 = arith.constant 0 : index
    %c1_102 = arith.constant 1 : index
    %c0_103 = arith.constant 0 : index
    %73 = vector.load %arg10[%c0_101, %c1_102, %c0_103] : memref<10x24x128xbf16, #tpu.memory_space<vmem>>, vector<8x16x128xbf16>
    %74 = vector.shape_cast %73 : vector<8x16x128xbf16> to vector<128x128xbf16>
    %c0_104 = arith.constant 0 : index
    %c128_105 = arith.constant 128 : index
    %75 = vector.load %arg9[%c0_104, %c128_105] : memref<160x384xbf16, #tpu.memory_space<vmem>>, vector<128x128xbf16>
    tpu.vector_store %arg9[%c0_104, %c128_105], %74 {strides = array<i32>} : memref<160x384xbf16, #tpu.memory_space<vmem>>, vector<128x128xbf16>,
    %c0_106 = arith.constant 0 : index
    %c2_107 = arith.constant 2 : index
    %c0_108 = arith.constant 0 : index
    %76 = vector.load %arg10[%c0_106, %c2_107, %c0_108] : memref<10x24x128xbf16, #tpu.memory_space<vmem>>, vector<8x16x128xbf16>
    %77 = vector.shape_cast %76 : vector<8x16x128xbf16> to vector<128x128xbf16>
    %c0_109 = arith.constant 0 : index
    %c256_110 = arith.constant 256 : index
    %78 = vector.load %arg9[%c0_109, %c256_110] : memref<160x384xbf16, #tpu.memory_space<vmem>>, vector<128x128xbf16>
    tpu.vector_store %arg9[%c0_109, %c256_110], %77 {strides = array<i32>} : memref<160x384xbf16, #tpu.memory_space<vmem>>, vector<128x128xbf16>,
    %c0_111 = arith.constant 0 : index
    %c0_112 = arith.constant 0 : index
    %79 = vector.load %arg9[%c0_111, %c0_112] : memref<160x384xbf16, #tpu.memory_space<vmem>>, vector<128x384xbf16>
    %c0_113 = arith.constant 0 : index
    %c0_114 = arith.constant 0 : index
    %80 = vector.load %arg5[%c0_113, %c0_114] : memref<1152x128xbf16, #tpu.memory_space<vmem>>, vector<384x128xbf16>
    %cst_115 = arith.constant dense<0.000000e+00> : vector<128x128xf32>
    %81 = tpu.matmul %79, %80, %cst_115 {dimension_numbers = #tpu.dot_dimension_numbers<[1], [0], [0], [1], [0, 0, 1, 1], [], []>} : vector<128x384xbf16>, vector<384x128xbf16>, vector<128x128xf32> -> vector<128x128xf32>
    %c0_116 = arith.constant 0 : index
    %c0_117 = arith.constant 0 : index
    %82 = vector.load %arg11[%c0_116, %c0_117] : memref<160x128xf32, #tpu.memory_space<vmem>>, vector<128x128xf32>
    tpu.vector_store %arg11[%c0_116, %c0_117], %81 {strides = array<i32>} : memref<160x128xf32, #tpu.memory_space<vmem>>, vector<128x128xf32>,
    %c1_118 = arith.constant 1 : index
    %c0_119 = arith.constant 0 : index
    %c0_120 = arith.constant 0 : index
    %83 = vector.load %arg10[%c1_118, %c0_119, %c0_120] : memref<10x24x128xbf16, #tpu.memory_space<vmem>>, vector<8x16x128xbf16>
    %84 = vector.shape_cast %83 : vector<8x16x128xbf16> to vector<128x128xbf16>
    %c0_121 = arith.constant 0 : index
    %c0_122 = arith.constant 0 : index
    %85 = vector.load %arg9[%c0_121, %c0_122] : memref<160x384xbf16, #tpu.memory_space<vmem>>, vector<128x128xbf16>
    tpu.vector_store %arg9[%c0_121, %c0_122], %84 {strides = array<i32>} : memref<160x384xbf16, #tpu.memory_space<vmem>>, vector<128x128xbf16>,
    %c1_123 = arith.constant 1 : index
    %c1_124 = arith.constant 1 : index
    %c0_125 = arith.constant 0 : index
    %86 = vector.load %arg10[%c1_123, %c1_124, %c0_125] : memref<10x24x128xbf16, #tpu.memory_space<vmem>>, vector<8x16x128xbf16>
    %87 = vector.shape_cast %86 : vector<8x16x128xbf16> to vector<128x128xbf16>
    %c0_126 = arith.constant 0 : index
    %c128_127 = arith.constant 128 : index
    %88 = vector.load %arg9[%c0_126, %c128_127] : memref<160x384xbf16, #tpu.memory_space<vmem>>, vector<128x128xbf16>
    tpu.vector_store %arg9[%c0_126, %c128_127], %87 {strides = array<i32>} : memref<160x384xbf16, #tpu.memory_space<vmem>>, vector<128x128xbf16>,
    %c1_128 = arith.constant 1 : index
    %c2_129 = arith.constant 2 : index
    %c0_130 = arith.constant 0 : index
    %89 = vector.load %arg10[%c1_128, %c2_129, %c0_130] : memref<10x24x128xbf16, #tpu.memory_space<vmem>>, vector<8x16x128xbf16>
    %90 = vector.shape_cast %89 : vector<8x16x128xbf16> to vector<128x128xbf16>
    %c0_131 = arith.constant 0 : index
    %c256_132 = arith.constant 256 : index
    %91 = vector.load %arg9[%c0_131, %c256_132] : memref<160x384xbf16, #tpu.memory_space<vmem>>, vector<128x128xbf16>
    tpu.vector_store %arg9[%c0_131, %c256_132], %90 {strides = array<i32>} : memref<160x384xbf16, #tpu.memory_space<vmem>>, vector<128x128xbf16>,
    %c0_133 = arith.constant 0 : index
    %c0_134 = arith.constant 0 : index
    %92 = vector.load %arg9[%c0_133, %c0_134] : memref<160x384xbf16, #tpu.memory_space<vmem>>, vector<128x384xbf16>
    %c384_135 = arith.constant 384 : index
    %c0_136 = arith.constant 0 : index
    %93 = vector.load %arg5[%c384_135, %c0_136] : memref<1152x128xbf16, #tpu.memory_space<vmem>>, vector<384x128xbf16>
    %cst_137 = arith.constant dense<0.000000e+00> : vector<128x128xf32>
    %94 = tpu.matmul %92, %93, %cst_137 {dimension_numbers = #tpu.dot_dimension_numbers<[1], [0], [0], [1], [0, 0, 1, 1], [], []>} : vector<128x384xbf16>, vector<384x128xbf16>, vector<128x128xf32> -> vector<128x128xf32>
    %c0_138 = arith.constant 0 : index
    %c0_139 = arith.constant 0 : index
    %95 = vector.load %arg11[%c0_138, %c0_139] : memref<160x128xf32, #tpu.memory_space<vmem>>, vector<128x128xf32>
    %96 = arith.addf %95, %94 : vector<128x128xf32>
    %c0_140 = arith.constant 0 : index
    %c0_141 = arith.constant 0 : index
    %97 = vector.load %arg11[%c0_140, %c0_141] : memref<160x128xf32, #tpu.memory_space<vmem>>, vector<128x128xf32>
    tpu.vector_store %arg11[%c0_140, %c0_141], %96 {strides = array<i32>} : memref<160x128xf32, #tpu.memory_space<vmem>>, vector<128x128xf32>,
    %c2_142 = arith.constant 2 : index
    %c0_143 = arith.constant 0 : index
    %c0_144 = arith.constant 0 : index
    %98 = vector.load %arg10[%c2_142, %c0_143, %c0_144] : memref<10x24x128xbf16, #tpu.memory_space<vmem>>, vector<8x16x128xbf16>
    %99 = vector.shape_cast %98 : vector<8x16x128xbf16> to vector<128x128xbf16>
    %c0_145 = arith.constant 0 : index
    %c0_146 = arith.constant 0 : index
    %100 = vector.load %arg9[%c0_145, %c0_146] : memref<160x384xbf16, #tpu.memory_space<vmem>>, vector<128x128xbf16>
    tpu.vector_store %arg9[%c0_145, %c0_146], %99 {strides = array<i32>} : memref<160x384xbf16, #tpu.memory_space<vmem>>, vector<128x128xbf16>,
    %c2_147 = arith.constant 2 : index
    %c1_148 = arith.constant 1 : index
    %c0_149 = arith.constant 0 : index
    %101 = vector.load %arg10[%c2_147, %c1_148, %c0_149] : memref<10x24x128xbf16, #tpu.memory_space<vmem>>, vector<8x16x128xbf16>
    %102 = vector.shape_cast %101 : vector<8x16x128xbf16> to vector<128x128xbf16>
    %c0_150 = arith.constant 0 : index
    %c128_151 = arith.constant 128 : index
    %103 = vector.load %arg9[%c0_150, %c128_151] : memref<160x384xbf16, #tpu.memory_space<vmem>>, vector<128x128xbf16>
    tpu.vector_store %arg9[%c0_150, %c128_151], %102 {strides = array<i32>} : memref<160x384xbf16, #tpu.memory_space<vmem>>, vector<128x128xbf16>,
    %c2_152 = arith.constant 2 : index
    %c2_153 = arith.constant 2 : index
    %c0_154 = arith.constant 0 : index
    %104 = vector.load %arg10[%c2_152, %c2_153, %c0_154] : memref<10x24x128xbf16, #tpu.memory_space<vmem>>, vector<8x16x128xbf16>
    %105 = vector.shape_cast %104 : vector<8x16x128xbf16> to vector<128x128xbf16>
    %c0_155 = arith.constant 0 : index
    %c256_156 = arith.constant 256 : index
    %106 = vector.load %arg9[%c0_155, %c256_156] : memref<160x384xbf16, #tpu.memory_space<vmem>>, vector<128x128xbf16>
    tpu.vector_store %arg9[%c0_155, %c256_156], %105 {strides = array<i32>} : memref<160x384xbf16, #tpu.memory_space<vmem>>, vector<128x128xbf16>,
    %c0_157 = arith.constant 0 : index
    %c0_158 = arith.constant 0 : index
    %107 = vector.load %arg9[%c0_157, %c0_158] : memref<160x384xbf16, #tpu.memory_space<vmem>>, vector<128x384xbf16>
    %c768_159 = arith.constant 768 : index
    %c0_160 = arith.constant 0 : index
    %108 = vector.load %arg5[%c768_159, %c0_160] : memref<1152x128xbf16, #tpu.memory_space<vmem>>, vector<384x128xbf16>
    %cst_161 = arith.constant dense<0.000000e+00> : vector<128x128xf32>
    %109 = tpu.matmul %107, %108, %cst_161 {dimension_numbers = #tpu.dot_dimension_numbers<[1], [0], [0], [1], [0, 0, 1, 1], [], []>} : vector<128x384xbf16>, vector<384x128xbf16>, vector<128x128xf32> -> vector<128x128xf32>
    %c0_162 = arith.constant 0 : index
    %c0_163 = arith.constant 0 : index
    %110 = vector.load %arg11[%c0_162, %c0_163] : memref<160x128xf32, #tpu.memory_space<vmem>>, vector<128x128xf32>
    %111 = arith.addf %110, %109 : vector<128x128xf32>
    %c0_164 = arith.constant 0 : index
    %c0_165 = arith.constant 0 : index
    %112 = vector.load %arg11[%c0_164, %c0_165] : memref<160x128xf32, #tpu.memory_space<vmem>>, vector<128x128xf32>
    tpu.vector_store %arg11[%c0_164, %c0_165], %111 {strides = array<i32>} : memref<160x128xf32, #tpu.memory_space<vmem>>, vector<128x128xf32>,
    %c0_166 = arith.constant 0 : index
    %c0_167 = arith.constant 0 : index
    %113 = vector.load %arg11[%c0_166, %c0_167] : memref<160x128xf32, #tpu.memory_space<vmem>>, vector<128x128xf32>
    %c0_168 = arith.constant 0 : index
    %c0_169 = arith.constant 0 : index
    %114 = vector.load %arg6[%c0_168, %c0_169] : memref<1x128xf32, #tpu.memory_space<vmem>>, vector<1x128xf32>
    %115 = vector.broadcast %114 : vector<1x128xf32> to vector<128x128xf32>
    %116 = arith.addf %113, %115 : vector<128x128xf32>
    %117 = vector.shape_cast %116 : vector<128x128xf32> to vector<8x16x128xf32>
    %118 = arith.truncf %117 : vector<8x16x128xf32> to vector<8x16x128xbf16>
    %c0_170 = arith.constant 0 : index
    %c0_171 = arith.constant 0 : index
    %c0_172 = arith.constant 0 : index
    %c0_173 = arith.constant 0 : index
    %119 = vector.load %arg7[%c0_170, %c0_171, %c0_172, %c0_173] : memref<1x8x16x128xbf16, #tpu.memory_space<vmem>>, vector<1x8x16x128xbf16>
    %120 = vector.shape_cast %119 : vector<1x8x16x128xbf16> to vector<8x16x128xbf16>
    %121 = vector.shape_cast %118 : vector<8x16x128xbf16> to vector<1x8x16x128xbf16>
    tpu.vector_store %arg7[%c0_170, %c0_171, %c0_172, %c0_173], %121 {strides = array<i32>} : memref<1x8x16x128xbf16, #tpu.memory_space<vmem>>, vector<1x8x16x128xbf16>,
    %c0_i32_174 = arith.constant 0 : i32
    %122 = arith.cmpi eq, %arg1, %c0_i32_174 : i32
    %123 = arith.extui %122 : i1 to i32
    %c0_i32_175 = arith.constant 0 : i32
    %124 = arith.cmpi ne, %123, %c0_i32_175 : i32
    scf.if %124 {
      %cst_185 = arith.constant 0.000000e+00 : f32
      %136 = vector.broadcast %cst_185 : f32 to vector<1x128xf32>
      %c0_186 = arith.constant 0 : index
      %c0_187 = arith.constant 0 : index
      %c0_188 = arith.constant 0 : index
      %137 = vector.load %arg8[%c0_186, %c0_187, %c0_188] : memref<1x1x128xf32, #tpu.memory_space<vmem>>, vector<1x1x128xf32>
      %138 = vector.shape_cast %137 : vector<1x1x128xf32> to vector<1x128xf32>
      %139 = vector.shape_cast %136 : vector<1x128xf32> to vector<1x1x128xf32>
      tpu.vector_store %arg8[%c0_186, %c0_187, %c0_188], %139 {strides = array<i32>} : memref<1x1x128xf32, #tpu.memory_space<vmem>>, vector<1x1x128xf32>,
    } else {
    }
    %c0_176 = arith.constant 0 : index
    %c0_177 = arith.constant 0 : index
    %c0_178 = arith.constant 0 : index
    %125 = vector.load %arg8[%c0_176, %c0_177, %c0_178] : memref<1x1x128xf32, #tpu.memory_space<vmem>>, vector<1x1x128xf32>
    %126 = vector.shape_cast %125 : vector<1x1x128xf32> to vector<1x128xf32>
    %cst_179 = arith.constant dense<0.000000e+00> : vector<128xf32>
    %127 = vector.multi_reduction <add>, %116, %cst_179 [0] : vector<128x128xf32> to vector<128xf32>
    %128 = vector.shape_cast %127 : vector<128xf32> to vector<1x128xf32>
    %129 = arith.addf %126, %128 : vector<1x128xf32>
    %c0_180 = arith.constant 0 : index
    %c0_181 = arith.constant 0 : index
    %c0_182 = arith.constant 0 : index
    %130 = vector.load %arg8[%c0_180, %c0_181, %c0_182] : memref<1x1x128xf32, #tpu.memory_space<vmem>>, vector<1x1x128xf32>
    %131 = vector.shape_cast %130 : vector<1x1x128xf32> to vector<1x128xf32>
    %132 = vector.shape_cast %129 : vector<1x128xf32> to vector<1x1x128xf32>
    tpu.vector_store %arg8[%c0_180, %c0_181, %c0_182], %132 {strides = array<i32>} : memref<1x1x128xf32, #tpu.memory_space<vmem>>, vector<1x1x128xf32>,
    %c1_i32_183 = arith.constant 1 : i32
    %133 = arith.cmpi eq, %arg1, %c1_i32_183 : i32
    %134 = arith.extui %133 : i1 to i32
    %c0_i32_184 = arith.constant 0 : i32
    %135 = arith.cmpi ne, %134, %c0_i32_184 : i32
    scf.if %135 {
      %c0_185 = arith.constant 0 : index
      %c0_186 = arith.constant 0 : index
      %c0_187 = arith.constant 0 : index
      %136 = vector.load %arg8[%c0_185, %c0_186, %c0_187] : memref<1x1x128xf32, #tpu.memory_space<vmem>>, vector<1x1x128xf32>
      %137 = vector.shape_cast %136 : vector<1x1x128xf32> to vector<1x128xf32>
      %cst_188 = arith.constant 1.000000e+00 : f32
      %cst_189 = arith.constant 2.560000e+02 : f32
      %138 = arith.divf %cst_188, %cst_189 : f32
      %139 = vector.broadcast %138 : f32 to vector<1x128xf32>
      %140 = arith.mulf %137, %139 : vector<1x128xf32>
      %c0_190 = arith.constant 0 : index
      %c0_191 = arith.constant 0 : index
      %c0_192 = arith.constant 0 : index
      %141 = vector.load %arg8[%c0_190, %c0_191, %c0_192] : memref<1x1x128xf32, #tpu.memory_space<vmem>>, vector<1x1x128xf32>
      %142 = vector.shape_cast %141 : vector<1x1x128xf32> to vector<1x128xf32>
      %143 = vector.shape_cast %140 : vector<1x128xf32> to vector<1x1x128xf32>
      tpu.vector_store %arg8[%c0_190, %c0_191, %c0_192], %143 {strides = array<i32>} : memref<1x1x128xf32, #tpu.memory_space<vmem>>, vector<1x1x128xf32>,
    } else {
    }
    return
  }
  func.func @transform_0(%arg0: i32, %arg1: i32) -> (i32, i32, i32, i32, i32) {
    %c0_i32 = arith.constant 0 : i32
    %c0_i32_0 = arith.constant 0 : i32
    %c0_i32_1 = arith.constant 0 : i32
    %c0_i32_2 = arith.constant 0 : i32
    return %arg0, %arg1, %c0_i32, %c0_i32_0, %c0_i32_1 : i32, i32, i32, i32, i32
  }
  func.func @transform_1(%arg0: i32, %arg1: i32) -> (i32, i32) {
    %c0_i32 = arith.constant 0 : i32
    %c0_i32_0 = arith.constant 0 : i32
    %c0_i32_1 = arith.constant 0 : i32
    return %c0_i32, %c0_i32_0 : i32, i32
  }
  func.func @transform_2(%arg0: i32, %arg1: i32) -> (i32, i32) {
    %c0_i32 = arith.constant 0 : i32
    %c0_i32_0 = arith.constant 0 : i32
    %c0_i32_1 = arith.constant 0 : i32
    return %c0_i32, %c0_i32_0 : i32, i32
  }
  func.func @transform_3(%arg0: i32, %arg1: i32) -> (i32, i32) {
    %c0_i32 = arith.constant 0 : i32
    %c0_i32_0 = arith.constant 0 : i32
    %c0_i32_1 = arith.constant 0 : i32
    return %c0_i32, %c0_i32_0 : i32, i32
  }
  func.func @transform_4(%arg0: i32, %arg1: i32) -> (i32, i32) {
    %c0_i32 = arith.constant 0 : i32
    %c0_i32_0 = arith.constant 0 : i32
    %c0_i32_1 = arith.constant 0 : i32
    return %c0_i32, %c0_i32_0 : i32, i32
  }
  func.func @transform_5(%arg0: i32, %arg1: i32) -> (i32, i32, i32, i32) {
    %c0_i32 = arith.constant 0 : i32
    %c0_i32_0 = arith.constant 0 : i32
    %c0_i32_1 = arith.constant 0 : i32
    return %arg0, %arg1, %c0_i32, %c0_i32_0 : i32, i32, i32, i32
  }
  func.func @transform_6(%arg0: i32, %arg1: i32) -> (i32, i32, i32) {
    %c0_i32 = arith.constant 0 : i32
    %c0_i32_0 = arith.constant 0 : i32
    %c0_i32_1 = arith.constant 0 : i32
    return %arg0, %c0_i32, %c0_i32_0 : i32, i32, i32
  }
}

</mosaic_0001>

<bundles_post_ra>
// kernel: tpu_custom_call.1
= control target key start
LH: loop header
LB: loop body
LE: loop exit
PB: predicated region body
PF: predicated region fallthrough
CT: control target
= control target key end

     0   :  { %s11439_s0 = inlined_call_operand.hbm [shape: bf16[2,2,12,24,128], index: 0, kind: input, shape index: {}]   ;;  %s11440_s1 = inlined_call_operand.hbm [shape: bf16[1152,128], index: 1, kind: input, shape index: {}]   ;;  %s11441_s2 = inlined_call_operand.vmem [shape: f32[1,128], index: 2, kind: input, shape index: {}]   ;;  %s11442_s3 = inlined_call_operand.hbm [shape: bf16[1152,128], index: 3, kind: input, shape index: {}]   ;;  %s11443_s4 = inlined_call_operand.vmem [shape: f32[1,128], index: 4, kind: input, shape index: {}]   ;;  %s11444_s5 = inlined_call_operand.hbm [shape: bf16[2,16,16,128], index: 5, kind: output, shape index: {0}]   ;;  %s11445_s6 = inlined_call_operand.hbm [shape: f32[2,1,128], index: 6, kind: output, shape index: {1}]  }
   0x1   :  { %11467 = sst [smem:[#allocation26_spill]] %s11439_s0 }
   0x2   :  { %11468 = sst [smem:[#allocation27_spill]] %s11440_s1 }
   0x3   :  { %11469 = sst [smem:[#allocation28_spill]] %s11441_s2 }
   0x4   :  { %11470 = sst [smem:[#allocation29_spill]] %s11442_s3 }
   0x5   :  { %11471 = sst [smem:[#allocation30_spill]] %s11443_s4 }
   0x6   :  { %11472 = sst [smem:[#allocation31_spill]] %s11444_s5 }
   0x7   :  { %11473 = sst [smem:[#allocation32_spill]] %s11445_s6 }
   0x8   :  { %12 = vsyncpa [#allocation6], 0 }
   0x9   :  { %14 = vsyncpa [#allocation6 + $0x1], 0 }
   0xa   :  { %15 = vsyncpa [#allocation9], 0 }
   0xb   :  { %16 = vsyncpa [#allocation7], 0 }
   0xc   :  { %18 = vsyncpa [#allocation7 + $0x1], 0 }
   0xd   :  { %19 = vsyncpa [#allocation13], 0 }
   0xe   :  { %21 = vsyncpa [#allocation13 + $0x1], 0  ;;  %s9582_s21 = smov 0   ;;  %s9584_s22 = smov 0  }
   0xf   :  { %s9586_s23 = smov 0   ;;  %s9588_s24 = smov 0  }
  0x10   :  { %s9590_s25 = smov 0   ;;  %s9592_s26 = smov 0  }
  0x11   :  { %s9594_s27 = smov 0   ;;  %s9596_s28 = smov 0  }
  0x12   :  { %s9598_s29 = smov 0   ;;  %s9600_s30 = smov 0  }
  0x13   :  { %s9602_s7 = smov 0  }
  0x14 LB: > { %11474 = sst [smem:[#allocation18_spill]] %s9493_s21  ;;  %s7164_s8 = sadd.s32 4294967295, %s9533_s7   ;;  %s9533_s7 = sphi %s9602_s7, %s27_s7   ;;  %s9529_s30 = sphi %s9600_s30, %s11541_s30   ;;  %s9525_s29 = sphi %s9598_s29, %s11540_s29   ;;  %s9521_s28 = sphi %s9596_s28, %s11539_s28   ;;  %s9517_s27 = sphi %s9594_s27, %s11538_s27   ;;  %s9513_s26 = sphi %s9592_s26, %s11537_s26   ;;  %s9509_s25 = sphi %s9590_s25, %s11536_s25   ;;  %s9505_s24 = sphi %s9588_s24, %s11535_s24   ;;  %s9501_s23 = sphi %s9586_s23, %s11534_s23   ;;  %s9497_s22 = sphi %s9584_s22, %s11533_s22   ;;  %s9493_s21 = sphi %s9582_s21, %s11532_s21  }
  0x15   : > { %11475 = sst [smem:[#allocation19_spill]] %s9505_s24  ;;  %s7165_s9 = sadd.s32 4294967294, %s9533_s7  }
  0x16   : > { %11476 = sst [smem:[#allocation20_spill]] %s9521_s28  ;;  %p61_p0 = scmp.ne.s32.totalorder %s9509_s25, %s9505_s24 }
  0x17   : > { %p9641_p1 = scmp.eq.s32.totalorder %s7164_s8, 0  ;;  %p9645_p2 = scmp.eq.s32.totalorder %s7164_s8, 3 }
  0x18   : > { %p177_p3 = scmp.eq.s32.totalorder %s7165_s9, 3  ;;  %p196_p6 = scmp.ne.s32.totalorder %s9501_s23, %s9497_s22 }
  0x19   : > { %s11477_s10 = scalar_select %p9641_p1, 1, 0 }
  0x1a   : > { %s11478_s11 = scalar_select %p9645_p2, 1, 0 }
  0x1b   : > { %p9651_p4 = por %p9641_p1, %p61_p0  ;;  %p9656_p5 = por %p177_p3, %p61_p0 }
  0x1c   : > { %p202_p7 = scmp.ne.s32.totalorder %s9497_s22, %s9493_s21  ;;  %p7166_p8 = scmp.ge.s32.totalorder %s9533_s7, 1 }
  0x1d   : > { %s11479_s12 = scalar_select %p9651_p4, 1, 0 }
  0x1e   : > { %s11480_s14 = scalar_select %p9656_p5, 1, 0 }
  0x1f   : > { %p9667_p9 = por %p196_p6, %p9645_p2  ;;  %p210_p10 = scmp.lt.s32.totalorder %s9533_s7, 5 }
  0x20   : > { %11481 = sst [smem:[#allocation21_spill]] %s11480_s14  ;;  %p9672_p11 = por %p202_p7, %p177_p3 }
  0x21   : > { %s11482_s15 = scalar_select %p9667_p9, 1, 0 }
  0x22   : > { %s11484_s16 = scalar_select %p9672_p11, 1, 0 }
  0x23   : > { %11483 = sst [smem:[#allocation22_spill]] %s11482_s15  ;;  %p9676_p12 = pnand %p7166_p8, %p210_p10 }
  0x24   : > { %11485 = sst [smem:[#allocation23_spill]] %s11484_s16  ;;  %s9535_s18 = smov [#allocation8]  }
  0x25   : > { %s11486_s17 = scalar_select %p9676_p12, 1, 0 }
  0x26   : > { %s222_s19 = sshll.u32 %s9535_s18, 4  ;;  %p8969_p13 = pneg %p9676_p12  ;;  %s223_s19 = int_to_ptr.vmem [resolvable:$true] %s222_s19 }
  0x27   : > { %s9536_s8 = smov [#allocation10]   ;;  %s11488_s1 = sld [smem:[#allocation27_spill]] }
  0x28   : > { %p9684_p0 = pnand %p8969_p13, %p9641_p1  ;;  %s238_s9 = sshll.u32 %s9536_s8, 4  ;;  %s9688_s9 = int_to_ptr.vmem [resolvable:$true] %s238_s9 }
  0x2a   : > { %p9291_p6 = pneg %p9684_p0 }
  0x2d   : > { %s9289_s21 = scalar_lea.hbm %s11488_s1, 9216 }
  0x2e   : > { %p9290_p3 = scmp.ne.s32.totalorder %s11488_s1, %s9289_s21  ;;  %p9296_p10 = scmp.lt.u32.totalorder %s9289_s21, %s11488_s1 }
  0x30   : > { %p9292_p7 = pnand %p9291_p6, %p9290_p3 }
  0x32   : > { %p9293_p8 = pneg %p9292_p7 }
  0x34   : > { %p9298_p13 = pnand %p9296_p10, %p9293_p8 }
  0x36   : > { %9301 = shalt.err (!%p9298_p13)
}
  0x37   : > { %s9302_s8 = scalar_lea.vmem %s223_s19, 9216  ;;  %p9310_p1 = scmp.lt.s32.totalorder %s223_s19, %s223_s19 }
  0x38   : > { %p9303_p11 = scmp.ne.s32.totalorder %s223_s19, %s9302_s8  ;;  %p9311_p4 = scmp.lt.s32.totalorder %s9302_s8, %s9302_s8 }
  0x3a   : > { %p9305_p5 = pnand %p9303_p11, %p9291_p6  ;;  %p9312_p12 = por %p9311_p4, %p9310_p1 }
  0x3c   : > { %p9306_p9 = pneg %p9305_p5 }
  0x3e   : > { %p9313_p2 = pnand %p9312_p12, %p9306_p9 }
  0x40   : > { %9316 = shalt.err (!%p9313_p2)
}
  0x41   : > { %s11461_s13 = smov 64   ;;  %s11462_s14 = smov 4  }
  0x42   : > { %8972 = dma.hbm_to_vmem [thread:$0]  (!%p9684_p0), %s11488_s1, 9216, %s223_s19, [#allocation9], %s11461_s13, %s11461_s13, %s11462_s14  }
  0x43   : > { %s11489_s3 = sld [smem:[#allocation29_spill]] }
  0x49   : > { %s9317_s18 = scalar_lea.hbm %s11489_s3, 9216 }
  0x4a   : > { %p9318_p1 = scmp.ne.s32.totalorder %s11489_s3, %s9317_s18  ;;  %p9324_p5 = scmp.lt.u32.totalorder %s9317_s18, %s11489_s3 }
  0x4c   : > { %p9320_p2 = pnand %p9318_p1, %p9291_p6 }
  0x4e   : > { %p9321_p4 = pneg %p9320_p2 }
  0x50   : > { %p9326_p9 = pnand %p9324_p5, %p9321_p4 }
  0x52   : > { %9329 = shalt.err (!%p9326_p9)
}
  0x53   : > { %s9330_s19 = scalar_lea.vmem %s9688_s9, 9216  ;;  %p9338_p7 = scmp.lt.s32.totalorder %s9688_s9, %s9688_s9 }
  0x54   : > { %p9331_p11 = scmp.ne.s32.totalorder %s9688_s9, %s9330_s19  ;;  %p9339_p8 = scmp.lt.s32.totalorder %s9330_s19, %s9330_s19 }
  0x56   : > { %p9333_p12 = pnand %p9331_p11, %p9291_p6  ;;  %p9340_p10 = por %p9339_p8, %p9338_p7 }
  0x58   : > { %p9334_p3 = pneg %p9333_p12 }
  0x5a   : > { %p9341_p13 = pnand %p9340_p10, %p9334_p3 }
  0x5c   : > { %9344 = shalt.err (!%p9341_p13)
}
  0x5d   : > { %8975 = dma.hbm_to_vmem [thread:$0]  (!%p9684_p0), %s11489_s3, 9216, %s9688_s9, [#allocation9], %s11461_s13, %s11461_s13, %s11462_s14  }
  0x5e   : > { %s36_s15 = sadd.s32 1, %s9525_s29  ;;  %s39_s20 = sadd.s32 1, %s9529_s30 }
  0x5f   : > { %p37_p6 = scmp.ge.s32.totalorder %s36_s15, 2  ;;  %s48_s6 = sadd.s32 1, %s9513_s26 }
  0x60   : > { %p55_p1 = scmp.ne.s32.totalorder %s9513_s26, %s9509_s25  ;;  %p56_p2 = scmp.eq.s32.totalorder %s9533_s7, 0 }
  0x61   : > { %s11543_s15 = smov (%p37_p6, %s36_s15), 0  ;;  %s11545_s20 = smov (!%p37_p6, %s39_s20), %s9529_s30 }
  0x62   : > { %11490 = sst [smem:[#allocation24_spill]] %s11543_s15  ;;  %s44_s21 = ssub.s32 %s9525_s29, %s11543_s15 }
  0x63   : > { %p41_p4 = scmp.ge.s32.totalorder %s11545_s20, 2  ;;  %p11491_p5 = scmp.ne.s32.totalorder %s11478_s11, 0 }
  0x64   : > { %p9760_p9 = por %p56_p2, %p55_p1  ;;  %p8989_p11 = scmp.lt.s32.totalorder %s9533_s7, 4 }
  0x65   : > { %p9756_p0 = por %p11491_p5, %p55_p1  ;;  %s11547_s20 = smov (%p41_p4, %s11545_s20), 0 }
  0x66   : > { %11494 = sst [smem:[#allocation25_spill]] %s11547_s20  ;;  %s255_s16 = sand.u32 1, %s9513_s26  }
  0x67   : > { %s8952_s18 = smul.u32 36, %s9525_s29  ;;  %s43_s8 = ssub.s32 %s9529_s30, %s11547_s20 }
  0x68   : > { %s45_s19 = sor.u32 %s44_s21, %s43_s8  ;;  %p184_p12 = scmp.eq.s32.totalorder %s43_s8, 0 }
  0x69   : > { %p46_p3 = scmp.eq.s32.totalorder %s45_s19, 0  ;;  %s8951_s11 = smul.u32 144, %s255_s16 }
  0x6a   : > { %s11495_s5 = sadd.s32 1, %s9501_s23  ;;  %s8953_s14 = smul.u32 72, %s9529_s30 }
  0x6b   : > { %s9774_s28 = scalar_select %p184_p12, %s9501_s23, %s11495_s5  }
  0x6c   : > { %s9777_s13 = scalar_select %p46_p3, %s9513_s26, %s48_s6  }
  0x6d   : > { %s259_s1 = scalar_lea.vmem [#allocation5], %s8951_s11  ;;  %p9784_p7 = pnand %p8989_p11, %p9760_p9 }
  0x6e   : > { %s268_s3 = sshll.u32 %s259_s1, 4  ;;  %s265_s21 = sadd.s32 %s8953_s14, %s8952_s18  ;;  %s9788_s3 = int_to_ptr.vmem [resolvable:$true] %s268_s3 }
  0x6f   : > { %s7170_s8 = sshll.u32 %s265_s21, 6  ;;  %s11497_s0 = sld [smem:[#allocation26_spill]] }
  0x70   : > { %s9795_s1 = scalar_lea.sflag [#allocation6], %s255_s16  ;;  %p9347_p10 = pneg %p9784_p7 }
  0x75   : > { %s9793_s6 = scalar_lea.hbm %s11497_s0, %s7170_s8  ;;  %s9350_s11 = scalar_lea.hbm %s11497_s0, 9216 }
  0x76   : > { %s9345_s24 = scalar_lea.hbm %s9793_s6, 2304  ;;  %p9351_p1 = scmp.lt.u32.totalorder %s9793_s6, %s11497_s0 }
  0x77   : > { %p9346_p8 = scmp.ne.s32.totalorder %s9793_s6, %s9345_s24  ;;  %p9352_p2 = scmp.lt.u32.totalorder %s9350_s11, %s9345_s24 }
  0x78   : > { %p9354_p5 = scmp.lt.u32.totalorder %s9345_s24, %s9793_s6 }
  0x79   : > { %p9348_p13 = pnand %p9347_p10, %p9346_p8  ;;  %p9353_p4 = por %p9352_p2, %p9351_p1 }
  0x7b   : > { %p9349_p6 = pneg %p9348_p13  ;;  %p9355_p9 = por %p9354_p5, %p9353_p4 }
  0x7d   : > { %p9356_p11 = pnand %p9355_p9, %p9349_p6 }
  0x7f   : > { %9359 = shalt.err (!%p9356_p11)
}
  0x80   : > { %s9360_s16 = scalar_lea.vmem %s9788_s3, 2304  ;;  %s9539_s19 = smov [#allocation5]  }
  0x81   : > { %p9361_p12 = scmp.ne.s32.totalorder %s9788_s3, %s9360_s16  ;;  %s9365_s5 = sshll.u32 %s9539_s19, 4  ;;  %s9366_s5 = int_to_ptr.vmem [resolvable:$false] %s9365_s5 }
  0x82   : > { %s9367_s14 = scalar_lea.vmem %s9366_s5, 4608  ;;  %p9368_p13 = scmp.lt.s32.totalorder %s9788_s3, %s9366_s5 }
  0x83   : > { %p9363_p3 = pnand %p9361_p12, %p9347_p10  ;;  %p9369_p1 = scmp.lt.s32.totalorder %s9367_s14, %s9360_s16 }
  0x85   : > { %p9364_p8 = pneg %p9363_p3  ;;  %p9370_p2 = por %p9369_p1, %p9368_p13 }
  0x87   : > { %p9371_p4 = pnand %p9370_p2, %p9364_p8 }
  0x89   : > { %9374 = shalt.err (!%p9371_p4)
}
  0x8a   : > { %s11498_s24 = smov 4   ;;  %s11499_s18 = smov 64  }
  0x8b   : > { %8979 = dma.hbm_to_vmem [thread:$0]  (!%p9784_p7), %s9793_s6, 2304, %s9788_s3, %s9795_s1, %s11499_s18, %s11499_s18, %s11498_s24  }
  0x8c   : > { %p11500_p10 = scmp.ne.s32.totalorder %s11486_s17, 0 }
  0x8d   : > { %s9829_s11 = sand.u32 (!%p11500_p10), 1, %s9509_s25   ;;  %p11501_p6 = scmp.ne.s32.totalorder (!%p11500_p10), %s11479_s12, 0 }
  0x8e   : > { %280 = sbr.rel (%p11500_p10) target bundleno = 1232 (0x4d0), region = 40  ;;  %s283_s8 = scalar_lea.sflag (!%p11500_p10), [#allocation6], %s9829_s11 }
  0x8f   : > { %s8954_s21 = smul.u32 (!%p11500_p10), 144, %s9829_s11 }
  0x91   : > { %s9833_s16 = scalar_lea.vmem (!%p11500_p10), [#allocation5], %s8954_s21 }
  0x95   : > { %9476 = dma.done.wait (%p11501_p6), %s283_s8, 2304  }
  0x96   : > { %9478 = vsyncadd (%p11501_p6), %s283_s8, 4294964992  ;;  %p11502_p7 = scmp.ne.s32.totalorder %s11477_s10, 0 }
  0x98   : > { %9480 = dma.done.wait (%p11502_p7), [#allocation9], 18432  }
  0x99   : > { %9482 = vsyncadd (%p11502_p7), [#allocation9], 4294948864  ;;  %s7174_s3 = sshll.u32 %s9829_s11, 6  ;;  %s11464_s17 = sand.u32 1, %s9497_s22   ;;  %v9090_v0 = vld [vmem:[#allocation8 + $0x40] sm:$0xff]   ;;  %v9092_v2 = vld [vmem:[#allocation8 + $0x48] sm:$0xff]  }
  0x9a   : > { %v9091_v1 = vld [vmem:[#allocation8] sm:$0xff]   ;;  %7829 = vmatprep.subr.bf16.mxu0 %v9090_v0  ;;  %v9093_v3 = vld [vmem:[#allocation8 + $0x8] sm:$0xff]   ;;  %v9094_v4 = vld [vmem:[#allocation8 + $0x50] sm:$0xff]   ;;  %vm449_vm0 = vsmask.f32 3328  ;;  %vm802_vm3 = vcmask 1042432  }
  0x9b   : > { %7830 = vmatpush3.bf16.msra.mxu0 %v9091_v1  ;;  %v9095_v5 = vld [vmem:[#allocation8 + $0x10] sm:$0xff]   ;;  %v9096_v6 = vld [vmem:[#allocation8 + $0x100] sm:$0xff]   ;;  %v9098_v8 = vld [vmem:[#allocation8 + $0x58] sm:$0xff]   ;;  %vm450_vm1 = vsmask.f32 7440  ;;  %vm803_vm4 = vcmask 1046532  }
  0x9c   : > { %7831 = vmatprep.subr.bf16.mxu0 %v9092_v2  ;;  %v9097_v7 = vld [vmem:[#allocation8 + $0xc0] sm:$0xff]   ;;  %7923 = vmatprep.subr.bf16.mxu1 %v9096_v6  ;;  %v9099_v9 = vld [vmem:[#allocation8 + $0x18] sm:$0xff]   ;;  %v9100_v10 = vld [vmem:[#allocation8 + $0x108] sm:$0xff]   ;;  %s11507_s2 = sld [smem:[#allocation28_spill]]  ;;  %vm3921_vm6 = vcmask 1043456   ;;  %vm3928_vm9 = vcmask 1040384  }
  0x9d   : > { %7924 = vmatpush3.bf16.msra.mxu1 %v9097_v7  ;;  %v9101_v11 = vld [vmem:[#allocation8 + $0xc8] sm:$0xff]   ;;  %v9102_v12 = vld [vmem:[#allocation8 + $0x60] sm:$0xff]   ;;  %v9104_v14 = vld [vmem:[#allocation8 + $0x110] sm:$0xff]   ;;  %vm3922_vm7 = vsmask.f32 7938  ;;  %s10702_s15 = scalar_lea.vmem [#allocation11], %s7174_s3 }
  0x9e   : > { %7925 = vmatprep.subr.bf16.mxu1 %v9100_v10  ;;  %v9103_v13 = vld [vmem:[#allocation8 + $0x20] sm:$0xff]   ;;  %v9105_v15 = vld [vmem:[#allocation8 + $0xd0] sm:$0xff]   ;;  %v9106_v16 = vld [vmem:[#allocation8 + $0x68] sm:$0xff]   ;;  %vm3718_vm8 = vsmask.f32 256  ;;  %s10706_s6 = scalar_lea.vmem [#allocation12], %s11464_s17 }
  0x9f   : > { %7832 = vmatpush3.bf16.msra.mxu0 %v9093_v3  ;;  %v9107_v17 = vld [vmem:[#allocation8 + $0x28] sm:$0xff]   ;;  %v9108_v18 = vld [vmem:[#allocation8 + $0x118] sm:$0xff]   ;;  %v9110_v20 = vld [vmem:[#allocation8 + $0x70] sm:$0xff]   ;;  %vm3719_vm11 = vsmask.f32 4368  ;;  %p7548_p5 = scmp.ne.s32.totalorder %s9517_s27, 0 }
  0xa0   : > { %7833 = vmatprep.subr.bf16.mxu0 %v9094_v4  ;;  %v9109_v19 = vld [vmem:[#allocation8 + $0xd8] sm:$0xff]   ;;  %v9111_v21 = vld [vmem:[#allocation8 + $0x30] sm:$0xff]   ;;  %v9112_v22 = vld [vmem:[#allocation8 + $0x120] sm:$0xff]  }
  0xa1   : > { %7926 = vmatpush3.bf16.msra.mxu1 %v9101_v11  ;;  %v9113_v23 = vld [vmem:[#allocation8 + $0xe0] sm:$0xff]   ;;  %v9114_v24 = vld [vmem:[#allocation8 + $0x78] sm:$0xff]   ;;  %v9116_v26 = vld [vmem:[#allocation8 + $0x128] sm:$0xff]  }
  0xa2   : > { %7927 = vmatprep.subr.bf16.mxu1 %v9104_v14  ;;  %v9115_v25 = vld [vmem:[#allocation8 + $0x38] sm:$0xff]   ;;  %v419_v27 = vld [vmem:[%s9833_s16] sm:$0xf]  ;;  %v420_v28 = vld [vmem:[%s9833_s16 + $0x4] sm:$0xf] }
  0xa3   : > { %7834 = vmatpush3.bf16.msra.mxu0 %v9095_v5  ;;  %v421_v29 = vld [vmem:[%s9833_s16 + $0x8] sm:$0x1]  ;;  %v453_v30 = vshrl.u32 %v419_v27, 16  ;;  %v456_v31 = vshll.u32 %v419_v27, 16  ;;  %v462_v32 = vshll.u32 %v420_v28, 16  ;;  %v466_v33 = vshrl.u32 %v420_v28, 16  ;;  %vm9853_vm2 = vmor %vm449_vm0, %vm450_vm1 }
  0xa4   : > { %7835 = vmatprep.subr.bf16.mxu0 %v9098_v8  ;;  %v7269_v34 = vld [vmem:[%s9833_s16 + $0xc] sm:$0xf]  ;;  %v472_v35 = vshll.u32 %v421_v29, 16  ;;  %v7270_v36 = vld [vmem:[%s9833_s16 + $0x10] sm:$0xf]  ;;  %v9118_v59 = vld [vmem:[%s9833_s16] sm:$0xff]  }
  0xa5   : > { %7928 = vmatpush3.bf16.msra.mxu1 %v9105_v15  ;;  %v7271_v37 = vld [vmem:[%s9833_s16 + $0x14] sm:$0x1]  ;;  %v1515_v38 = vshrl.u32 %v7269_v34, 16  ;;  %v455_v39 = vrot.slane %v453_v30, 4  ;;  %v458_v40 = vrot.slane %v456_v31, 5  ;;  %v464_v41 = vrot.slane %v462_v32, 5  ;;  %vm10085_vm5 = vmor %vm802_vm3, %vm803_vm4 }
  0xa6   : > { %7929 = vmatprep.subr.bf16.mxu1 %v9108_v18  ;;  %v468_v42 = vrot.slane %v466_v33, 4  ;;  %v474_v43 = vrot.slane %v472_v35, 5  ;;  %v1518_v45 = vshll.u32 %v7269_v34, 16  ;;  %v1524_v46 = vshll.u32 %v7270_v36, 16  ;;  %v9117_v51 = vld [vmem:[#allocation8 + $0xe8] sm:$0xff]   ;;  %v9120_v0 = vld [vmem:[#allocation8 + $0x80] sm:$0xff]   ;;  %vm10507_vm10 = vmand %vm3921_vm6, %vm3922_vm7 }
  0xa7   : > { %7836 = vmatpush3.bf16.msra.mxu0 %v9099_v9  ;;  %v1517_v44 = vrot.slane %v1515_v38, 4  ;;  %v459_v47 = vor.u32 %v458_v40, %v455_v39  ;;  %v1528_v49 = vshrl.u32 %v7270_v36, 16  ;;  %v1534_v50 = vshll.u32 %v7271_v37, 16  ;;  %v9121_v3 = vld [vmem:[#allocation8 + $0x130] sm:$0xff]   ;;  %v9123_v7 = vld [vmem:[#allocation8 + $0x138] sm:$0xff]   ;;  %vm10518_vm12 = vmand %vm3928_vm9, %vm3718_vm8 }
  0xa8   : > { %7837 = vmatprep.subr.bf16.mxu0 %v9102_v12  ;;  %v469_v48 = vor.u32 %v468_v42, %v464_v41  ;;  %v1520_v53 = vrot.slane %v1518_v45, 5  ;;  %v1526_v54 = vrot.slane %v1524_v46, 5  ;;  %v9122_v5 = vld [vmem:[#allocation8 + $0xf0] sm:$0xff]   ;;  %v422_v8 = vld [vmem:[%s9833_s16 + $0xc] sm:$0xf]  ;;  %vm10528_vm13 = vmor %vm3718_vm8, %vm3719_vm11 }
  0xa9   : > { %7930 = vmatpush3.bf16.msra.mxu1 %v9109_v19  ;;  %v460_v55 = vrot.slane %v459_v47, 4  ;;  %v1530_v57 = vrot.slane %v1528_v49, 4  ;;  %v1536_v63 = vrot.slane %v1534_v50, 5  ;;  %v423_v9 = vld [vmem:[%s9833_s16 + $0x10] sm:$0xf]  ;;  %v477_v12 = vshrl.u32 %v422_v8, 16  ;;  %vm10554_vm14 = vmand %vm3928_vm9, %vm3922_vm7 }
  0xaa   : > { %7931 = vmatprep.subr.bf16.mxu1 %v9112_v22  ;;  %v470_v56 = vrot.slane %v469_v48, 4  ;;  %v1521_v58 = vor.u32 %v1520_v53, %v1517_v44  ;;  %v424_v11 = vld [vmem:[%s9833_s16 + $0x14] sm:$0x1]  ;;  %v486_v14 = vshll.u32 %v423_v9, 16  ;;  %v9124_v15 = vld [vmem:[#allocation8 + $0xf8] sm:$0xff]   ;;  %v490_v18 = vshrl.u32 %v423_v9, 16 }
  0xab   : > { %7838 = vmatpush3.bf16.msra.mxu0 %v9103_v13  ;;  %v465_v60 = vsel %vm9853_vm2, %v460_v55, %v464_v41  ;;  %v1531_v62 = vor.u32 %v1530_v57, %v1526_v54  ;;  %v480_v13 = vshll.u32 %v422_v8, 16  ;;  %v496_v19 = vshll.u32 %v424_v11, 16  ;;  %v7413_v44 = vld [vmem:[%s9833_s16 + $0x18] sm:$0xf]  ;;  %v7414_v48 = vld [vmem:[%s9833_s16 + $0x1c] sm:$0xf] }
  0xac   : > { %7839 = vmatprep.subr.bf16.mxu0 %v9106_v16  ;;  %v475_v61 = vsel %vm9853_vm2, %v470_v56, %v474_v43  ;;  %v1522_v2 = vrot.slane %v1521_v58, 4  ;;  %v479_v22 = vrot.slane %v477_v12, 4  ;;  %v492_v27 = vrot.slane %v490_v18, 4  ;;  %v9125_v43 = vld [vmem:[%s9833_s16 + $0xc] sm:$0xff]   ;;  %v7415_v49 = vld [vmem:[%s9833_s16 + $0x20] sm:$0x1] }
  0xad   : > { %7932 = vmatpush3.bf16.msra.mxu1 %v9113_v23  ;;  %v7185_v1 = vcombine.low %v465_v60, %v475_v61  ;;  %v1532_v4 = vrot.slane %v1531_v62, 4  ;;  %v482_v23 = vrot.slane %v480_v13, 5  ;;  %v498_v28 = vrot.slane %v496_v19, 5  ;;  %v9127_v45 = vld [vmem:[#allocation8 + $0x88] sm:$0xff]   ;;  %v7275_v12 = vld [vmem:[%s9833_s16 + $0x24] sm:$0xf] }
  0xae   : > { %7933 = vmatprep.subr.bf16.mxu1 %v9116_v26  ;;  %v1527_v6 = vsel %vm9853_vm2, %v1522_v2, %v1526_v54  ;;  %v2614_v50 = vshrl.u32 %v7413_v44, 16  ;;  %v2623_v55 = vshll.u32 %v7414_v48, 16  ;;  %v2627_v56 = vshrl.u32 %v7414_v48, 16  ;;  %v9128_v57 = vld [vmem:[%s9833_s16 + $0x18] sm:$0xff]  }
  0xaf   : > { %7840 = vmatpush3.bf16.msra.mxu0 %v9107_v17  ;;  %1179 = vmatprep.mubr.bf16.mxu0 %v7185_v1  ;;  %v1537_v10 = vsel %vm9853_vm2, %v1532_v4, %v1536_v63  ;;  %v9119_v17 = vld [vmem:[%s9833_s16 + $0xc] sm:$0xff]   ;;  %v483_v31 = vor.u32 %v482_v23, %v479_v22  ;;  %v9126_v63 = vld [vmem:[%s9833_s16 + $0x18] sm:$0xff]   ;;  %v2633_v2 = vshll.u32 %v7415_v49, 16  ;;  %2573 = vst [vmem:[#allocation2] sm:$0xff] %v9128_v57  ;;  %v1563_v22 = vshrl.u32 %v7275_v12, 16 }
  0xb0   : > { %7841 = vmatprep.subr.bf16.mxu0 %v9110_v20  ;;  %v7299_v16 = vcombine.low %v1527_v6, %v1537_v10  ;;  %v7272_v20 = vld [vmem:[%s9833_s16 + $0x18] sm:$0xf]  ;;  %v2616_v60 = vrot.slane %v2614_v50, 4  ;;  %v2629_v1 = vrot.slane %v2627_v56, 4  ;;  %v426_v6 = vld [vmem:[%s9833_s16 + $0x1c] sm:$0xf] }
  0xb1   : > { %7934 = vmatpush3.bf16.msra.mxu1 %v9117_v51  ;;  %v1539_v26 = vshrl.u32 %v7272_v20, 16  ;;  %v1542_v29 = vshll.u32 %v7272_v20, 16  ;;  %v484_v38 = vrot.slane %v483_v31, 4  ;;  %v2617_v51 = vshll.u32 %v7413_v44, 16  ;;  %v427_v10 = vld [vmem:[%s9833_s16 + $0x20] sm:$0x1] }
  0xb2   : > { %7935 = vmatprep.subr.bf16.mxu1 %v9121_v3  ;;  %2238 = vmatprep.mubr.bf16.mxu1 %v7299_v16  ;;  %v2635_v9 = vrot.slane %v2633_v2, 5  ;;  %v514_v16 = vshrl.u32 %v426_v6, 16  ;;  %v520_v20 = vshll.u32 %v427_v10, 16  ;;  %v1566_v31 = vshll.u32 %v7275_v12, 16  ;;  %v9129_v44 = vld [vmem:[%s9833_s16 + $0x18] sm:$0xff]  }
  0xb3   : > { %7842 = vmatpush3.bf16.msra.mxu0 %v9111_v21  ;;  %v7273_v21 = vld [vmem:[%s9833_s16 + $0x1c] sm:$0xf]  ;;  %v1541_v32 = vrot.slane %v1539_v26, 4  ;;  %v1544_v36 = vrot.slane %v1542_v29, 5  ;;  %v2619_v61 = vrot.slane %v2617_v51, 5 }
  0xb4   : > { %7843 = vmatprep.subr.bf16.mxu0 %v9114_v24  ;;  %v488_v24 = vrot.slane %v486_v14, 5  ;;  %v1548_v30 = vshll.u32 %v7273_v21, 16  ;;  %v1552_v33 = vshrl.u32 %v7273_v21, 16  ;;  %v7277_v21 = vld [vmem:[%s9833_s16 + $0x2c] sm:$0x1]  ;;  %v516_v26 = vrot.slane %v514_v16, 4 }
  0xb5   : > { %7936 = vmatpush3.bf16.msra.mxu1 %v9122_v5  ;;  %v1545_v42 = vor.u32 %v1544_v36, %v1541_v32  ;;  %v2620_v4 = vor.u32 %v2619_v61, %v2616_v60  ;;  %v425_v5 = vld [vmem:[%s9833_s16 + $0x18] sm:$0xf]  ;;  %v522_v29 = vrot.slane %v520_v20, 5  ;;  %v9132_v32 = vld [vmem:[#allocation8 + $0x90] sm:$0xff]   ;;  %v7418_v50 = vld [vmem:[%s9833_s16 + $0x2c] sm:$0x1] }
  0xb6   : > { %7937 = vmatprep.subr.bf16.mxu1 %v9123_v7  ;;  %v493_v35 = vor.u32 %v492_v27, %v488_v24  ;;  %v1550_v37 = vrot.slane %v1548_v30, 5  ;;  %v1554_v39 = vrot.slane %v1552_v33, 4  ;;  %v489_v46 = vsel %vm9853_vm2, %v484_v38, %v488_v24  ;;  %v9131_v27 = vld [vmem:[%s9833_s16 + $0x24] sm:$0xff]  }
  0xb7   : > { %7844 = vmatpush3.bf16.msra.mxu0 %v9115_v25  ;;  %v7274_v25 = vld [vmem:[%s9833_s16 + $0x20] sm:$0x1]  ;;  %v1546_v54 = vrot.slane %v1545_v42, 4  ;;  %v501_v11 = vshrl.u32 %v425_v5, 16  ;;  %v2621_v13 = vrot.slane %v2620_v4, 4  ;;  %v504_v14 = vshll.u32 %v425_v5, 16 }
  0xb8   : > { %8351 = vmatprep.subr.bf16.mxu0 %v9120_v0  ;;  %v1558_v34 = vshll.u32 %v7274_v25, 16  ;;  %v494_v41 = vrot.slane %v493_v35, 4  ;;  %v1555_v47 = vor.u32 %v1554_v39, %v1550_v37  ;;  %v1565_v30 = vrot.slane %v1563_v22, 4  ;;  %2574 = vst [vmem:[#allocation2 + $0x18] sm:$0xff] %v9131_v27  ;;  %v9136_v2 = vld [vmem:[#allocation8 + $0x98] sm:$0xff]  }
  0xb9   : > { %7938 = vmatpush3.bf16.msra.mxu1 %v9124_v15  ;;  %v1551_v62 = vsel %vm9853_vm2, %v1546_v54, %v1550_v37  ;;  %v510_v15 = vshll.u32 %v426_v6, 16  ;;  %v503_v19 = vrot.slane %v501_v11, 4  ;;  %v506_v24 = vrot.slane %v504_v14, 5  ;;  %v429_v6 = vld [vmem:[%s9833_s16 + $0x28] sm:$0xf] }
  0xba   : > { %1180 = vmatmul.mubr.bf16.vlgmr.msra.gmra.mrb[0].mxu0 %v9118_v59  ;;  %v1560_v40 = vrot.slane %v1558_v34, 5  ;;  %v499_v53 = vsel %vm9853_vm2, %v494_v41, %v498_v28  ;;  %v1556_v59 = vrot.slane %v1555_v47, 4  ;;  %v1568_v37 = vrot.slane %v1566_v31, 5 }
  0xbb   : > { %8352 = vmatpush3.bf16.msra.mxu0 %v9120_v0  ;;  %v7186_v58 = vcombine.low %v489_v46, %v499_v53  ;;  %v2625_v0 = vrot.slane %v2623_v55, 5  ;;  %v512_v25 = vrot.slane %v510_v15, 5  ;;  %v507_v34 = vor.u32 %v506_v24, %v503_v19  ;;  %v9135_v53 = vld [vmem:[%s9833_s16 + $0x30] sm:$0xff]   ;;  %v9130_v15 = vld [vmem:[%s9833_s16 + $0x24] sm:$0xff]   ;;  %v7280_v24 = vld [vmem:[%s9833_s16 + $0x38] sm:$0x1] }
  0xbc   : > { %2239 = vmatmul.mubr.bf16.vlgmr.msra.gmra.mrb[0].mxu1 %v9119_v17  ;;  %8353 = vmatprep.subr.bf16.mxu0 %v9127_v45  ;;  %v1561_v3 = vsel %vm9853_vm2, %v1556_v59, %v1560_v40  ;;  %v7276_v17 = vld [vmem:[%s9833_s16 + $0x28] sm:$0xf]  ;;  %v1582_v39 = vshll.u32 %v7277_v21, 16  ;;  %v7416_v40 = vld [vmem:[%s9833_s16 + $0x24] sm:$0xf]  ;;  %v1569_v47 = vor.u32 %v1568_v37, %v1565_v30  ;;  %2575 = vst [vmem:[#allocation2 + $0x30] sm:$0xff] %v9135_v53 }
  0xbd   : > { %1187 = vmatprep.mubr.bf16.mxu0 %v7186_v58  ;;  %v7300_v7 = vcombine.low %v1551_v62, %v1561_v3  ;;  %v2630_v8 = vor.u32 %v2629_v1, %v2625_v0  ;;  %v2626_v23 = vsel %vm9853_vm2, %v2621_v13, %v2625_v0  ;;  %v517_v35 = vor.u32 %v516_v26, %v512_v25  ;;  %v428_v1 = vld [vmem:[%s9833_s16 + $0x24] sm:$0xf]  ;;  %v7278_v13 = vld [vmem:[%s9833_s16 + $0x30] sm:$0xf]  ;;  %v7279_v19 = vld [vmem:[%s9833_s16 + $0x34] sm:$0xf] }
  0xbe   : > { %v1572_v36 = vshll.u32 %v7276_v17, 16  ;;  %v1576_v38 = vshrl.u32 %v7276_v17, 16  ;;  %v508_v41 = vrot.slane %v507_v34, 4  ;;  %v2638_v46 = vshrl.u32 %v7416_v40, 16  ;;  %v7421_v53 = vld [vmem:[%s9833_s16 + $0x38] sm:$0x1] }
  0xbf   : > { %8354 = vmatpush3.bf16.msra.mxu0 %v9127_v45  ;;  %v2631_v18 = vrot.slane %v2630_v8, 4  ;;  %2246 = vmatprep.mubr.bf16.mxu1 %v7300_v7  ;;  %v518_v42 = vrot.slane %v517_v35, 4  ;;  %v7417_v45 = vld [vmem:[%s9833_s16 + $0x28] sm:$0xf]  ;;  %v1584_v49 = vrot.slane %v1582_v39, 5  ;;  %v2641_v51 = vshll.u32 %v7416_v40, 16 }
  0xc0   : > { %8355 = vmatprep.subr.bf16.mxu0 %v9132_v32  ;;  %v1578_v48 = vrot.slane %v1576_v38, 4  ;;  %v513_v54 = vsel %vm9853_vm2, %v508_v41, %v512_v25  ;;  %v2640_v56 = vrot.slane %v2638_v46, 4  ;;  %v2647_v57 = vshll.u32 %v7417_v45, 16  ;;  %v430_v7 = vld [vmem:[%s9833_s16 + $0x2c] sm:$0x1] }
  0xc1   : > { %v2636_v28 = vsel %vm9853_vm2, %v2631_v18, %v2635_v9  ;;  %v523_v55 = vsel %vm9853_vm2, %v518_v42, %v522_v29  ;;  %v1570_v59 = vrot.slane %v1569_v47, 4  ;;  %v2643_v61 = vrot.slane %v2641_v51, 5  ;;  %v7419_v42 = vld [vmem:[%s9833_s16 + $0x30] sm:$0xf]  ;;  %v9133_v47 = vld [vmem:[%s9833_s16 + $0x24] sm:$0xff]  }
  0xc2   : > { %1188 = vmatmul.mubr.bf16.gmra.mrb[4].mxu0 %v9125_v43  ;;  %v7443_v33 = vcombine.low %v2626_v23, %v2636_v28  ;;  %v1574_v43 = vrot.slane %v1572_v36, 5  ;;  %v7187_v58 = vcombine.low %v513_v54, %v523_v55  ;;  %v2649_v62 = vrot.slane %v2647_v57, 5 }
  0xc3   : > { %8356 = vmatpush3.bf16.msra.mxu0 %v9132_v32  ;;  %v2657_v0 = vshll.u32 %v7418_v50, 16  ;;  %v2644_v5 = vor.u32 %v2643_v61, %v2640_v56  ;;  %v525_v8 = vshrl.u32 %v428_v1, 16  ;;  %v528_v11 = vshll.u32 %v428_v1, 16 }
  0xc4   : > { %2247 = vmatmul.mubr.bf16.gmra.mrb[4].mxu1 %v9126_v63  ;;  %2893 = vst [vmem:[#allocation2 + $0x8] sm:$0xff] %v7443_v33  ;;  %v1579_v60 = vor.u32 %v1578_v48, %v1574_v43  ;;  %v2651_v63 = vshrl.u32 %v7417_v45, 16  ;;  %1195 = vmatprep.mubr.bf16.mxu0 %v7187_v58  ;;  %v1575_v3 = vsel %vm9853_vm2, %v1570_v59, %v1574_v43  ;;  %v534_v12 = vshll.u32 %v429_v6, 16  ;;  %v9139_v33 = vld [vmem:[%s9833_s16 + $0x3c] sm:$0xff]   ;;  %v7420_v48 = vld [vmem:[%s9833_s16 + $0x34] sm:$0xf] }
  0xc5   : > { %v2659_v10 = vrot.slane %v2657_v0, 5  ;;  %8357 = vmatprep.subr.bf16.mxu0 %v9136_v2  ;;  %v2645_v16 = vrot.slane %v2644_v5, 4  ;;  %v527_v17 = vrot.slane %v525_v8, 4  ;;  %v538_v18 = vshrl.u32 %v429_v6, 16  ;;  %2576 = vst [vmem:[#allocation2 + $0x48] sm:$0xff] %v9139_v33  ;;  %v9143_v0 = vld [vmem:[%s9833_s16 + $0x48] sm:$0xff]  }
  0xc6   : > { %v1580_v4 = vrot.slane %v1579_v60, 4  ;;  %v2653_v9 = vrot.slane %v2651_v63, 4  ;;  %v530_v22 = vrot.slane %v528_v11, 5  ;;  %v536_v23 = vrot.slane %v534_v12, 5  ;;  %v431_v5 = vld [vmem:[%s9833_s16 + $0x30] sm:$0xf] }
  0xc7   : > { %8358 = vmatpush3.bf16.msra.mxu0 %v9136_v2  ;;  %v2650_v25 = vsel %vm9853_vm2, %v2645_v16, %v2649_v62  ;;  %v540_v26 = vrot.slane %v538_v18, 4  ;;  %v544_v27 = vshll.u32 %v430_v7, 16  ;;  %v1587_v28 = vshrl.u32 %v7278_v13, 16  ;;  %v432_v8 = vld [vmem:[%s9833_s16 + $0x34] sm:$0xf]  ;;  %2577 = vst [vmem:[#allocation2 + $0x60] sm:$0xff] %v9143_v0 }
  0xc8   : > { %v1585_v14 = vsel %vm9853_vm2, %v1580_v4, %v1584_v49  ;;  %v2654_v21 = vor.u32 %v2653_v9, %v2649_v62  ;;  %v531_v30 = vor.u32 %v530_v22, %v527_v17  ;;  %v1590_v31 = vshll.u32 %v7278_v13, 16  ;;  %v9142_v49 = vld [vmem:[#allocation8 + $0xa0] sm:$0xff]   ;;  %v433_v9 = vld [vmem:[%s9833_s16 + $0x38] sm:$0x1]  ;;  %v7281_v17 = vld [vmem:[%s9833_s16 + $0x3c] sm:$0xf] }
  0xc9   : > { %v7301_v20 = vcombine.low %v1575_v3, %v1585_v14  ;;  %v1596_v32 = vshll.u32 %v7279_v19, 16  ;;  %v541_v34 = vor.u32 %v540_v26, %v536_v23  ;;  %v546_v35 = vrot.slane %v544_v27, 5  ;;  %8359 = vmatprep.subr.bf16.mxu0 %v9142_v49  ;;  %v9134_v13 = vld [vmem:[%s9833_s16 + $0x30] sm:$0xff]   ;;  %v7282_v22 = vld [vmem:[%s9833_s16 + $0x40] sm:$0xf] }
  0xca   : > { %1196 = vmatmul.mubr.bf16.gmra.mrb[8].mxu0 %v9129_v44  ;;  %v2655_v29 = vrot.slane %v2654_v21, 4  ;;  %v1589_v36 = vrot.slane %v1587_v28, 4  ;;  %v1600_v37 = vshrl.u32 %v7279_v19, 16  ;;  %v532_v39 = vrot.slane %v531_v30, 4  ;;  %v7283_v27 = vld [vmem:[%s9833_s16 + $0x44] sm:$0x1] }
  0xcb   : > { %2254 = vmatprep.mubr.bf16.mxu1 %v7301_v20  ;;  %v1592_v40 = vrot.slane %v1590_v31, 5  ;;  %v1598_v41 = vrot.slane %v1596_v32, 5  ;;  %v542_v44 = vrot.slane %v541_v34, 4  ;;  %v1606_v46 = vshll.u32 %v7280_v24, 16  ;;  %8360 = vmatpush3.bf16.msra.mxu0 %v9142_v49  ;;  %v9146_v28 = vld [vmem:[#allocation8 + $0xa8] sm:$0xff]  }
  0xcc   : > { %2255 = vmatmul.mubr.bf16.gmra.mrb[8].mxu1 %v9130_v15  ;;  %v2660_v38 = vsel %vm9853_vm2, %v2655_v29, %v2659_v10  ;;  %v1602_v45 = vrot.slane %v1600_v37, 4  ;;  %v537_v50 = vsel %vm9853_vm2, %v532_v39, %v536_v23  ;;  %v2662_v54 = vshrl.u32 %v7419_v42, 16  ;;  %8361 = vmatprep.subr.bf16.mxu0 %v9146_v28 }
  0xcd   : > { %v7444_v43 = vcombine.low %v2650_v25, %v2660_v38  ;;  %v1593_v51 = vor.u32 %v1592_v40, %v1589_v36  ;;  %v2665_v55 = vshll.u32 %v7419_v42, 16  ;;  %v547_v56 = vsel %vm9853_vm2, %v542_v44, %v546_v35 }
  0xce   : > { %v1603_v57 = vor.u32 %v1602_v45, %v1598_v41  ;;  %v1608_v58 = vrot.slane %v1606_v46, 5  ;;  %v2671_v59 = vshll.u32 %v7420_v48, 16  ;;  %v7188_v60 = vcombine.low %v537_v50, %v547_v56  ;;  %v7422_v45 = vld [vmem:[%s9833_s16 + $0x3c] sm:$0xf]  ;;  %v7423_v46 = vld [vmem:[%s9833_s16 + $0x40] sm:$0xf] }
  0xcf   : > { %2894 = vst [vmem:[#allocation2 + $0x20] sm:$0xff] %v7444_v43  ;;  %v1594_v61 = vrot.slane %v1593_v51, 4  ;;  %v2664_v62 = vrot.slane %v2662_v54, 4  ;;  %v2667_v63 = vrot.slane %v2665_v55, 5  ;;  %v2675_v3 = vshrl.u32 %v7420_v48, 16  ;;  %8362 = vmatpush3.bf16.msra.mxu0 %v9146_v28 }
  0xd0   : > { %v1604_v1 = vrot.slane %v1603_v57, 4  ;;  %v2673_v2 = vrot.slane %v2671_v59, 5  ;;  %v2681_v4 = vshll.u32 %v7421_v53, 16  ;;  %1203 = vmatprep.mubr.bf16.mxu0 %v7188_v60  ;;  %v549_v10 = vshrl.u32 %v431_v5, 16  ;;  %v7424_v51 = vld [vmem:[%s9833_s16 + $0x44] sm:$0x1] }
  0xd1   : > { %v1599_v6 = vsel %vm9853_vm2, %v1594_v61, %v1598_v41  ;;  %v2668_v7 = vor.u32 %v2667_v63, %v2664_v62  ;;  %v552_v11 = vshll.u32 %v431_v5, 16  ;;  %v2677_v14 = vrot.slane %v2675_v3, 4  ;;  %v9147_v53 = vld [vmem:[%s9833_s16 + $0x54] sm:$0xff]   ;;  %v434_v62 = vld [vmem:[%s9833_s16 + $0x3c] sm:$0xf] }
  0xd2   : > { %v1609_v12 = vsel %vm9853_vm2, %v1604_v1, %v1608_v58  ;;  %1204 = vmatmul.mubr.bf16.gmra.mrb[12].mxu0 %v9133_v47  ;;  %v2683_v15 = vrot.slane %v2681_v4, 5  ;;  %v558_v16 = vshll.u32 %v432_v8, 16  ;;  %v551_v20 = vrot.slane %v549_v10, 4  ;;  %2578 = vst [vmem:[#allocation2 + $0x78] sm:$0xff] %v9147_v53  ;;  %v9148_v63 = vld [vmem:[#allocation8 + $0x140] sm:$0xff]  }
  0xd3   : > { %v7302_v18 = vcombine.low %v1599_v6, %v1609_v12  ;;  %v2669_v19 = vrot.slane %v2668_v7, 4  ;;  %v554_v21 = vrot.slane %v552_v11, 5  ;;  %v2678_v23 = vor.u32 %v2677_v14, %v2673_v2  ;;  %v9137_v1 = vld [vmem:[%s9833_s16 + $0x30] sm:$0xff]   ;;  %v435_v5 = vld [vmem:[%s9833_s16 + $0x40] sm:$0xf]  ;;  %8387 = vmatprep.subr.bf16.mxu1 %v9148_v63 }
  0xd4   : > { %v560_v24 = vrot.slane %v558_v16, 5  ;;  %v562_v25 = vshrl.u32 %v432_v8, 16  ;;  %v568_v26 = vshll.u32 %v433_v9, 16  ;;  %v1611_v31 = vshrl.u32 %v7281_v17, 16  ;;  %v436_v10 = vld [vmem:[%s9833_s16 + $0x44] sm:$0x1]  ;;  %8388 = vmatpush3.bf16.msra.mxu1 %v9148_v63 }
  0xd5   : > { %v2674_v29 = vsel %vm9853_vm2, %v2669_v19, %v2673_v2  ;;  %v555_v30 = vor.u32 %v554_v21, %v551_v20  ;;  %v1614_v32 = vshll.u32 %v7281_v17, 16  ;;  %2262 = vmatprep.mubr.bf16.mxu1 %v7302_v18  ;;  %v2679_v33 = vrot.slane %v2678_v23, 4  ;;  %v9138_v11 = vld [vmem:[%s9833_s16 + $0x3c] sm:$0xff]   ;;  %v7284_v16 = vld [vmem:[%s9833_s16 + $0x48] sm:$0xf] }
  0xd6   : > { %v564_v34 = vrot.slane %v562_v25, 4  ;;  %v570_v35 = vrot.slane %v568_v26, 5  ;;  %v1620_v36 = vshll.u32 %v7282_v22, 16  ;;  %2263 = vmatmul.mubr.bf16.gmra.mrb[12].mxu1 %v9134_v13  ;;  %v1613_v38 = vrot.slane %v1611_v31, 4  ;;  %v7285_v21 = vld [vmem:[%s9833_s16 + $0x4c] sm:$0xf] }
  0xd7   : > { %v556_v37 = vrot.slane %v555_v30, 4  ;;  %v1616_v39 = vrot.slane %v1614_v32, 5  ;;  %v1624_v40 = vshrl.u32 %v7282_v22, 16  ;;  %v2684_v41 = vsel %vm9853_vm2, %v2679_v33, %v2683_v15  ;;  %v9151_v22 = vld [vmem:[%s9833_s16 + $0x60] sm:$0xff]   ;;  %v7286_v31 = vld [vmem:[%s9833_s16 + $0x50] sm:$0x1] }
  0xd8   : > { %v565_v42 = vor.u32 %v564_v34, %v560_v24  ;;  %v1622_v43 = vrot.slane %v1620_v36, 5  ;;  %v1630_v44 = vshll.u32 %v7283_v27, 16  ;;  %v7445_v47 = vcombine.low %v2674_v29, %v2684_v41  ;;  %2579 = vst [vmem:[#allocation2 + $0x90] sm:$0xff] %v9151_v22  ;;  %v9152_v36 = vld [vmem:[#allocation8 + $0xb0] sm:$0xff]  }
  0xd9   : > { %v561_v48 = vsel %vm9853_vm2, %v556_v37, %v560_v24  ;;  %v1617_v49 = vor.u32 %v1616_v39, %v1613_v38  ;;  %v1626_v50 = vrot.slane %v1624_v40, 4  ;;  %v2686_v56 = vshrl.u32 %v7422_v45, 16  ;;  %8363 = vmatprep.subr.bf16.mxu0 %v9152_v36 }
  0xda   : > { %v566_v54 = vrot.slane %v565_v42, 4  ;;  %v1632_v55 = vrot.slane %v1630_v44, 5  ;;  %v2689_v57 = vshll.u32 %v7422_v45, 16  ;;  %2895 = vst [vmem:[#allocation2 + $0x38] sm:$0xff] %v7445_v47  ;;  %v2695_v60 = vshll.u32 %v7423_v46, 16  ;;  %8364 = vmatpush3.bf16.msra.mxu0 %v9152_v36 }
  0xdb   : > { %v1618_v58 = vrot.slane %v1617_v49, 4  ;;  %v1627_v59 = vor.u32 %v1626_v50, %v1622_v43  ;;  %v2699_v61 = vshrl.u32 %v7423_v46, 16  ;;  %v2688_v2 = vrot.slane %v2686_v56, 4  ;;  %v7425_v45 = vld [vmem:[%s9833_s16 + $0x48] sm:$0xf]  ;;  %v9140_v56 = vld [vmem:[%s9833_s16 + $0x3c] sm:$0xff]  }
  0xdc   : > { %v571_v0 = vsel %vm9853_vm2, %v566_v54, %v570_v35  ;;  %v2691_v3 = vrot.slane %v2689_v57, 5  ;;  %v2705_v4 = vshll.u32 %v7424_v51, 16  ;;  %v2697_v9 = vrot.slane %v2695_v60, 5  ;;  %v9153_v46 = vld [vmem:[#allocation8 + $0x148] sm:$0xff]   ;;  %v7427_v57 = vld [vmem:[%s9833_s16 + $0x50] sm:$0x1] }
  0xdd   : > { %v7189_v6 = vcombine.low %v561_v48, %v571_v0  ;;  %v1623_v7 = vsel %vm9853_vm2, %v1618_v58, %v1622_v43  ;;  %v1628_v8 = vrot.slane %v1627_v59, 4  ;;  %v2701_v13 = vrot.slane %v2699_v61, 4  ;;  %v7426_v51 = vld [vmem:[%s9833_s16 + $0x4c] sm:$0xf]  ;;  %8389 = vmatprep.subr.bf16.mxu1 %v9153_v46 }
  0xde   : > { %v2692_v12 = vor.u32 %v2691_v3, %v2688_v2  ;;  %v2707_v14 = vrot.slane %v2705_v4, 5  ;;  %v573_v15 = vshrl.u32 %v434_v62, 16  ;;  %v576_v18 = vshll.u32 %v434_v62, 16  ;;  %8390 = vmatpush3.bf16.msra.mxu1 %v9153_v46  ;;  %v437_v3 = vld [vmem:[%s9833_s16 + $0x48] sm:$0xf] }
  0xdf   : > { %1211 = vmatprep.mubr.bf16.mxu0 %v7189_v6  ;;  %v1633_v17 = vsel %vm9853_vm2, %v1628_v8, %v1632_v55  ;;  %v582_v19 = vshll.u32 %v435_v5, 16  ;;  %v586_v20 = vshrl.u32 %v435_v5, 16  ;;  %v2702_v25 = vor.u32 %v2701_v13, %v2697_v9  ;;  %v438_v4 = vld [vmem:[%s9833_s16 + $0x4c] sm:$0xf]  ;;  %v439_v13 = vld [vmem:[%s9833_s16 + $0x50] sm:$0x1] }
  0xe0   : > { %v7303_v23 = vcombine.low %v1623_v7, %v1633_v17  ;;  %1212 = vmatmul.mubr.bf16.gmra.mrb[16].mxu0 %v9137_v1  ;;  %v2693_v24 = vrot.slane %v2692_v12, 4  ;;  %v575_v26 = vrot.slane %v573_v15, 4  ;;  %v578_v27 = vrot.slane %v576_v18, 5  ;;  %v9156_v15 = vld [vmem:[%s9833_s16 + $0x6c] sm:$0xff]   ;;  %v7429_v46 = vld [vmem:[%s9833_s16 + $0x58] sm:$0xf] }
  0xe1   : > { %v584_v28 = vrot.slane %v582_v19, 5  ;;  %v588_v29 = vrot.slane %v586_v20, 4  ;;  %v592_v30 = vshll.u32 %v436_v10, 16  ;;  %v2703_v33 = vrot.slane %v2702_v25, 4  ;;  %v7287_v20 = vld [vmem:[%s9833_s16 + $0x54] sm:$0xf] }
  0xe2   : > { %v2698_v32 = vsel %vm9853_vm2, %v2693_v24, %v2697_v9  ;;  %v1635_v34 = vshrl.u32 %v7284_v16, 16  ;;  %v1638_v35 = vshll.u32 %v7284_v16, 16  ;;  %2270 = vmatprep.mubr.bf16.mxu1 %v7303_v23  ;;  %v579_v37 = vor.u32 %v578_v27, %v575_v26  ;;  %v7288_v26 = vld [vmem:[%s9833_s16 + $0x58] sm:$0xf]  ;;  %2580 = vst [vmem:[#allocation2 + $0xa8] sm:$0xff] %v9156_v15 }
  0xe3   : > { %v589_v38 = vor.u32 %v588_v29, %v584_v28  ;;  %v594_v39 = vrot.slane %v592_v30, 5  ;;  %v1644_v40 = vshll.u32 %v7285_v21, 16  ;;  %2271 = vmatmul.mubr.bf16.gmra.mrb[16].mxu1 %v9138_v11  ;;  %v2708_v41 = vsel %vm9853_vm2, %v2703_v33, %v2707_v14  ;;  %v9141_v11 = vld [vmem:[%s9833_s16 + $0x48] sm:$0xff]   ;;  %v9145_v15 = vld [vmem:[%s9833_s16 + $0x54] sm:$0xff]  }
  0xe4   : > { %v1637_v42 = vrot.slane %v1635_v34, 4  ;;  %v1640_v43 = vrot.slane %v1638_v35, 5  ;;  %v1648_v44 = vshrl.u32 %v7285_v21, 16  ;;  %v7446_v47 = vcombine.low %v2698_v32, %v2708_v41  ;;  %v9157_v21 = vld [vmem:[#allocation8 + $0x150] sm:$0xff]   ;;  %v9158_v27 = vld [vmem:[#allocation8 + $0xb8] sm:$0xff]  }
  0xe5   : > { %v580_v48 = vrot.slane %v579_v37, 4  ;;  %v590_v49 = vrot.slane %v589_v38, 4  ;;  %v1646_v50 = vrot.slane %v1644_v40, 5  ;;  %v1654_v55 = vshll.u32 %v7286_v31, 16  ;;  %v7289_v32 = vld [vmem:[%s9833_s16 + $0x5c] sm:$0x1]  ;;  %8391 = vmatprep.subr.bf16.mxu1 %v9157_v21  ;;  %8365 = vmatprep.subr.bf16.mxu0 %v9158_v27 }
  0xe6   : > { %v1641_v53 = vor.u32 %v1640_v43, %v1637_v42  ;;  %v1650_v54 = vrot.slane %v1648_v44, 4  ;;  %v2710_v58 = vshrl.u32 %v7425_v45, 16  ;;  %2896 = vst [vmem:[#allocation2 + $0x50] sm:$0xff] %v7446_v47  ;;  %v2713_v61 = vshll.u32 %v7425_v45, 16  ;;  %8392 = vmatpush3.bf16.msra.mxu1 %v9157_v21  ;;  %v7428_v41 = vld [vmem:[%s9833_s16 + $0x54] sm:$0xf]  ;;  %8366 = vmatpush3.bf16.msra.mxu0 %v9158_v27 }
  0xe7   : > { %v585_v59 = vsel %vm9853_vm2, %v580_v48, %v584_v28  ;;  %v595_v60 = vsel %vm9853_vm2, %v590_v49, %v594_v39  ;;  %v2719_v62 = vshll.u32 %v7426_v51, 16  ;;  %v1656_v2 = vrot.slane %v1654_v55, 5  ;;  %v9159_v47 = vld [vmem:[#allocation8 + $0x158] sm:$0xff]  }
  0xe8   : > { %v7190_v63 = vcombine.low %v585_v59, %v595_v60  ;;  %v1642_v0 = vrot.slane %v1641_v53, 4  ;;  %v1651_v1 = vor.u32 %v1650_v54, %v1646_v50  ;;  %v2712_v5 = vrot.slane %v2710_v58, 4  ;;  %v7430_v53 = vld [vmem:[%s9833_s16 + $0x5c] sm:$0x1]  ;;  %v9144_v58 = vld [vmem:[%s9833_s16 + $0x48] sm:$0xff]   ;;  %8393 = vmatprep.subr.bf16.mxu1 %v9159_v47 }
  0xe9   : > { %v2715_v6 = vrot.slane %v2713_v61, 5  ;;  %v2721_v7 = vrot.slane %v2719_v62, 5  ;;  %v2723_v8 = vshrl.u32 %v7426_v51, 16  ;;  %v2729_v12 = vshll.u32 %v7427_v57, 16 }
  0xea   : > { %1219 = vmatprep.mubr.bf16.mxu0 %v7190_v63  ;;  %v1647_v9 = vsel %vm9853_vm2, %v1642_v0, %v1646_v50  ;;  %v1652_v10 = vrot.slane %v1651_v1, 4  ;;  %v597_v14 = vshrl.u32 %v437_v3, 16  ;;  %v600_v18 = vshll.u32 %v437_v3, 16  ;;  %8394 = vmatpush3.bf16.msra.mxu1 %v9159_v47  ;;  %v9162_v3 = vld [vmem:[%s9833_s16 + $0x78] sm:$0xff]  }
  0xeb   : > { %1220 = vmatmul.mubr.bf16.gmra.mrb[20].mxu0 %v9140_v56  ;;  %v2716_v16 = vor.u32 %v2715_v6, %v2712_v5  ;;  %v2725_v17 = vrot.slane %v2723_v8, 4  ;;  %v606_v19 = vshll.u32 %v438_v4, 16  ;;  %v2731_v23 = vrot.slane %v2729_v12, 5  ;;  %v440_v12 = vld [vmem:[%s9833_s16 + $0x54] sm:$0xf]  ;;  %2581 = vst [vmem:[#allocation2 + $0xc0] sm:$0xff] %v9162_v3 }
  0xec   : > { %v1657_v22 = vsel %vm9853_vm2, %v1652_v10, %v1656_v2  ;;  %v599_v24 = vrot.slane %v597_v14, 4  ;;  %v610_v25 = vshrl.u32 %v438_v4, 16  ;;  %v602_v31 = vrot.slane %v600_v18, 5 }
  0xed   : > { %v7304_v28 = vcombine.low %v1647_v9, %v1657_v22  ;;  %v2717_v29 = vrot.slane %v2716_v16, 4  ;;  %v2726_v30 = vor.u32 %v2725_v17, %v2721_v7  ;;  %v608_v33 = vrot.slane %v606_v19, 5  ;;  %v441_v16 = vld [vmem:[%s9833_s16 + $0x58] sm:$0xf]  ;;  %v442_v17 = vld [vmem:[%s9833_s16 + $0x5c] sm:$0x1] }
  0xee   : > { %v612_v34 = vrot.slane %v610_v25, 4  ;;  %v616_v35 = vshll.u32 %v439_v13, 16  ;;  %v1659_v36 = vshrl.u32 %v7287_v20, 16  ;;  %v603_v39 = vor.u32 %v602_v31, %v599_v24  ;;  %v9163_v24 = vld [vmem:[#allocation8 + $0x160] sm:$0xff]  }
  0xef   : > { %v2722_v37 = vsel %vm9853_vm2, %v2717_v29, %v2721_v7  ;;  %v2727_v38 = vrot.slane %v2726_v30, 4  ;;  %v1662_v40 = vshll.u32 %v7287_v20, 16  ;;  %2278 = vmatprep.mubr.bf16.mxu1 %v7304_v28  ;;  %v1668_v45 = vshll.u32 %v7288_v26, 16  ;;  %v7291_v29 = vld [vmem:[%s9833_s16 + $0x64] sm:$0xf]  ;;  %v9164_v30 = vld [vmem:[#allocation8 + $0x168] sm:$0xff]   ;;  %8395 = vmatprep.subr.bf16.mxu1 %v9163_v24 }
  0xf0   : > { %v613_v42 = vor.u32 %v612_v34, %v608_v33  ;;  %v618_v43 = vrot.slane %v616_v35, 5  ;;  %v1661_v44 = vrot.slane %v1659_v36, 4  ;;  %2279 = vmatmul.mubr.bf16.gmra.mrb[20].mxu1 %v9141_v11  ;;  %v604_v49 = vrot.slane %v603_v39, 4  ;;  %v7292_v35 = vld [vmem:[%s9833_s16 + $0x68] sm:$0x1] }
  0xf1   : > { %v2732_v48 = vsel %vm9853_vm2, %v2727_v38, %v2731_v23  ;;  %v1664_v50 = vrot.slane %v1662_v40, 5  ;;  %v1672_v51 = vshrl.u32 %v7288_v26, 16  ;;  %v1670_v56 = vrot.slane %v1668_v45, 5  ;;  %v7290_v23 = vld [vmem:[%s9833_s16 + $0x60] sm:$0xf]  ;;  %8396 = vmatpush3.bf16.msra.mxu1 %v9163_v24 }
  0xf2   : > { %v7447_v54 = vcombine.low %v2722_v37, %v2732_v48  ;;  %v614_v55 = vrot.slane %v613_v42, 4  ;;  %v1678_v57 = vshll.u32 %v7289_v32, 16  ;;  %v609_v59 = vsel %vm9853_vm2, %v604_v49, %v608_v33  ;;  %8397 = vmatprep.subr.bf16.mxu1 %v9164_v30  ;;  %v7431_v48 = vld [vmem:[%s9833_s16 + $0x60] sm:$0xf] }
  0xf3   : > { %v1665_v60 = vor.u32 %v1664_v50, %v1661_v44  ;;  %v1674_v61 = vrot.slane %v1672_v51, 4  ;;  %v2734_v62 = vshrl.u32 %v7428_v41, 16  ;;  %v2737_v1 = vshll.u32 %v7428_v41, 16  ;;  %v9165_v49 = vld [vmem:[#allocation8 + $0x1c0] sm:$0xff]  }
  0xf4   : > { %2897 = vst [vmem:[#allocation2 + $0x68] sm:$0xff] %v7447_v54  ;;  %v619_v63 = vsel %vm9853_vm2, %v614_v55, %v618_v43  ;;  %v1680_v0 = vrot.slane %v1678_v57, 5  ;;  %v2743_v2 = vshll.u32 %v7429_v46, 16  ;;  %v2747_v10 = vshrl.u32 %v7429_v46, 16  ;;  %v7432_v55 = vld [vmem:[%s9833_s16 + $0x64] sm:$0xf]  ;;  %8017 = vmatprep.subr.bf16.mxu0 %v9165_v49 }
  0xf5   : > { %v7191_v4 = vcombine.low %v609_v59, %v619_v63  ;;  %v1666_v5 = vrot.slane %v1665_v60, 4  ;;  %v1675_v6 = vor.u32 %v1674_v61, %v1670_v56  ;;  %v2736_v7 = vrot.slane %v2734_v62, 4  ;;  %v9149_v60 = vld [vmem:[%s9833_s16 + $0x54] sm:$0xff]   ;;  %v7433_v61 = vld [vmem:[%s9833_s16 + $0x68] sm:$0x1]  ;;  %8398 = vmatpush3.bf16.msra.mxu1 %v9164_v30 }
  0xf6   : > { %v2739_v8 = vrot.slane %v2737_v1, 5  ;;  %v2745_v9 = vrot.slane %v2743_v2, 5  ;;  %v2753_v11 = vshll.u32 %v7430_v53, 16  ;;  %v621_v18 = vshrl.u32 %v440_v12, 16  ;;  %v9167_v62 = vld [vmem:[%s9833_s16 + $0x84] sm:$0xff]  }
  0xf7   : > { %1227 = vmatprep.mubr.bf16.mxu0 %v7191_v4  ;;  %v1671_v13 = vsel %vm9853_vm2, %v1666_v5, %v1670_v56  ;;  %v1676_v14 = vrot.slane %v1675_v6, 4  ;;  %v2749_v20 = vrot.slane %v2747_v10, 4  ;;  %v624_v22 = vshll.u32 %v440_v12, 16  ;;  %2582 = vst [vmem:[#allocation2 + $0xd8] sm:$0xff] %v9167_v62 }
  0xf8   : > { %1228 = vmatmul.mubr.bf16.gmra.mrb[24].mxu0 %v9144_v58  ;;  %v2740_v19 = vor.u32 %v2739_v8, %v2736_v7  ;;  %v2755_v21 = vrot.slane %v2753_v11, 5  ;;  %v623_v26 = vrot.slane %v621_v18, 4  ;;  %v630_v27 = vshll.u32 %v441_v16, 16  ;;  %v9168_v7 = vld [vmem:[#allocation8 + $0x170] sm:$0xff]  }
  0xf9   : > { %v1681_v25 = vsel %vm9853_vm2, %v1676_v14, %v1680_v0  ;;  %v634_v28 = vshrl.u32 %v441_v16, 16  ;;  %v2750_v33 = vor.u32 %v2749_v20, %v2745_v9  ;;  %v626_v34 = vrot.slane %v624_v22, 5  ;;  %8399 = vmatprep.subr.bf16.mxu1 %v9168_v7  ;;  %v443_v18 = vld [vmem:[%s9833_s16 + $0x60] sm:$0xf] }
  0xfa   : > { %v7305_v31 = vcombine.low %v1671_v13, %v1681_v25  ;;  %v2741_v32 = vrot.slane %v2740_v19, 4  ;;  %v632_v36 = vrot.slane %v630_v27, 5  ;;  %v640_v38 = vshll.u32 %v442_v17, 16  ;;  %v444_v19 = vld [vmem:[%s9833_s16 + $0x64] sm:$0xf]  ;;  %8400 = vmatpush3.bf16.msra.mxu1 %v9168_v7  ;;  %v9170_v25 = vld [vmem:[#allocation8 + $0x178] sm:$0xff]  }
  0xfb   : > { %v636_v37 = vrot.slane %v634_v28, 4  ;;  %v1683_v39 = vshrl.u32 %v7290_v23, 16  ;;  %v2751_v41 = vrot.slane %v2750_v33, 4  ;;  %v627_v42 = vor.u32 %v626_v34, %v623_v26  ;;  %v9150_v27 = vld [vmem:[%s9833_s16 + $0x60] sm:$0xff]   ;;  %8401 = vmatprep.subr.bf16.mxu1 %v9170_v25 }
  0xfc   : > { %v2746_v40 = vsel %vm9853_vm2, %v2741_v32, %v2745_v9  ;;  %v1686_v43 = vshll.u32 %v7290_v23, 16  ;;  %2286 = vmatprep.mubr.bf16.mxu1 %v7305_v31  ;;  %v642_v45 = vrot.slane %v640_v38, 5  ;;  %v1692_v47 = vshll.u32 %v7291_v29, 16  ;;  %v445_v23 = vld [vmem:[%s9833_s16 + $0x68] sm:$0x1] }
  0xfd   : > { %v637_v44 = vor.u32 %v636_v37, %v632_v36  ;;  %v1685_v46 = vrot.slane %v1683_v39, 4  ;;  %2287 = vmatmul.mubr.bf16.gmra.mrb[24].mxu1 %v9145_v15  ;;  %v2756_v50 = vsel %vm9853_vm2, %v2751_v41, %v2755_v21  ;;  %v628_v51 = vrot.slane %v627_v42, 4  ;;  %v7293_v31 = vld [vmem:[%s9833_s16 + $0x6c] sm:$0xf]  ;;  %v7295_v41 = vld [vmem:[%s9833_s16 + $0x74] sm:$0x1] }
  0xfe   : > { %v1688_v53 = vrot.slane %v1686_v43, 5  ;;  %v1696_v54 = vshrl.u32 %v7291_v29, 16  ;;  %v7448_v56 = vcombine.low %v2746_v40, %v2756_v50  ;;  %v1694_v58 = vrot.slane %v1692_v47, 5  ;;  %8402 = vmatpush3.bf16.msra.mxu1 %v9170_v25  ;;  %v447_v25 = vld [vmem:[%s9833_s16 + $0x70] sm:$0xf] }
  0xff   : > { %v638_v57 = vrot.slane %v637_v44, 4  ;;  %v1702_v59 = vshll.u32 %v7292_v35, 16  ;;  %v633_v63 = vsel %vm9853_vm2, %v628_v51, %v632_v36  ;;  %v2758_v2 = vshrl.u32 %v7431_v48, 16  ;;  %v7294_v36 = vld [vmem:[%s9833_s16 + $0x70] sm:$0xf] }
 0x100   : > { %v1689_v0 = vor.u32 %v1688_v53, %v1685_v46  ;;  %v1698_v1 = vrot.slane %v1696_v54, 4  ;;  %2898 = vst [vmem:[#allocation2 + $0x80] sm:$0xff] %v7448_v56  ;;  %v2761_v5 = vshll.u32 %v7431_v48, 16  ;;  %v2767_v6 = vshll.u32 %v7432_v55, 16 }
 0x101   : > { %v643_v3 = vsel %vm9853_vm2, %v638_v57, %v642_v45  ;;  %v1704_v4 = vrot.slane %v1702_v59, 5  ;;  %v2760_v11 = vrot.slane %v2758_v2, 4  ;;  %v2771_v14 = vshrl.u32 %v7432_v55, 16  ;;  %v7434_v55 = vld [vmem:[%s9833_s16 + $0x6c] sm:$0xf] }
 0x102   : > { %v7192_v8 = vcombine.low %v633_v63, %v643_v3  ;;  %v1690_v9 = vrot.slane %v1689_v0, 4  ;;  %v1699_v10 = vor.u32 %v1698_v1, %v1694_v58  ;;  %v2763_v12 = vrot.slane %v2761_v5, 5  ;;  %v9154_v0 = vld [vmem:[%s9833_s16 + $0x60] sm:$0xff]   ;;  %v7436_v1 = vld [vmem:[%s9833_s16 + $0x74] sm:$0x1] }
 0x103   : > { %v2769_v13 = vrot.slane %v2767_v6, 5  ;;  %v2777_v15 = vshll.u32 %v7433_v61, 16  ;;  %v2773_v21 = vrot.slane %v2771_v14, 4  ;;  %v645_v24 = vshrl.u32 %v443_v18, 16 }
 0x104   : > { %1235 = vmatprep.mubr.bf16.mxu0 %v7192_v8  ;;  %v1695_v16 = vsel %vm9853_vm2, %v1690_v9, %v1694_v58  ;;  %v1700_v17 = vrot.slane %v1699_v10, 4  ;;  %v2764_v20 = vor.u32 %v2763_v12, %v2760_v11  ;;  %v648_v28 = vshll.u32 %v443_v18, 16 }
 0x105   : > { %1236 = vmatmul.mubr.bf16.gmra.mrb[28].mxu0 %v9149_v60  ;;  %v2779_v22 = vrot.slane %v2777_v15, 5  ;;  %v654_v29 = vshll.u32 %v444_v19, 16  ;;  %v658_v30 = vshrl.u32 %v444_v19, 16  ;;  %v2774_v34 = vor.u32 %v2773_v21, %v2769_v13  ;;  %v7435_v60 = vld [vmem:[%s9833_s16 + $0x70] sm:$0xf] }
 0x106   : > { %v1705_v26 = vsel %vm9853_vm2, %v1700_v17, %v1704_v4  ;;  %v2765_v33 = vrot.slane %v2764_v20, 4  ;;  %v647_v35 = vrot.slane %v645_v24, 4  ;;  %v650_v37 = vrot.slane %v648_v28, 5  ;;  %v9155_v17 = vld [vmem:[%s9833_s16 + $0x6c] sm:$0xff]  }
 0x107   : > { %v7306_v32 = vcombine.low %v1695_v16, %v1705_v26  ;;  %v656_v38 = vrot.slane %v654_v29, 5  ;;  %v660_v39 = vrot.slane %v658_v30, 4  ;;  %v664_v40 = vshll.u32 %v445_v23, 16  ;;  %v446_v21 = vld [vmem:[%s9833_s16 + $0x6c] sm:$0xf] }
 0x108   : > { %v2770_v42 = vsel %vm9853_vm2, %v2765_v33, %v2769_v13  ;;  %v2775_v43 = vrot.slane %v2774_v34, 4  ;;  %v1707_v44 = vshrl.u32 %v7293_v31, 16  ;;  %v1710_v45 = vshll.u32 %v7293_v31, 16  ;;  %v448_v26 = vld [vmem:[%s9833_s16 + $0x74] sm:$0x1] }
 0x109   : > { %2294 = vmatprep.mubr.bf16.mxu1 %v7306_v32  ;;  %v651_v46 = vor.u32 %v650_v37, %v647_v35  ;;  %v661_v47 = vor.u32 %v660_v39, %v656_v38  ;;  %v666_v48 = vrot.slane %v664_v40, 5  ;;  %v1716_v49 = vshll.u32 %v7294_v36, 16  ;;  %v7296_v32 = vld [vmem:[%s9833_s16 + $0x78] sm:$0xf]  ;;  %v7297_v33 = vld [vmem:[%s9833_s16 + $0x7c] sm:$0xf] }
 0x10a   : > { %2295 = vmatmul.mubr.bf16.gmra.mrb[28].mxu1 %v9150_v27  ;;  %v2780_v50 = vsel %vm9853_vm2, %v2775_v43, %v2779_v22  ;;  %v1709_v51 = vrot.slane %v1707_v44, 4  ;;  %v1712_v53 = vrot.slane %v1710_v45, 5  ;;  %v1720_v54 = vshrl.u32 %v7294_v36, 16  ;;  %v10056_v22 = vld [vmem:[#allocation8 + $0x200] sm:$0xff]  }
 0x10b   : > { %v7449_v56 = vcombine.low %v2770_v42, %v2780_v50  ;;  %v652_v57 = vrot.slane %v651_v46, 4  ;;  %v662_v58 = vrot.slane %v661_v47, 4  ;;  %v1718_v59 = vrot.slane %v1716_v49, 5  ;;  %8423 = vmatprep.subr.bf16.mxu1 %v10056_v22 }
 0x10c   : > { %v1713_v61 = vor.u32 %v1712_v53, %v1709_v51  ;;  %v1722_v62 = vrot.slane %v1720_v54, 4  ;;  %v1726_v63 = vshll.u32 %v7295_v41, 16  ;;  %v2782_v2 = vshrl.u32 %v7434_v55, 16 }
 0x10d   : > { %2899 = vst [vmem:[#allocation2 + $0x98] sm:$0xff] %v7449_v56  ;;  %v657_v3 = vsel %vm9853_vm2, %v652_v57, %v656_v38  ;;  %v667_v4 = vsel %vm9853_vm2, %v662_v58, %v666_v48  ;;  %v2785_v5 = vshll.u32 %v7434_v55, 16  ;;  %v2791_v6 = vshll.u32 %v7435_v60, 16  ;;  %v7298_v38 = vld [vmem:[%s9833_s16 + $0x80] sm:$0x1] }
 0x10e   : > { %v7193_v7 = vcombine.low %v657_v3, %v667_v4  ;;  %v1714_v8 = vrot.slane %v1713_v61, 4  ;;  %v1723_v9 = vor.u32 %v1722_v62, %v1718_v59  ;;  %v1728_v10 = vrot.slane %v1726_v63, 5  ;;  %v7437_v56 = vld [vmem:[%s9833_s16 + $0x78] sm:$0xf]  ;;  %v7438_v57 = vld [vmem:[%s9833_s16 + $0x7c] sm:$0xf] }
 0x10f   : > { %v2784_v11 = vrot.slane %v2782_v2, 4  ;;  %v2787_v12 = vrot.slane %v2785_v5, 5  ;;  %v2793_v13 = vrot.slane %v2791_v6, 5  ;;  %v2795_v14 = vshrl.u32 %v7435_v60, 16  ;;  %v7439_v61 = vld [vmem:[%s9833_s16 + $0x80] sm:$0x1] }
 0x110   : > { %1243 = vmatprep.mubr.bf16.mxu0 %v7193_v7  ;;  %v1719_v15 = vsel %vm9853_vm2, %v1714_v8, %v1718_v59  ;;  %v1724_v16 = vrot.slane %v1723_v9, 4  ;;  %v2801_v18 = vshll.u32 %v7436_v1, 16  ;;  %v669_v27 = vshrl.u32 %v446_v21, 16  ;;  %v9160_v5 = vld [vmem:[%s9833_s16 + $0x6c] sm:$0xff]  }
 0x111   : > { %1244 = vmatmul.mubr.bf16.gmra.mrb[32].mxu0 %v9154_v0  ;;  %v2788_v19 = vor.u32 %v2787_v12, %v2784_v11  ;;  %v2797_v20 = vrot.slane %v2795_v14, 4  ;;  %v672_v31 = vshll.u32 %v446_v21, 16  ;;  %v678_v35 = vshll.u32 %v447_v25, 16 }
 0x112   : > { %v1729_v23 = vsel %vm9853_vm2, %v1724_v16, %v1728_v10  ;;  %v2803_v24 = vrot.slane %v2801_v18, 5  ;;  %v671_v34 = vrot.slane %v669_v27, 4  ;;  %v682_v36 = vshrl.u32 %v447_v25, 16  ;;  %v9161_v27 = vld [vmem:[%s9833_s16 + $0x78] sm:$0xff]  }
 0x113   : > { %v7307_v28 = vcombine.low %v1719_v15, %v1729_v23  ;;  %v2789_v29 = vrot.slane %v2788_v19, 4  ;;  %v2798_v30 = vor.u32 %v2797_v20, %v2793_v13  ;;  %v688_v37 = vshll.u32 %v448_v26, 16  ;;  %v742_v19 = vld [vmem:[%s9833_s16] sm:$0xe]  ;;  %v743_v23 = vld [vmem:[%s9833_s16 + $0x4] sm:$0xf] }
 0x114   : > { %v674_v41 = vrot.slane %v672_v31, 5  ;;  %v1731_v42 = vshrl.u32 %v7296_v32, 16  ;;  %v680_v43 = vrot.slane %v678_v35, 5  ;;  %v684_v44 = vrot.slane %v682_v36, 4  ;;  %v7309_v31 = vld [vmem:[%s9833_s16 + $0xc] sm:$0xe] }
 0x115   : > { %v2794_v39 = vsel %vm9853_vm2, %v2789_v29, %v2793_v13  ;;  %v2799_v40 = vrot.slane %v2798_v30, 4  ;;  %2302 = vmatprep.mubr.bf16.mxu1 %v7307_v28  ;;  %v690_v45 = vrot.slane %v688_v37, 5  ;;  %v1734_v46 = vshll.u32 %v7296_v32, 16  ;;  %v7310_v35 = vld [vmem:[%s9833_s16 + $0x10] sm:$0xf] }
 0x116   : > { %2303 = vmatmul.mubr.bf16.gmra.mrb[32].mxu1 %v9155_v17  ;;  %v675_v48 = vor.u32 %v674_v41, %v671_v34  ;;  %v1733_v49 = vrot.slane %v1731_v42, 4  ;;  %v1740_v50 = vshll.u32 %v7297_v33, 16  ;;  %v685_v53 = vor.u32 %v684_v44, %v680_v43  ;;  %v7311_v36 = vld [vmem:[%s9833_s16 + $0x14] sm:$0x1]  ;;  %v745_v42 = vld [vmem:[%s9833_s16 + $0xc] sm:$0xe] }
 0x117   : > { %v2804_v47 = vsel %vm9853_vm2, %v2799_v40, %v2803_v24  ;;  %v1736_v54 = vrot.slane %v1734_v46, 5  ;;  %v1744_v55 = vshrl.u32 %v7297_v33, 16  ;;  %v1750_v60 = vshll.u32 %v7298_v38, 16  ;;  %v744_v24 = vld [vmem:[%s9833_s16 + $0x8] sm:$0x1] }
 0x118   : > { %v7450_v51 = vcombine.low %v2794_v39, %v2804_v47  ;;  %v676_v58 = vrot.slane %v675_v48, 4  ;;  %v1742_v59 = vrot.slane %v1740_v50, 5  ;;  %v2806_v62 = vshrl.u32 %v7437_v56, 16  ;;  %v747_v46 = vld [vmem:[%s9833_s16 + $0x14] sm:$0x1] }
 0x119   : > { %v686_v63 = vrot.slane %v685_v53, 4  ;;  %v1737_v0 = vor.u32 %v1736_v54, %v1733_v49  ;;  %v1746_v1 = vrot.slane %v1744_v55, 4  ;;  %v2809_v2 = vshll.u32 %v7437_v56, 16  ;;  %v7312_v54 = vld [vmem:[%s9833_s16 + $0x18] sm:$0xe] }
 0x11a   : > { %2900 = vst [vmem:[#allocation2 + $0xb0] sm:$0xff] %v7450_v51  ;;  %v681_v3 = vsel %vm9853_vm2, %v676_v58, %v680_v43  ;;  %v1752_v4 = vrot.slane %v1750_v60, 5  ;;  %v2808_v6 = vrot.slane %v2806_v62, 4  ;;  %v2815_v7 = vshll.u32 %v7438_v57, 16  ;;  %v746_v43 = vld [vmem:[%s9833_s16 + $0x10] sm:$0xf] }
 0x11b   : > { %v691_v8 = vsel %vm9853_vm2, %v686_v63, %v690_v45  ;;  %v1738_v9 = vrot.slane %v1737_v0, 4  ;;  %v1747_v10 = vor.u32 %v1746_v1, %v1742_v59  ;;  %v2811_v11 = vrot.slane %v2809_v2, 5  ;;  %v7313_v55 = vld [vmem:[%s9833_s16 + $0x1c] sm:$0xf]  ;;  %v7314_v60 = vld [vmem:[%s9833_s16 + $0x20] sm:$0x1] }
 0x11c   : > { %v7194_v12 = vcombine.low %v681_v3, %v691_v8  ;;  %v2817_v13 = vrot.slane %v2815_v7, 5  ;;  %v2819_v14 = vshrl.u32 %v7438_v57, 16  ;;  %v2825_v15 = vshll.u32 %v7439_v61, 16  ;;  %v9166_v61 = vld [vmem:[#allocation8 + $0x180] sm:$0xff]   ;;  %v9169_v3 = vld [vmem:[#allocation8 + $0x1c8] sm:$0xff]  }
 0x11d   : > { %v1743_v16 = vsel %vm9853_vm2, %v1738_v9, %v1742_v59  ;;  %v1748_v17 = vrot.slane %v1747_v10, 4  ;;  %v2812_v18 = vor.u32 %v2811_v11, %v2808_v6  ;;  %v7195_v29 = vrot.slane %v742_v19, 9  ;;  %v7440_v2 = vld [vmem:[%s9833_s16 + $0x84] sm:$0xf]  ;;  %v7441_v7 = vld [vmem:[%s9833_s16 + $0x88] sm:$0xf] }
 0x11e   : > { %1251 = vmatprep.mubr.bf16.mxu0 %v7194_v12  ;;  %v2821_v20 = vrot.slane %v2819_v14, 4  ;;  %v2827_v21 = vrot.slane %v2825_v15, 5  ;;  %v807_v30 = vrot.slane %v743_v23, 5  ;;  %v810_v34 = vrot.slane %v744_v24, 5  ;;  %v7442_v8 = vld [vmem:[%s9833_s16 + $0x8c] sm:$0x1] }
 0x11f   : > { %v1753_v26 = vsel %vm9853_vm2, %v1748_v17, %v1752_v4  ;;  %1252 = vmatmul.mubr.bf16.gmra.mrb[36].mxu0 %v9160_v5  ;;  %v2813_v28 = vrot.slane %v2812_v18, 4  ;;  %v7339_v37 = vrot.slane %v7309_v31, 9  ;;  %v1866_v41 = vrot.slane %v7310_v35, 5  ;;  %v9171_v18 = vld [vmem:[#allocation8 + $0x188] sm:$0xff]  }
 0x120   : > { %v7308_v32 = vcombine.low %v1743_v16, %v1753_v26  ;;  %v2822_v33 = vor.u32 %v2821_v20, %v2817_v13  ;;  %v808_v39 = vsel %vm10085_vm5, %v7195_v29, %v807_v30  ;;  %v809_v40 = vrot.slane %v807_v30, 4 }
 0x121   : > { %v2818_v38 = vsel %vm9853_vm2, %v2813_v28, %v2817_v13  ;;  %v1869_v45 = vrot.slane %v7311_v36, 5  ;;  %v7196_v47 = vrot.slane %v745_v42, 9  ;;  %v814_v48 = vrot.slane %v746_v43, 5  ;;  %v9179_v28 = vld [vmem:[#allocation8 + $0x208] sm:$0xff]   ;;  %v750_v36 = vld [vmem:[%s9833_s16 + $0x20] sm:$0x1] }
 0x122   : > { %v2823_v44 = vrot.slane %v2822_v33, 4  ;;  %2310 = vmatprep.mubr.bf16.mxu1 %v7308_v32  ;;  %v811_v49 = vsel %vm10085_vm5, %v809_v40, %v810_v34  ;;  %v1867_v50 = vsel %vm10085_vm5, %v7339_v37, %v1866_v41  ;;  %v1868_v51 = vrot.slane %v1866_v41, 4  ;;  %v748_v32 = vld [vmem:[%s9833_s16 + $0x18] sm:$0xe]  ;;  %v749_v33 = vld [vmem:[%s9833_s16 + $0x1c] sm:$0xf] }
 0x123   : > { %v817_v53 = vrot.slane %v747_v46, 5  ;;  %2311 = vmatmul.mubr.bf16.gmra.mrb[36].mxu1 %v9161_v27  ;;  %v7205_v57 = vcombine.low %v808_v39, %v811_v49  ;;  %v815_v58 = vsel %vm10085_vm5, %v7196_v47, %v814_v48  ;;  %v816_v59 = vrot.slane %v814_v48, 4  ;;  %v9173_v34 = vld [vmem:[#allocation8 + $0x190] sm:$0xff]   ;;  %v7316_v43 = vld [vmem:[%s9833_s16 + $0x28] sm:$0xf] }
 0x124   : > { %v2828_v56 = vsel %vm9853_vm2, %v2823_v44, %v2827_v21  ;;  %v1870_v63 = vsel %vm10085_vm5, %v1868_v51, %v1869_v45  ;;  %v7340_v0 = vrot.slane %v7312_v54, 9  ;;  %v1873_v1 = vrot.slane %v7313_v55, 5  ;;  %v9172_v21 = vld [vmem:[#allocation8 + $0x1d0] sm:$0xff]   ;;  %v9174_v44 = vld [vmem:[#allocation8 + $0x1d8] sm:$0xff]  }
 0x125   : > { %v7451_v62 = vcombine.low %v2818_v38, %v2828_v56  ;;  %8367 = vmatprep.mubr.bf16.mxu0 %v7205_v57  ;;  %v7349_v4 = vcombine.low %v1867_v50, %v1870_v63  ;;  %v818_v5 = vsel %vm10085_vm5, %v816_v59, %v817_v53  ;;  %v1876_v6 = vrot.slane %v7314_v60, 5  ;;  %v9182_v39 = vld [vmem:[#allocation8 + $0x210] sm:$0xff]   ;;  %v7317_v47 = vld [vmem:[%s9833_s16 + $0x2c] sm:$0x1]  ;;  %v752_v55 = vld [vmem:[%s9833_s16 + $0x28] sm:$0xf] }
 0x126   : > { %v2830_v9 = vshrl.u32 %v7440_v2, 16  ;;  %v7206_v10 = vcombine.low %v815_v58, %v818_v5  ;;  %v1874_v11 = vsel %vm10085_vm5, %v7340_v0, %v1873_v1  ;;  %v1875_v12 = vrot.slane %v1873_v1, 4  ;;  %v7315_v42 = vld [vmem:[%s9833_s16 + $0x24] sm:$0xe]  ;;  %v9175_v50 = vld [vmem:[#allocation8 + $0x198] sm:$0xff]  }
 0x127   : > { %2901 = vst [vmem:[#allocation2 + $0xc8] sm:$0xff] %v7451_v62  ;;  %v2833_v13 = vshll.u32 %v7440_v2, 16  ;;  %v2839_v15 = vshll.u32 %v7441_v7, 16  ;;  %v2843_v16 = vshrl.u32 %v7441_v7, 16  ;;  %v2849_v17 = vshll.u32 %v7442_v8, 16  ;;  %8403 = vmatprep.mubr.bf16.mxu1 %v7349_v4  ;;  %v9177_v57 = vld [vmem:[#allocation8 + $0x1e0] sm:$0xff]  }
 0x128   : > { %v2832_v14 = vrot.slane %v2830_v9, 4  ;;  %8368 = vmatmul.mubr.bf16.vlgmr.msra.gmra.mrb[40].mxu0 %v7206_v10  ;;  %v1877_v19 = vsel %vm10085_vm5, %v1875_v12, %v1876_v6  ;;  %v7197_v37 = vrot.slane %v748_v32, 9  ;;  %v821_v38 = vrot.slane %v749_v33, 5  ;;  %v751_v49 = vld [vmem:[%s9833_s16 + $0x24] sm:$0xe]  ;;  %v9184_v63 = vld [vmem:[#allocation8 + $0x218] sm:$0xff]  }
 0x129   : > { %v2835_v20 = vrot.slane %v2833_v13, 5  ;;  %v7350_v23 = vcombine.low %v1874_v11, %v1877_v19  ;;  %v2841_v24 = vrot.slane %v2839_v15, 5  ;;  %v2845_v26 = vrot.slane %v2843_v16, 4  ;;  %8018 = vmatpush3.bf16.msra.mxu0 %v9166_v61  ;;  %v753_v56 = vld [vmem:[%s9833_s16 + $0x2c] sm:$0x1]  ;;  %v9178_v15 = vld [vmem:[#allocation8 + $0x1a0] sm:$0xff]  }
 0x12a   : > { %v2851_v27 = vrot.slane %v2849_v17, 5  ;;  %8019 = vmatprep.subr.bf16.mxu0 %v9169_v3  ;;  %v824_v41 = vrot.slane %v750_v36, 5  ;;  %v822_v45 = vsel %vm10085_vm5, %v7197_v37, %v821_v38  ;;  %v823_v46 = vrot.slane %v821_v38, 4  ;;  %v7318_v62 = vld [vmem:[%s9833_s16 + $0x30] sm:$0xe] }
 0x12b   : > { %v2836_v29 = vor.u32 %v2835_v20, %v2832_v14  ;;  %v2846_v30 = vor.u32 %v2845_v26, %v2841_v24  ;;  %8404 = vmatmul.mubr.bf16.vlgmr.msra.gmra.mrb[40].mxu1 %v7350_v23  ;;  %v7341_v48 = vrot.slane %v7315_v42, 9  ;;  %v1880_v53 = vrot.slane %v7316_v43, 5  ;;  %v7319_v3 = vld [vmem:[%s9833_s16 + $0x34] sm:$0xf]  ;;  %v7320_v4 = vld [vmem:[%s9833_s16 + $0x38] sm:$0x1] }
 0x12c   : > { %8424 = vmatpush3.bf16.msra.mxu1 %v10056_v22  ;;  %v1883_v54 = vrot.slane %v7317_v47, 5  ;;  %v825_v58 = vsel %vm10085_vm5, %v823_v46, %v824_v41  ;;  %v7198_v59 = vrot.slane %v751_v49, 9  ;;  %v828_v60 = vrot.slane %v752_v55, 5  ;;  %v7453_v10 = vld [vmem:[%s9833_s16 + $0x18] sm:$0xe]  ;;  %v9186_v23 = vld [vmem:[#allocation8 + $0x220] sm:$0xff]  }
 0x12d   : > { %v2837_v31 = vrot.slane %v2836_v29, 4  ;;  %v2847_v35 = vrot.slane %v2846_v30, 4  ;;  %8020 = vmatpush3.bf16.msra.mxu0 %v9171_v18  ;;  %8425 = vmatprep.subr.bf16.mxu1 %v9179_v28  ;;  %v831_v61 = vrot.slane %v753_v56, 5  ;;  %v7207_v0 = vcombine.low %v822_v45, %v825_v58  ;;  %v7454_v12 = vld [vmem:[%s9833_s16 + $0x1c] sm:$0xf]  ;;  %v9183_v38 = vld [vmem:[#allocation8 + $0x1f0] sm:$0xff]  }
 0x12e   : > { %8021 = vmatprep.subr.bf16.mxu0 %v9172_v21  ;;  %v1881_v1 = vsel %vm10085_vm5, %v7341_v48, %v1880_v53  ;;  %v1882_v2 = vrot.slane %v1880_v53, 4  ;;  %v7342_v5 = vrot.slane %v7318_v62, 9  ;;  %v829_v6 = vsel %vm10085_vm5, %v7198_v59, %v828_v60  ;;  %v7455_v13 = vld [vmem:[%s9833_s16 + $0x20] sm:$0x1]  ;;  %v7456_v20 = vld [vmem:[%s9833_s16 + $0x24] sm:$0xe] }
 0x12f   : > { %v2842_v40 = vsel %vm9853_vm2, %v2837_v31, %v2841_v24  ;;  %v2852_v22 = vsel %vm9853_vm2, %v2847_v35, %v2851_v27  ;;  %v830_v7 = vrot.slane %v828_v60, 4  ;;  %v1887_v8 = vrot.slane %v7319_v3, 5  ;;  %8371 = vmatprep.mubr.bf16.mxu0 %v7207_v0  ;;  %v7457_v21 = vld [vmem:[%s9833_s16 + $0x28] sm:$0xf]  ;;  %v754_v41 = vld [vmem:[%s9833_s16 + $0x30] sm:$0xe] }
 0x130   : > { %v10138_v51 = vcombine.low %v2842_v40, %v2852_v22  ;;  %8426 = vmatpush3.bf16.msra.mxu1 %v9179_v28  ;;  %v1890_v9 = vrot.slane %v7320_v4, 5  ;;  %v1884_v11 = vsel %vm10085_vm5, %v1882_v2, %v1883_v54  ;;  %v7483_v14 = vrot.slane %v7453_v10, 9  ;;  %v7458_v28 = vld [vmem:[%s9833_s16 + $0x2c] sm:$0x1]  ;;  %v755_v42 = vld [vmem:[%s9833_s16 + $0x34] sm:$0xf] }
 0x131   : > { %8022 = vmatpush3.bf16.msra.mxu0 %v9173_v34  ;;  %8427 = vmatprep.subr.bf16.mxu1 %v9182_v39  ;;  %v7351_v16 = vcombine.low %v1881_v1, %v1884_v11  ;;  %v832_v17 = vsel %vm10085_vm5, %v830_v7, %v831_v61  ;;  %v1888_v18 = vsel %vm10085_vm5, %v7342_v5, %v1887_v8  ;;  %v1889_v19 = vrot.slane %v1887_v8, 4  ;;  %v9180_v30 = vld [vmem:[#allocation8 + $0x1e8] sm:$0xff]   ;;  %v7322_v53 = vld [vmem:[%s9833_s16 + $0x40] sm:$0xf]  ;;  %v7323_v54 = vld [vmem:[%s9833_s16 + $0x44] sm:$0x1] }
 0x132   : > { %8023 = vmatprep.subr.bf16.mxu0 %v9174_v44  ;;  %v7208_v24 = vcombine.low %v829_v6, %v832_v17  ;;  %v2965_v26 = vrot.slane %v7454_v12, 5  ;;  %v2968_v27 = vrot.slane %v7455_v13, 5  ;;  %v7484_v29 = vrot.slane %v7456_v20, 9  ;;  %v9181_v34 = vld [vmem:[#allocation8 + $0x1a8] sm:$0xff]   ;;  %v9185_v56 = vld [vmem:[#allocation8 + $0x1b0] sm:$0xff]   ;;  %v9187_v61 = vld [vmem:[#allocation8 + $0x1f8] sm:$0xff]  }
 0x133   : > { %v1891_v31 = vsel %vm10085_vm5, %v1889_v19, %v1890_v9  ;;  %v2972_v32 = vrot.slane %v7457_v21, 5  ;;  %v2975_v33 = vrot.slane %v7458_v28, 5  ;;  %8407 = vmatprep.mubr.bf16.mxu1 %v7351_v16  ;;  %v9189_v43 = vld [vmem:[#allocation8 + $0x228] sm:$0xff]   ;;  %v7199_v45 = vrot.slane %v754_v41, 9  ;;  %v758_v0 = vld [vmem:[%s9833_s16 + $0x40] sm:$0xf] }
 0x134   : > { %8428 = vmatpush3.bf16.msra.mxu1 %v9182_v39  ;;  %8372 = vmatmul.mubr.bf16.gmra.mrb[44].mxu0 %v7208_v24  ;;  %v7352_v35 = vcombine.low %v1888_v18, %v1891_v31  ;;  %v2966_v36 = vsel %vm10085_vm5, %v7483_v14, %v2965_v26  ;;  %v2967_v37 = vrot.slane %v2965_v26, 4  ;;  %v756_v22 = vld [vmem:[%s9833_s16 + $0x38] sm:$0x1]  ;;  %v835_v46 = vrot.slane %v755_v42, 5  ;;  %v7321_v47 = vld [vmem:[%s9833_s16 + $0x3c] sm:$0xe] }
 0x135   : > { %8024 = vmatpush3.bf16.msra.mxu0 %v9175_v50  ;;  %8429 = vmatprep.subr.bf16.mxu1 %v9184_v63  ;;  %v2973_v39 = vsel %vm10085_vm5, %v7484_v29, %v2972_v32  ;;  %v2974_v40 = vrot.slane %v2972_v32, 4  ;;  %v838_v50 = vrot.slane %v756_v22, 5  ;;  %v7343_v55 = vrot.slane %v7321_v47, 9  ;;  %v9190_v1 = vld [vmem:[#allocation8 + $0x230] sm:$0xff]   ;;  %v7324_v7 = vld [vmem:[%s9833_s16 + $0x48] sm:$0xe] }
 0x136   : > { %8025 = vmatprep.subr.bf16.mxu0 %v9177_v57  ;;  %v2969_v44 = vsel %vm10085_vm5, %v2967_v37, %v2968_v27  ;;  %8408 = vmatmul.mubr.bf16.gmra.mrb[44].mxu1 %v7352_v35  ;;  %v836_v58 = vsel %vm10085_vm5, %v7199_v45, %v835_v46  ;;  %v837_v59 = vrot.slane %v835_v46, 4  ;;  %v1894_v60 = vrot.slane %v7322_v53, 5  ;;  %v759_v5 = vld [vmem:[%s9833_s16 + $0x44] sm:$0x1]  ;;  %v7325_v11 = vld [vmem:[%s9833_s16 + $0x4c] sm:$0xf] }
 0x137   : > { %v10175_v48 = vcombine.low %v2966_v36, %v2969_v44  ;;  %v2976_v49 = vsel %vm10085_vm5, %v2974_v40, %v2975_v33  ;;  %v1897_v62 = vrot.slane %v7323_v54, 5  ;;  %v842_v9 = vrot.slane %v758_v0, 5  ;;  %v7326_v12 = vld [vmem:[%s9833_s16 + $0x50] sm:$0x1]  ;;  %v9188_v17 = vld [vmem:[#allocation8 + $0x1b8] sm:$0xff]  }
 0x138   : > { %8430 = vmatpush3.bf16.msra.mxu1 %v9184_v63  ;;  %v10181_v57 = vcombine.low %v2973_v39, %v2976_v49  ;;  %v757_v63 = vld [vmem:[%s9833_s16 + $0x3c] sm:$0xe]  ;;  %v839_v2 = vsel %vm10085_vm5, %v837_v59, %v838_v50  ;;  %v1895_v3 = vsel %vm10085_vm5, %v7343_v55, %v1894_v60  ;;  %v1896_v4 = vrot.slane %v1894_v60, 4  ;;  %v7459_v21 = vld [vmem:[%s9833_s16 + $0x30] sm:$0xe] }
 0x139   : > { %8026 = vmatpush3.bf16.msra.mxu0 %v9178_v15  ;;  %8431 = vmatprep.subr.bf16.mxu1 %v9186_v23  ;;  %3073 = vst [vmem:[#allocation2 + $0x10] sm:$0xff] %v10175_v48  ;;  %v7200_v6 = vrot.slane %v757_v63, 9  ;;  %v7209_v8 = vcombine.low %v836_v58, %v839_v2  ;;  %v845_v10 = vrot.slane %v759_v5, 5  ;;  %v7344_v14 = vrot.slane %v7324_v7, 9  ;;  %v7460_v27 = vld [vmem:[%s9833_s16 + $0x34] sm:$0xf] }
 0x13a   : > { %8027 = vmatprep.subr.bf16.mxu0 %v9180_v30  ;;  %3074 = vst [vmem:[#allocation2 + $0x28] sm:$0xff] %v10181_v57  ;;  %v1898_v13 = vsel %vm10085_vm5, %v1896_v4, %v1897_v62  ;;  %v1901_v15 = vrot.slane %v7325_v11, 5  ;;  %v1904_v16 = vrot.slane %v7326_v12, 5  ;;  %v844_v20 = vrot.slane %v842_v9, 4  ;;  %v7461_v28 = vld [vmem:[%s9833_s16 + $0x38] sm:$0x1] }
 0x13b   : > { %8375 = vmatprep.mubr.bf16.mxu0 %v7209_v8  ;;  %v7353_v18 = vcombine.low %v1895_v3, %v1898_v13  ;;  %v843_v19 = vsel %vm10085_vm5, %v7200_v6, %v842_v9  ;;  %v7485_v29 = vrot.slane %v7459_v21, 9  ;;  %v2979_v31 = vrot.slane %v7460_v27, 5  ;;  %v7462_v33 = vld [vmem:[%s9833_s16 + $0x3c] sm:$0xe]  ;;  %v7464_v37 = vld [vmem:[%s9833_s16 + $0x44] sm:$0x1] }
 0x13c   : > { %8432 = vmatpush3.bf16.msra.mxu1 %v9186_v23  ;;  %v9191_v23 = vld [vmem:[#allocation8 + $0x238] sm:$0xff]   ;;  %v1902_v24 = vsel %vm10085_vm5, %v7344_v14, %v1901_v15  ;;  %v1903_v26 = vrot.slane %v1901_v15, 4  ;;  %v846_v30 = vsel %vm10085_vm5, %v844_v20, %v845_v10  ;;  %v2982_v32 = vrot.slane %v7461_v28, 5  ;;  %v762_v53 = vld [vmem:[%s9833_s16 + $0x50] sm:$0x1] }
 0x13d   : > { %8028 = vmatpush3.bf16.msra.mxu0 %v9181_v34  ;;  %8433 = vmatprep.subr.bf16.mxu1 %v9189_v43  ;;  %v7463_v34 = vld [vmem:[%s9833_s16 + $0x40] sm:$0xf]  ;;  %v7210_v35 = vcombine.low %v843_v19, %v846_v30  ;;  %v2980_v41 = vsel %vm10085_vm5, %v7485_v29, %v2979_v31  ;;  %v2981_v42 = vrot.slane %v2979_v31, 4  ;;  %v760_v49 = vld [vmem:[%s9833_s16 + $0x48] sm:$0xe]  ;;  %v852_v58 = vrot.slane %v762_v53, 5 }
 0x13e   : > { %8029 = vmatprep.subr.bf16.mxu0 %v9183_v38  ;;  %8411 = vmatprep.mubr.bf16.mxu1 %v7353_v18  ;;  %v1905_v36 = vsel %vm10085_vm5, %v1903_v26, %v1904_v16  ;;  %v7486_v38 = vrot.slane %v7462_v33, 9  ;;  %v2986_v39 = vrot.slane %v7463_v34, 5  ;;  %v761_v50 = vld [vmem:[%s9833_s16 + $0x4c] sm:$0xf]  ;;  %v7201_v55 = vrot.slane %v760_v49, 9 }
 0x13f   : > { %v7354_v40 = vcombine.low %v1902_v24, %v1905_v36  ;;  %8376 = vmatmul.mubr.bf16.gmra.mrb[48].mxu0 %v7210_v35  ;;  %v2983_v45 = vsel %vm10085_vm5, %v2981_v42, %v2982_v32  ;;  %v7327_v59 = vld [vmem:[%s9833_s16 + $0x54] sm:$0xe]  ;;  %v7328_v60 = vld [vmem:[%s9833_s16 + $0x58] sm:$0xf]  ;;  %v765_v5 = vld [vmem:[%s9833_s16 + $0x5c] sm:$0x1] }
 0x140   : > { %8434 = vmatpush3.bf16.msra.mxu1 %v9189_v43  ;;  %v2989_v43 = vrot.slane %v7464_v37, 5  ;;  %v2987_v44 = vsel %vm10085_vm5, %v7486_v38, %v2986_v39  ;;  %v2988_v22 = vrot.slane %v2986_v39, 4  ;;  %v10219_v46 = vcombine.low %v2980_v41, %v2983_v45  ;;  %v763_v3 = vld [vmem:[%s9833_s16 + $0x54] sm:$0xe]  ;;  %v764_v4 = vld [vmem:[%s9833_s16 + $0x58] sm:$0xf] }
 0x141   : > { %8030 = vmatpush3.bf16.msra.mxu0 %v9185_v56  ;;  %8435 = vmatprep.subr.bf16.mxu1 %v9190_v1  ;;  %v849_v56 = vrot.slane %v761_v50, 5  ;;  %v7345_v62 = vrot.slane %v7327_v59, 9  ;;  %v7202_v6 = vrot.slane %v763_v3, 9  ;;  %v856_v10 = vrot.slane %v764_v4, 5  ;;  %v7330_v11 = vld [vmem:[%s9833_s16 + $0x60] sm:$0xe] }
 0x142   : > { %8031 = vmatprep.subr.bf16.mxu0 %v9187_v61  ;;  %8412 = vmatmul.mubr.bf16.gmra.mrb[48].mxu1 %v7354_v40  ;;  %v2990_v47 = vsel %vm10085_vm5, %v2988_v22, %v2989_v43  ;;  %3075 = vst [vmem:[#allocation2 + $0x40] sm:$0xff] %v10219_v46  ;;  %v7329_v61 = vld [vmem:[%s9833_s16 + $0x5c] sm:$0x1]  ;;  %v7331_v12 = vld [vmem:[%s9833_s16 + $0x64] sm:$0xf]  ;;  %v859_v14 = vrot.slane %v765_v5, 5 }
 0x143   : > { %v10226_v54 = vcombine.low %v2987_v44, %v2990_v47  ;;  %v850_v63 = vsel %vm10085_vm5, %v7201_v55, %v849_v56  ;;  %v851_v0 = vrot.slane %v849_v56, 4  ;;  %v1911_v2 = vrot.slane %v7329_v61, 5  ;;  %v7332_v15 = vld [vmem:[%s9833_s16 + $0x68] sm:$0x1]  ;;  %v7466_v24 = vld [vmem:[%s9833_s16 + $0x4c] sm:$0xf] }
 0x144   : > { %8436 = vmatpush3.bf16.msra.mxu1 %v9190_v1  ;;  %v1908_v1 = vrot.slane %v7328_v60, 5  ;;  %v7346_v16 = vrot.slane %v7330_v11, 9  ;;  %v857_v19 = vsel %vm10085_vm5, %v7202_v6, %v856_v10  ;;  %v858_v20 = vrot.slane %v856_v10, 4  ;;  %v7467_v29 = vld [vmem:[%s9833_s16 + $0x50] sm:$0x1] }
 0x145   : > { %8032 = vmatpush3.bf16.msra.mxu0 %v9188_v17  ;;  %8437 = vmatprep.subr.bf16.mxu1 %v9191_v23  ;;  %3076 = vst [vmem:[#allocation2 + $0x58] sm:$0xff] %v10226_v54  ;;  %v853_v7 = vsel %vm10085_vm5, %v851_v0, %v852_v58  ;;  %v1915_v17 = vrot.slane %v7331_v12, 5  ;;  %v1918_v21 = vrot.slane %v7332_v15, 5  ;;  %v2993_v32 = vrot.slane %v7466_v24, 5  ;;  %v7468_v34 = vld [vmem:[%s9833_s16 + $0x54] sm:$0xe] }
 0x146   : > { %v1909_v8 = vsel %vm10085_vm5, %v7345_v62, %v1908_v1  ;;  %v1910_v9 = vrot.slane %v1908_v1, 4  ;;  %v7211_v13 = vcombine.low %v850_v63, %v853_v7  ;;  %v860_v31 = vsel %vm10085_vm5, %v858_v20, %v859_v14  ;;  %v7469_v37 = vld [vmem:[%s9833_s16 + $0x58] sm:$0xf]  ;;  %v7470_v38 = vld [vmem:[%s9833_s16 + $0x5c] sm:$0x1] }
 0x147   : > { %v1916_v27 = vsel %vm10085_vm5, %v7346_v16, %v1915_v17  ;;  %v1917_v28 = vrot.slane %v1915_v17, 4  ;;  %v2996_v33 = vrot.slane %v7467_v29, 5  ;;  %v7212_v35 = vcombine.low %v857_v19, %v860_v31  ;;  %v766_v50 = vld [vmem:[%s9833_s16 + $0x60] sm:$0xe]  ;;  %v767_v55 = vld [vmem:[%s9833_s16 + $0x64] sm:$0xf] }
 0x148   : > { %8438 = vmatpush3.bf16.msra.mxu1 %v9191_v23  ;;  %v1912_v18 = vsel %vm10085_vm5, %v1910_v9, %v1911_v2  ;;  %v7465_v23 = vld [vmem:[%s9833_s16 + $0x48] sm:$0xe]  ;;  %8379 = vmatprep.mubr.bf16.mxu0 %v7211_v13  ;;  %v7488_v39 = vrot.slane %v7468_v34, 9  ;;  %v2995_v42 = vrot.slane %v2993_v32, 4  ;;  %v3000_v43 = vrot.slane %v7469_v37, 5 }
 0x149   : > { %v7355_v26 = vcombine.low %v1909_v8, %v1912_v18  ;;  %v7487_v30 = vrot.slane %v7465_v23, 9  ;;  %v1919_v36 = vsel %vm10085_vm5, %v1917_v28, %v1918_v21  ;;  %8380 = vmatmul.mubr.bf16.gmra.mrb[52].mxu0 %v7212_v35  ;;  %v3003_v44 = vrot.slane %v7470_v38, 5  ;;  %v768_v56 = vld [vmem:[%s9833_s16 + $0x68] sm:$0x1]  ;;  %v7333_v62 = vld [vmem:[%s9833_s16 + $0x6c] sm:$0xe] }
 0x14a   : > { %v7356_v40 = vcombine.low %v1916_v27, %v1919_v36  ;;  %v10267_v22 = vsel %vm10085_vm5, %v2995_v42, %v2996_v33  ;;  %v10271_v45 = vsel %vm10085_vm5, %v7488_v39, %v3000_v43  ;;  %v3002_v47 = vrot.slane %v3000_v43, 4  ;;  %v7334_v63 = vld [vmem:[%s9833_s16 + $0x70] sm:$0xf]  ;;  %v7335_v0 = vld [vmem:[%s9833_s16 + $0x74] sm:$0x1] }
 0x14b   : > { %8415 = vmatprep.mubr.bf16.mxu1 %v7355_v26  ;;  %v10263_v41 = vsel %vm10085_vm5, %v7487_v30, %v2993_v32  ;;  %v7203_v58 = vrot.slane %v766_v50, 9  ;;  %v863_v60 = vrot.slane %v767_v55, 5  ;;  %v866_v61 = vrot.slane %v768_v56, 5  ;;  %v769_v6 = vld [vmem:[%s9833_s16 + $0x6c] sm:$0xe]  ;;  %v3084_v50 = vld [vmem:[#allocation2 + $0x8] sm:$0xff] }
 0x14c   : > { %8416 = vmatmul.mubr.bf16.gmra.mrb[52].mxu1 %v7356_v40  ;;  %v7497_v49 = vcombine.low %v10263_v41, %v10267_v22  ;;  %v10278_v53 = vsel %vm10085_vm5, %v3002_v47, %v3003_v44  ;;  %v7347_v1 = vrot.slane %v7333_v62, 9  ;;  %v1922_v2 = vrot.slane %v7334_v63, 5  ;;  %v770_v9 = vld [vmem:[%s9833_s16 + $0x70] sm:$0xf]  ;;  %v771_v10 = vld [vmem:[%s9833_s16 + $0x74] sm:$0x1] }
 0x14d   : > { %v7498_v59 = vcombine.low %v10271_v45, %v10278_v53  ;;  %v864_v3 = vsel %vm10085_vm5, %v7203_v58, %v863_v60  ;;  %v865_v4 = vrot.slane %v863_v60, 4  ;;  %v1925_v5 = vrot.slane %v7335_v0, 5  ;;  %v7336_v15 = vld [vmem:[%s9833_s16 + $0x78] sm:$0xe]  ;;  %v7337_v16 = vld [vmem:[%s9833_s16 + $0x7c] sm:$0xf] }
 0x14e   : > { %v1923_v7 = vsel %vm10085_vm5, %v7347_v1, %v1922_v2  ;;  %v1924_v8 = vrot.slane %v1922_v2, 4  ;;  %v7204_v11 = vrot.slane %v769_v6, 9  ;;  %v870_v13 = vrot.slane %v770_v9, 5  ;;  %v7338_v19 = vld [vmem:[%s9833_s16 + $0x80] sm:$0x1] }
 0x14f   : > { %v867_v12 = vsel %vm10085_vm5, %v865_v4, %v866_v61  ;;  %v873_v14 = vrot.slane %v771_v10, 5  ;;  %v7348_v20 = vrot.slane %v7336_v15, 9  ;;  %v1929_v21 = vrot.slane %v7337_v16, 5  ;;  %v7471_v23 = vld [vmem:[%s9833_s16 + $0x60] sm:$0xe] }
 0x150   : > { %v7213_v17 = vcombine.low %v864_v3, %v867_v12  ;;  %v1926_v18 = vsel %vm10085_vm5, %v1924_v8, %v1925_v5  ;;  %v871_v26 = vsel %vm10085_vm5, %v7204_v11, %v870_v13  ;;  %v872_v27 = vrot.slane %v870_v13, 4  ;;  %v7472_v29 = vld [vmem:[%s9833_s16 + $0x64] sm:$0xf]  ;;  %v7473_v30 = vld [vmem:[%s9833_s16 + $0x68] sm:$0x1] }
 0x151   : > { %v7357_v24 = vcombine.low %v1923_v7, %v1926_v18  ;;  %v1932_v28 = vrot.slane %v7338_v19, 5  ;;  %v1930_v31 = vsel %vm10085_vm5, %v7348_v20, %v1929_v21  ;;  %v1931_v32 = vrot.slane %v1929_v21, 4  ;;  %v7474_v35 = vld [vmem:[%s9833_s16 + $0x6c] sm:$0xe]  ;;  %v7475_v38 = vld [vmem:[%s9833_s16 + $0x70] sm:$0xf] }
 0x152   : > { %8383 = vmatprep.mubr.bf16.mxu0 %v7213_v17  ;;  %v7489_v33 = vrot.slane %v7471_v23, 9  ;;  %v3007_v34 = vrot.slane %v7472_v29, 5  ;;  %v874_v36 = vsel %vm10085_vm5, %v872_v27, %v873_v14  ;;  %v3010_v37 = vrot.slane %v7473_v30, 5  ;;  %v7476_v39 = vld [vmem:[%s9833_s16 + $0x74] sm:$0x1]  ;;  %v3083_v5 = vld [vmem:[#allocation2] sm:$0xff] }
 0x153   : > { %v7490_v40 = vrot.slane %v7474_v35, 9  ;;  %8419 = vmatprep.mubr.bf16.mxu1 %v7357_v24  ;;  %v7214_v42 = vcombine.low %v871_v26, %v874_v36  ;;  %v1933_v43 = vsel %vm10085_vm5, %v1931_v32, %v1932_v28  ;;  %v3014_v56 = vrot.slane %v7475_v38, 5  ;;  %v7477_v0 = vld [vmem:[%s9833_s16 + $0x78] sm:$0xe]  ;;  %v7478_v1 = vld [vmem:[%s9833_s16 + $0x7c] sm:$0xf] }
 0x154   : > { %v3008_v44 = vsel %vm10085_vm5, %v7489_v33, %v3007_v34  ;;  %v3009_v47 = vrot.slane %v3007_v34, 4  ;;  %v7358_v55 = vcombine.low %v1930_v31, %v1933_v43  ;;  %v3017_v58 = vrot.slane %v7476_v39, 5  ;;  %v7479_v2 = vld [vmem:[%s9833_s16 + $0x80] sm:$0x1]  ;;  %v7480_v8 = vld [vmem:[%s9833_s16 + $0x84] sm:$0xe] }
 0x155   : > { %8384 = vmatmul.mubr.bf16.gmra.mrb[56].mxu0 %v7214_v42  ;;  %v3015_v62 = vsel %vm10085_vm5, %v7490_v40, %v3014_v56  ;;  %v3016_v63 = vrot.slane %v3014_v56, 4  ;;  %v7491_v3 = vrot.slane %v7477_v0, 9  ;;  %v3021_v6 = vrot.slane %v7478_v1, 5  ;;  %v7481_v9 = vld [vmem:[%s9833_s16 + $0x88] sm:$0xf]  ;;  %v3086_v24 = vld [vmem:[#allocation2 + $0x18] sm:$0xff] }
 0x156   : > { %v3011_v60 = vsel %vm10085_vm5, %v3009_v47, %v3010_v37  ;;  %3337 = vmatprep.mubr.bf16.mxu0 %v3084_v50  ;;  %8420 = vmatmul.mubr.bf16.gmra.mrb[56].mxu1 %v7358_v55  ;;  %v3024_v7 = vrot.slane %v7479_v2, 5  ;;  %v7482_v11 = vld [vmem:[%s9833_s16 + $0x8c] sm:$0x1]  ;;  %v7492_v12 = vrot.slane %v7480_v8, 9  ;;  %v3028_v13 = vrot.slane %v7481_v9, 5  ;;  %v3090_v26 = vld [vmem:[#allocation2 + $0x38] sm:$0xff] }
 0x157   : > { %v7499_v61 = vcombine.low %v3008_v44, %v3011_v60  ;;  %8439 = vmatprep.mubr.bf16.mxu1 %v10175_v48  ;;  %v3018_v4 = vsel %vm10085_vm5, %v3016_v63, %v3017_v58  ;;  %v3022_v14 = vsel %vm10085_vm5, %v7491_v3, %v3021_v6  ;;  %v3023_v15 = vrot.slane %v3021_v6, 4  ;;  %v3087_v18 = vld [vmem:[#allocation2 + $0x20] sm:$0xff]  ;;  %v3089_v27 = vld [vmem:[#allocation2 + $0x30] sm:$0xff]  ;;  %v3092_v32 = vld [vmem:[#allocation2 + $0x48] sm:$0xff] }
 0x158   : > { %v7500_v10 = vcombine.low %v3015_v62, %v3018_v4  ;;  %v3031_v16 = vrot.slane %v7482_v11, 5  ;;  %v3029_v48 = vsel %vm10085_vm5, %v7492_v12, %v3028_v13  ;;  %v3030_v17 = vrot.slane %v3028_v13, 4  ;;  %v3093_v28 = vld [vmem:[#allocation2 + $0x50] sm:$0xff]  ;;  %v3096_v41 = vld [vmem:[#allocation2 + $0x68] sm:$0xff]  ;;  %v3099_v36 = vld [vmem:[#allocation2 + $0x80] sm:$0xff] }
 0x159   : > { %v3025_v19 = vsel %vm10085_vm5, %v3023_v15, %v3024_v7  ;;  %v3098_v58 = vld [vmem:[#allocation2 + $0x78] sm:$0xff]  ;;  %v3101_v1 = vld [vmem:[#allocation2 + $0x90] sm:$0xff]  ;;  %v3104_v11 = vld [vmem:[#allocation2 + $0xa8] sm:$0xff] }
 0x15a   : > { %v7501_v20 = vcombine.low %v3022_v14, %v3025_v19  ;;  %v3032_v21 = vsel %vm10085_vm5, %v3030_v17, %v3031_v16  ;;  %v3102_v60 = vld [vmem:[#allocation2 + $0x98] sm:$0xff]  ;;  %v3105_v3 = vld [vmem:[#allocation2 + $0xb0] sm:$0xff]  ;;  %v3108_v12 = vld [vmem:[#allocation2 + $0xc8] sm:$0xff] }
 0x15b   : > { %v7502_v23 = vcombine.low %v3029_v48, %v3032_v21 }
 0x15d   : > { %3338 = vmatmul.mubr.bf16.vlgmr.msra.gmra.mrb[60].mxu0 %v3083_v5 }
 0x15e   : > { %3345 = vmatprep.mubr.bf16.mxu0 %v3087_v18  ;;  %8440 = vmatmul.mubr.bf16.vlgmr.msra.gmra.mrb[40].mxu1 %v10181_v57 }
 0x15f   : > { %8443 = vmatprep.mubr.bf16.mxu1 %v10219_v46 }
 0x165   : > { %3346 = vmatmul.mubr.bf16.gmra.mrb[64].mxu0 %v3086_v24 }
 0x166   : > { %3353 = vmatprep.mubr.bf16.mxu0 %v3090_v26  ;;  %8444 = vmatmul.mubr.bf16.gmra.mrb[44].mxu1 %v10226_v54 }
 0x167   : > { %8447 = vmatprep.mubr.bf16.mxu1 %v7497_v49 }
 0x16d   : > { %3354 = vmatmul.mubr.bf16.gmra.mrb[68].mxu0 %v3089_v27 }
 0x16e   : > { %3361 = vmatprep.mubr.bf16.mxu0 %v3093_v28  ;;  %8448 = vmatmul.mubr.bf16.gmra.mrb[48].mxu1 %v7498_v59  ;;  %v3095_v59 = vld [vmem:[#allocation2 + $0x60] sm:$0xff] }
 0x16f   : > { %8451 = vmatprep.mubr.bf16.mxu1 %v7499_v61 }
 0x175   : > { %3362 = vmatmul.mubr.bf16.gmra.mrb[72].mxu0 %v3092_v32 }
 0x176   : > { %3369 = vmatprep.mubr.bf16.mxu0 %v3096_v41  ;;  %8452 = vmatmul.mubr.bf16.gmra.mrb[52].mxu1 %v7500_v10 }
 0x177   : > { %8455 = vmatprep.mubr.bf16.mxu1 %v7501_v20  ;;  %v3107_v20 = vld [vmem:[#allocation2 + $0xc0] sm:$0xff] }
 0x17d   : > { %3370 = vmatmul.mubr.bf16.gmra.mrb[76].mxu0 %v3095_v59 }
 0x17e   : > { %3377 = vmatprep.mubr.bf16.mxu0 %v3099_v36  ;;  %8456 = vmatmul.mubr.bf16.gmra.mrb[56].mxu1 %v7502_v23 }
 0x185   : > { %3378 = vmatmul.mubr.bf16.gmra.mrb[80].mxu0 %v3098_v58 }
 0x186   : > { %3385 = vmatprep.mubr.bf16.mxu0 %v3102_v60 }
 0x18d   : > { %v7845_v29 = vpop.f32.mrb[0].mxu0  ;;  %3386 = vmatmul.mubr.bf16.gmra.mrb[84].mxu0 %v3101_v1 }
 0x18e   : > { %v7846_v57 = vpop.f32.mrb[1].mxu0  ;;  %3393 = vmatprep.mubr.bf16.mxu0 %v3105_v3 }
 0x18f   : > { %v10347_v46 = vadd.f32 %v7846_v57, %v7845_v29  ;;  %v7848_v30 = vpop.f32.mrb[2].mxu0  ;;  %v7939_v22 = vpop.f32.mrb[0].mxu1 }
 0x190   : > { %v7849_v31 = vpop.f32.mrb[3].mxu0  ;;  %v7940_v49 = vpop.f32.mrb[1].mxu1 }
 0x191   : > { %v10349_v54 = vadd.f32 %v7849_v31, %v7848_v30  ;;  %v10351_v33 = vadd.f32 %v7940_v49, %v7939_v22  ;;  %v7942_v34 = vpop.f32.mrb[2].mxu1  ;;  %v9192_v30 = vld [vmem:[#allocation2 + $0xd8] sm:$0xff] }
 0x192   : > { %v7943_v45 = vpop.f32.mrb[3].mxu1 }
 0x193   : > { %v10353_v53 = vadd.f32 %v7943_v45, %v7942_v34 }
 0x195   : > { %v7851_v35 = vpop.f32.mrb[4].mxu0  ;;  %3394 = vmatmul.mubr.bf16.gmra.mrb[88].mxu0 %v3104_v11 }
 0x196   : > { %v7852_v37 = vpop.f32.mrb[5].mxu0  ;;  %3401 = vmatprep.mubr.bf16.mxu0 %v3108_v12 }
 0x197   : > { %v10355_v38 = vadd.f32 %v7852_v37, %v7851_v35  ;;  %v7854_v39 = vpop.f32.mrb[6].mxu0  ;;  %v7945_v42 = vpop.f32.mrb[4].mxu1 }
 0x198   : > { %v7855_v40 = vpop.f32.mrb[7].mxu0  ;;  %v7946_v44 = vpop.f32.mrb[5].mxu1 }
 0x199   : > { %v10357_v43 = vadd.f32 %v7855_v40, %v7854_v39  ;;  %v10359_v47 = vadd.f32 %v7946_v44, %v7945_v42  ;;  %v7948_v50 = vpop.f32.mrb[6].mxu1 }
 0x19a   : > { %v7949_v55 = vpop.f32.mrb[7].mxu1 }
 0x19b   : > { %v10361_v56 = vadd.f32 %v7949_v55, %v7948_v50 }
 0x19d   : > { %v7857_v61 = vpop.f32.mrb[8].mxu0  ;;  %3402 = vmatmul.mubr.bf16.gmra.mrb[92].mxu0 %v3107_v20 }
 0x19e   : > { %v7858_v62 = vpop.f32.mrb[9].mxu0  ;;  %3409 = vmatprep.mubr.bf16.mxu0 %v10138_v51 }
 0x19f   : > { %v10363_v63 = vadd.f32 %v7858_v62, %v7857_v61  ;;  %v7860_v0 = vpop.f32.mrb[10].mxu0  ;;  %v7951_v5 = vpop.f32.mrb[8].mxu1 }
 0x1a0   : > { %v7861_v2 = vpop.f32.mrb[11].mxu0  ;;  %v7952_v6 = vpop.f32.mrb[9].mxu1 }
 0x1a1   : > { %v10365_v4 = vadd.f32 %v7861_v2, %v7860_v0  ;;  %v10367_v7 = vadd.f32 %v7952_v6, %v7951_v5  ;;  %v7954_v8 = vpop.f32.mrb[10].mxu1 }
 0x1a2   : > { %v7955_v9 = vpop.f32.mrb[11].mxu1 }
 0x1a3   : > { %v10369_v10 = vadd.f32 %v7955_v9, %v7954_v8 }
 0x1a5   : > { %v7863_v13 = vpop.f32.mrb[12].mxu0  ;;  %3410 = vmatmul.mubr.bf16.gmra.mrb[96].mxu0 %v9192_v30 }
 0x1a6   : > { %v7864_v14 = vpop.f32.mrb[13].mxu0 }
 0x1a7   : > { %v10371_v15 = vadd.f32 %v7864_v14, %v7863_v13  ;;  %v7866_v16 = vpop.f32.mrb[14].mxu0 }
 0x1a8   : > { %v7867_v48 = vpop.f32.mrb[15].mxu0 }
 0x1a9   : > { %v10373_v17 = vadd.f32 %v7867_v48, %v7866_v16  ;;  %v7957_v18 = vpop.f32.mrb[12].mxu1 }
 0x1aa   : > { %v7958_v19 = vpop.f32.mrb[13].mxu1 }
 0x1ab   : > { %v10375_v21 = vadd.f32 %v7958_v19, %v7957_v18  ;;  %v7960_v23 = vpop.f32.mrb[14].mxu1 }
 0x1ac   : > { %v7961_v24 = vpop.f32.mrb[15].mxu1 }
 0x1ad   : > { %v10377_v26 = vadd.f32 %v7961_v24, %v7960_v23 }
 0x1b3   : > { %v7869_v27 = vpop.f32.mrb[16].mxu0 }
 0x1b4   : > { %v7870_v28 = vpop.f32.mrb[17].mxu0 }
 0x1b5   : > { %v10380_v29 = vadd.f32 %v7870_v28, %v7869_v27  ;;  %v7872_v57 = vpop.f32.mrb[18].mxu0 }
 0x1b6   : > { %v7873_v31 = vpop.f32.mrb[19].mxu0  ;;  %v7963_v32 = vpop.f32.mrb[16].mxu1 }
 0x1b7   : > { %v10382_v41 = vadd.f32 %v7873_v31, %v7872_v57  ;;  %v7964_v22 = vpop.f32.mrb[17].mxu1 }
 0x1b8   : > { %v10384_v49 = vadd.f32 %v7964_v22, %v7963_v32  ;;  %v7966_v34 = vpop.f32.mrb[18].mxu1 }
 0x1b9   : > { %v7967_v45 = vpop.f32.mrb[19].mxu1 }
 0x1ba   : > { %v10386_v59 = vadd.f32 %v7967_v45, %v7966_v34 }
 0x1be   : > { %v7875_v35 = vpop.f32.mrb[20].mxu0 }
 0x1bf   : > { %v7876_v51 = vpop.f32.mrb[21].mxu0 }
 0x1c0   : > { %v10388_v36 = vadd.f32 %v7876_v51, %v7875_v35  ;;  %v7878_v37 = vpop.f32.mrb[22].mxu0 }
 0x1c1   : > { %v7879_v39 = vpop.f32.mrb[23].mxu0 }
 0x1c2   : > { %v10390_v40 = vadd.f32 %v7879_v39, %v7878_v37 }
 0x1c3   : > { %v7969_v42 = vpop.f32.mrb[20].mxu1 }
 0x1c4   : > { %v7970_v44 = vpop.f32.mrb[21].mxu1 }
 0x1c5   : > { %v10392_v50 = vadd.f32 %v7970_v44, %v7969_v42  ;;  %v7972_v55 = vpop.f32.mrb[22].mxu1 }
 0x1c6   : > { %v7973_v58 = vpop.f32.mrb[23].mxu1 }
 0x1c7   : > { %v10394_v60 = vadd.f32 %v7973_v58, %v7972_v55 }
 0x1cb   : > { %v7881_v61 = vpop.f32.mrb[24].mxu0 }
 0x1cc   : > { %v7882_v62 = vpop.f32.mrb[25].mxu0 }
 0x1cd   : > { %v10396_v0 = vadd.f32 %v7882_v62, %v7881_v61  ;;  %v7884_v1 = vpop.f32.mrb[26].mxu0 }
 0x1ce   : > { %v7885_v2 = vpop.f32.mrb[27].mxu0 }
 0x1cf   : > { %v10398_v3 = vadd.f32 %v7885_v2, %v7884_v1 }
 0x1d0   : > { %v7975_v5 = vpop.f32.mrb[24].mxu1 }
 0x1d1   : > { %v7976_v6 = vpop.f32.mrb[25].mxu1 }
 0x1d2   : > { %v10400_v8 = vadd.f32 %v7976_v6, %v7975_v5  ;;  %v7978_v9 = vpop.f32.mrb[26].mxu1 }
 0x1d3   : > { %v7979_v11 = vpop.f32.mrb[27].mxu1 }
 0x1d4   : > { %v10402_v12 = vadd.f32 %v7979_v11, %v7978_v9 }
 0x1d8   : > { %v7887_v13 = vpop.f32.mrb[28].mxu0 }
 0x1d9   : > { %v7888_v14 = vpop.f32.mrb[29].mxu0 }
 0x1da   : > { %v10404_v16 = vadd.f32 %v7888_v14, %v7887_v13  ;;  %v7890_v48 = vpop.f32.mrb[30].mxu0 }
 0x1db   : > { %v7891_v18 = vpop.f32.mrb[31].mxu0 }
 0x1dc   : > { %v10406_v19 = vadd.f32 %v7891_v18, %v7890_v48 }
 0x1dd   : > { %v7981_v20 = vpop.f32.mrb[28].mxu1 }
 0x1de   : > { %v7982_v23 = vpop.f32.mrb[29].mxu1 }
 0x1df   : > { %v10408_v24 = vadd.f32 %v7982_v23, %v7981_v20  ;;  %v7984_v27 = vpop.f32.mrb[30].mxu1 }
 0x1e0   : > { %v7985_v28 = vpop.f32.mrb[31].mxu1 }
 0x1e1   : > { %v10410_v57 = vadd.f32 %v7985_v28, %v7984_v27 }
 0x1e4   : > { %v7893_v30 = vpop.f32.mrb[32].mxu0 }
 0x1e5   : > { %v7894_v31 = vpop.f32.mrb[33].mxu0 }
 0x1e6   : > { %v10412_v32 = vadd.f32 %v7894_v31, %v7893_v30  ;;  %v7896_v22 = vpop.f32.mrb[34].mxu0 }
 0x1e7   : > { %v7897_v34 = vpop.f32.mrb[35].mxu0 }
 0x1e8   : > { %v10414_v45 = vadd.f32 %v7897_v34, %v7896_v22 }
 0x1e9   : > { %v7987_v35 = vpop.f32.mrb[32].mxu1 }
 0x1ea   : > { %v7988_v51 = vpop.f32.mrb[33].mxu1 }
 0x1eb   : > { %v10416_v37 = vadd.f32 %v7988_v51, %v7987_v35  ;;  %v7990_v39 = vpop.f32.mrb[34].mxu1 }
 0x1ec   : > { %v7991_v42 = vpop.f32.mrb[35].mxu1 }
 0x1ed   : > { %v10418_v44 = vadd.f32 %v7991_v42, %v7990_v39 }
 0x1f2   : > { %v7899_v55 = vpop.f32.mrb[36].mxu0 }
 0x1f3   : > { %v7900_v58 = vpop.f32.mrb[37].mxu0 }
 0x1f4   : > { %v7901_v61 = vadd.f32 %v7900_v58, %v7899_v55  ;;  %v7902_v62 = vpop.f32.mrb[38].mxu0 }
 0x1f5   : > { %v7903_v1 = vpop.f32.mrb[39].mxu0 }
 0x1f6   : > { %v7904_v2 = vadd.f32 %v7903_v1, %v7902_v62  ;;  %v7993_v5 = vpop.f32.mrb[36].mxu1 }
 0x1f7   : > { %v7994_v6 = vpop.f32.mrb[37].mxu1 }
 0x1f8   : > { %v7995_v9 = vadd.f32 %v7994_v6, %v7993_v5  ;;  %v7996_v11 = vpop.f32.mrb[38].mxu1 }
 0x1f9   : > { %v7997_v13 = vpop.f32.mrb[39].mxu1 }
 0x1fa   : > { %v7998_v14 = vadd.f32 %v7997_v13, %v7996_v11 }
 0x1fb   : > { %v8369_v48 = vpop.f32.mrb[40].mxu0 }
 0x1fc   : > { %v1303_v18 = vadd.f32 %v8369_v48, %v10355_v38  ;;  %v1294_v20 = vpop.f32.mrb[41].mxu0 }
 0x1fd   : > { %v1295_v23 = vadd.f32 %v10347_v46, %v1294_v20  ;;  %v8370_v27 = vpop.f32.mrb[42].mxu0 }
 0x1fe   : > { %v10423_v28 = vadd.f32 %v10359_v47, %v1303_v18  ;;  %v1306_v30 = vadd.f32 %v8370_v27, %v10357_v43  ;;  %v1297_v31 = vpop.f32.mrb[43].mxu0 }
 0x1ff   : > { %v8568_v22 = vadd.f32 %v10351_v33, %v1295_v23  ;;  %v1298_v34 = vadd.f32 %v10349_v54, %v1297_v31 }
 0x200   : > { %v10429_v35 = vadd.f32 %v10361_v56, %v1306_v30 }
 0x201   : > { %v8588_v51 = vadd.f32 %v10353_v53, %v1298_v34 }
 0x207   : > { %v8373_v38 = vpop.f32.mrb[44].mxu0 }
 0x208   : > { %v1319_v39 = vadd.f32 %v8373_v38, %v10371_v15  ;;  %v1310_v46 = vpop.f32.mrb[45].mxu0 }
 0x209   : > { %v1311_v42 = vadd.f32 %v10363_v63, %v1310_v46  ;;  %v8374_v47 = vpop.f32.mrb[46].mxu0 }
 0x20a   : > { %v10435_v55 = vadd.f32 %v10375_v21, %v1319_v39  ;;  %v1322_v43 = vadd.f32 %v8374_v47, %v10373_v17  ;;  %v1313_v33 = vpop.f32.mrb[47].mxu0 }
 0x20b   : > { %v10439_v54 = vadd.f32 %v10367_v7, %v1311_v42  ;;  %v1314_v56 = vadd.f32 %v10365_v4, %v1313_v33 }
 0x20c   : > { %v10443_v53 = vadd.f32 %v10377_v26, %v1322_v43 }
 0x20d   : > { %v10446_v15 = vadd.f32 %v10369_v10, %v1314_v56 }
 0x212   : > { %v8377_v58 = vpop.f32.mrb[48].mxu0 }
 0x213   : > { %v1335_v63 = vadd.f32 %v8377_v58, %v10388_v36  ;;  %v1326_v62 = vpop.f32.mrb[49].mxu0 }
 0x214   : > { %v1327_v21 = vadd.f32 %v10380_v29, %v1326_v62  ;;  %v8378_v1 = vpop.f32.mrb[50].mxu0 }
 0x215   : > { %v10451_v17 = vadd.f32 %v10392_v50, %v1335_v63  ;;  %v1338_v7 = vadd.f32 %v8378_v1, %v10390_v40  ;;  %v1329_v5 = vpop.f32.mrb[51].mxu0 }
 0x216   : > { %v10455_v4 = vadd.f32 %v10384_v49, %v1327_v21  ;;  %v1330_v26 = vadd.f32 %v10382_v41, %v1329_v5 }
 0x217   : > { %v10459_v10 = vadd.f32 %v10394_v60, %v1338_v7 }
 0x218   : > { %v10462_v36 = vadd.f32 %v10386_v59, %v1330_v26 }
 0x21c   : > { %v8381_v6 = vpop.f32.mrb[52].mxu0 }
 0x21d   : > { %v1351_v29 = vadd.f32 %v8381_v6, %v10404_v16  ;;  %v1342_v11 = vpop.f32.mrb[53].mxu0 }
 0x21e   : > { %v1343_v50 = vadd.f32 %v10396_v0, %v1342_v11  ;;  %v8382_v13 = vpop.f32.mrb[54].mxu0 }
 0x21f   : > { %v1354_v40 = vadd.f32 %v8382_v13, %v10406_v19  ;;  %v1345_v48 = vpop.f32.mrb[55].mxu0  ;;  %v10468_v49 = vadd.f32 %v10408_v24, %v1351_v29 }
 0x220   : > { %v10471_v41 = vadd.f32 %v10400_v8, %v1343_v50  ;;  %v1346_v60 = vadd.f32 %v10398_v3, %v1345_v48 }
 0x221   : > { %v10475_v59 = vadd.f32 %v10410_v57, %v1354_v40 }
 0x222   : > { %v10478_v16 = vadd.f32 %v10402_v12, %v1346_v60 }
 0x228   : > { %v8385_v18 = vpop.f32.mrb[56].mxu0 }
 0x229   : > { %v1367_v0 = vadd.f32 %v8385_v18, %v7901_v61  ;;  %v1358_v20 = vpop.f32.mrb[57].mxu0 }
 0x22a   : > { %v1359_v19 = vadd.f32 %v10412_v32, %v1358_v20  ;;  %v8386_v23 = vpop.f32.mrb[58].mxu0  ;;  %v3924_v20 = vld [vmem:[#allocation3] sm:$0xf] }
 0x22b   : > { %v1370_v27 = vadd.f32 %v8386_v23, %v7904_v2  ;;  %v1361_v24 = vpop.f32.mrb[59].mxu0  ;;  %v10481_v30 = vadd.f32 %v7995_v9, %v1367_v0 }
 0x22c   : > { %v1362_v8 = vadd.f32 %v10414_v45, %v1361_v24  ;;  %v10485_v3 = vadd.f32 %v10416_v37, %v1359_v19  ;;  %v10495_v45 = vld [vmem:[%s11507_s2] ss:$0 sm:$0xff] }
 0x22d   : > { %v10487_v57 = vadd.f32 %v7998_v14, %v1370_v27 }
 0x22e   : > { %v10490_v12 = vadd.f32 %v10418_v44, %v1362_v8 }
 0x230   : > { %v8033_v31 = vpop.f32.mrb[60].mxu0 }
 0x231   : > { %v8034_v61 = vpop.f32.mrb[61].mxu0  ;;  %v8441_v34 = vpop.f32.mrb[40].mxu1 }
 0x232   : > { %v8035_v38 = vadd.f32 %v8034_v61, %v8033_v31  ;;  %v8036_v32 = vpop.f32.mrb[62].mxu0  ;;  %v3452_v39 = vpop.f32.mrb[41].mxu1 }
 0x233   : > { %v8037_v2 = vpop.f32.mrb[63].mxu0  ;;  %v8442_v46 = vpop.f32.mrb[42].mxu1 }
 0x234   : > { %v8571_v9 = vadd.f32 %v8568_v22, %v8035_v38  ;;  %v8038_v42 = vadd.f32 %v8037_v2, %v8036_v32  ;;  %v3455_v47 = vpop.f32.mrb[43].mxu1 }
 0x236   : > { %v8591_v37 = vadd.f32 %v8588_v51, %v8038_v42  ;;  %v8574_v14 = vadd.f32 %v8571_v9, %v3452_v39 }
 0x238   : > { %v8039_v44 = vpop.f32.mrb[64].mxu0  ;;  %v3618_v43 = vadd.f32 %v8574_v14, %v10495_v45  ;;  %v8594_v33 = vadd.f32 %v8591_v37, %v3455_v47 }
 0x239   : > { %v8040_v56 = vpop.f32.mrb[65].mxu0  ;;  %v10498_v58 = vpop.f32.mrb[44].mxu1 }
 0x23a   : > { %v8041_v63 = vadd.f32 %v8040_v56, %v8039_v44  ;;  %v8042_v62 = vpop.f32.mrb[66].mxu0  ;;  %v3638_v21 = vmax.f32 %v3618_v43, 0.0  ;;  %v3619_v22 = vadd.f32 %v8594_v33, %v10495_v45  ;;  %v3468_v1 = vpop.f32.mrb[45].mxu1  ;;  %v3930_v43 = vld [vmem:[#allocation3 + $0x8] sm:$0x1] }
 0x23b   : > { %v8043_v7 = vpop.f32.mrb[67].mxu0  ;;  %v10501_v5 = vpop.f32.mrb[46].mxu1 }
 0x23c   : > { %v8561_v26 = vadd.f32 %v10423_v28, %v8041_v63  ;;  %v8044_v51 = vadd.f32 %v8043_v7, %v8042_v62  ;;  %v7745_v6 = vpack.c.bf16 %v3638_v21, %v3638_v21  ;;  %v3639_v29 = vmax.f32 %v3619_v22, 0.0  ;;  %v3471_v11 = vpop.f32.mrb[47].mxu1 }
 0x23e   : > { %v8564_v50 = vadd.f32 %v8561_v26, %v8441_v34  ;;  %v8581_v13 = vadd.f32 %v10429_v35, %v8044_v51  ;;  %v3722_v40 = vshrl.u32 %v7745_v6, 16  ;;  %v7746_v48 = vpack.c.bf16 %v3639_v29, %v3639_v29 }
 0x23f   : > { %v3725_v0 = vshll.u32 %v7745_v6, 16 }
 0x240   : > { %v3620_v60 = vadd.f32 %v8564_v50, %v10495_v45  ;;  %v3724_v18 = vrot.slane %v3722_v40, 7  ;;  %v8584_v19 = vadd.f32 %v8581_v13, %v8442_v46  ;;  %v8045_v28 = vpop.f32.mrb[68].mxu0  ;;  %v3730_v27 = vshrl.u32 %v7746_v48, 16 }
 0x241   : > { %v8046_v24 = vpop.f32.mrb[69].mxu0  ;;  %v10511_v35 = vpop.f32.mrb[48].mxu1  ;;  %v3733_v2 = vshll.u32 %v7746_v48, 16 }
 0x242   : > { %v3640_v8 = vmax.f32 %v3620_v60, 0.0  ;;  %v3727_v31 = vor.u32 %v3725_v0, %v3724_v18  ;;  %v3621_v61 = vadd.f32 %v8584_v19, %v10495_v45  ;;  %v8048_v34 = vpop.f32.mrb[70].mxu0  ;;  %v10514_v38 = vpop.f32.mrb[49].mxu1  ;;  %v3732_v39 = vrot.slane %v3730_v27, 7  ;;  %v3933_v0 = vld [vmem:[#allocation3 + $0xc] sm:$0xf] }
 0x243   : > { %v8047_v46 = vadd.f32 %v8046_v24, %v8045_v28  ;;  %v8049_v9 = vpop.f32.mrb[71].mxu0  ;;  %v10522_v42 = vpop.f32.mrb[50].mxu1  ;;  %v3728_v63 = vrot.slane %v3724_v18, 4 }
 0x244   : > { %v7747_v47 = vpack.c.bf16 %v3640_v8, %v3640_v8  ;;  %v3925_v37 = vsel %vm10507_vm10, %v3727_v31, %v3924_v20  ;;  %v3641_v14 = vmax.f32 %v3621_v61, 0.0  ;;  %v8050_v33 = vadd.f32 %v8049_v9, %v8048_v34  ;;  %v10532_v56 = vpop.f32.mrb[51].mxu1  ;;  %v3937_v61 = vld [vmem:[#allocation3 + $0x14] sm:$0x1] }
 0x245   : > { %3926 = vst [vmem:[#allocation3] sm:$0xf] %v3925_v37  ;;  %v3735_v62 = vor.u32 %v3733_v2, %v3732_v39  ;;  %v3737_v21 = vrot.slane %v3732_v39, 4  ;;  %v8611_v22 = vadd.f32 %v10439_v54, %v8047_v46 }
 0x246   : > { %v3739_v7 = vshrl.u32 %v7747_v47, 16  ;;  %v7748_v26 = vpack.c.bf16 %v3641_v14, %v3641_v14  ;;  %v8631_v51 = vadd.f32 %v10446_v15, %v8050_v33  ;;  %v3742_v40 = vshll.u32 %v7747_v47, 16 }
 0x247   : > { %v3736_v6 = vsel %vm10528_vm13, %v3728_v63, %v3735_v62  ;;  %v3931_v29 = vsel %vm10518_vm12, %v3737_v21, %v3930_v43  ;;  %v8614_v50 = vadd.f32 %v8611_v22, %v3468_v1 }
 0x248   : > { %v3741_v13 = vrot.slane %v3739_v7, 7  ;;  %v3747_v48 = vshrl.u32 %v7748_v26, 16  ;;  %3927 = vst [vmem:[#allocation3 + $0x4] sm:$0xf] %v3736_v6  ;;  %3932 = vst [vmem:[#allocation3 + $0x8] sm:$0x1] %v3931_v29  ;;  %v8634_v60 = vadd.f32 %v8631_v51, %v3471_v11 }
 0x249   : > { %v8051_v18 = vpop.f32.mrb[72].mxu0  ;;  %v3622_v54 = vadd.f32 %v8614_v50, %v10495_v45  ;;  %v10541_v19 = vpop.f32.mrb[52].mxu1  ;;  %v3750_v27 = vshll.u32 %v7748_v26, 16 }
 0x24a   : > { %v8052_v20 = vpop.f32.mrb[73].mxu0  ;;  %v3744_v15 = vor.u32 %v3742_v40, %v3741_v13  ;;  %v3749_v28 = vrot.slane %v3747_v48, 7  ;;  %v3623_v24 = vadd.f32 %v8634_v60, %v10495_v45  ;;  %v10544_v1 = vpop.f32.mrb[53].mxu1  ;;  %v3745_v31 = vrot.slane %v3741_v13, 4 }
 0x24b   : > { %v8054_v8 = vpop.f32.mrb[74].mxu0  ;;  %v3642_v34 = vmax.f32 %v3622_v54, 0.0  ;;  %v8053_v39 = vadd.f32 %v8052_v20, %v8051_v18  ;;  %v10546_v2 = vpop.f32.mrb[54].mxu1 }
 0x24c   : > { %v8055_v11 = vpop.f32.mrb[75].mxu0  ;;  %v3934_v46 = vsel %vm10507_vm10, %v3744_v15, %v3933_v0  ;;  %v3996_v9 = vld [vmem:[#allocation3] sm:$0x1]  ;;  %v3752_v47 = vor.u32 %v3750_v27, %v3749_v28  ;;  %v3754_v37 = vrot.slane %v3749_v28, 4  ;;  %v3643_v14 = vmax.f32 %v3623_v24, 0.0  ;;  %v10550_v43 = vpop.f32.mrb[55].mxu1 }
 0x24d   : > { %3935 = vst [vmem:[#allocation3 + $0xc] sm:$0xf] %v3934_v46  ;;  %v3997_v63 = vsel %vm10518_vm12, 0, %v3996_v9  ;;  %v7749_v62 = vpack.c.bf16 %v3642_v34, %v3642_v34  ;;  %v8601_v21 = vadd.f32 %v10435_v55, %v8053_v39  ;;  %v8056_v22 = vadd.f32 %v8055_v11, %v8054_v8  ;;  %v3940_v28 = vld [vmem:[#allocation3 + $0x18] sm:$0xf] }
 0x24e   : > { %3998 = vst [vmem:[#allocation3] sm:$0x1] %v3997_v63  ;;  %v3753_v7 = vsel %vm10528_vm13, %v3745_v31, %v3752_v47  ;;  %v3938_v26 = vsel %vm10518_vm12, %v3754_v37, %v3937_v61  ;;  %v7750_v51 = vpack.c.bf16 %v3643_v14, %v3643_v14  ;;  %v3944_v34 = vld [vmem:[#allocation3 + $0x20] sm:$0x1] }
 0x24f   : > { %3936 = vst [vmem:[#allocation3 + $0x10] sm:$0xf] %v3753_v7  ;;  %3939 = vst [vmem:[#allocation3 + $0x14] sm:$0x1] %v3938_v26  ;;  %v4027_v6 = vld [vmem:[#allocation3 + $0x8] sm:$0x1]  ;;  %v8604_v50 = vadd.f32 %v8601_v21, %v10498_v58  ;;  %v8621_v13 = vadd.f32 %v10443_v53, %v8056_v22 }
 0x250   : > { %v3756_v29 = vshrl.u32 %v7749_v62, 16  ;;  %v4028_v55 = vsel %vm10554_vm14, 0, %v4027_v6  ;;  %v3764_v40 = vshrl.u32 %v7750_v51, 16  ;;  %v8057_v48 = vpop.f32.mrb[76].mxu0  ;;  %v3759_v18 = vshll.u32 %v7749_v62, 16 }
 0x251   : > { %4029 = vst [vmem:[#allocation3 + $0x8] sm:$0x1] %v4028_v55  ;;  %v3624_v0 = vadd.f32 %v8604_v50, %v10495_v45  ;;  %v8624_v54 = vadd.f32 %v8621_v13, %v10501_v5  ;;  %v8058_v20 = vpop.f32.mrb[77].mxu0  ;;  %v10571_v15 = vpop.f32.mrb[56].mxu1  ;;  %v3767_v58 = vshll.u32 %v7750_v51, 16 }
 0x252   : > { %v3758_v60 = vrot.slane %v3756_v29, 7  ;;  %v3766_v27 = vrot.slane %v3764_v40, 7  ;;  %v8059_v24 = vadd.f32 %v8058_v20, %v8057_v48  ;;  %v8060_v53 = vpop.f32.mrb[78].mxu0  ;;  %v10573_v8 = vpop.f32.mrb[57].mxu1 }
 0x253   : > { %v3644_v39 = vmax.f32 %v3624_v0, 0.0  ;;  %v3625_v11 = vadd.f32 %v8624_v54, %v10495_v45  ;;  %v8061_v46 = vpop.f32.mrb[79].mxu0  ;;  %v10576_v9 = vpop.f32.mrb[58].mxu1 }
 0x254   : > { %v3761_v31 = vor.u32 %v3759_v18, %v3758_v60  ;;  %v3762_v61 = vrot.slane %v3758_v60, 4  ;;  %v3999_v5 = vld [vmem:[#allocation3 + $0xc] sm:$0x1]  ;;  %v3769_v47 = vor.u32 %v3767_v58, %v3766_v27  ;;  %v3771_v37 = vrot.slane %v3766_v27, 4  ;;  %v10579_v62 = vpop.f32.mrb[59].mxu1 }
 0x255   : > { %v8651_v14 = vadd.f32 %v10455_v4, %v8059_v24  ;;  %v8062_v63 = vadd.f32 %v8061_v46, %v8060_v53  ;;  %v4000_v21 = vsel %vm10518_vm12, 0, %v3999_v5  ;;  %v7751_v7 = vpack.c.bf16 %v3644_v39, %v3644_v39  ;;  %v3951_v39 = vld [vmem:[#allocation3 + $0x2c] sm:$0x1]  ;;  %v4061_v44 = vld [vmem:[#allocation3] sm:$0xf] (!%p7548_p5) }
 0x256   : > { %v3941_v22 = vsel %vm10507_vm10, %v3761_v31, %v3940_v28  ;;  %v3645_v26 = vmax.f32 %v3625_v11, 0.0  ;;  %4001 = vst [vmem:[#allocation3 + $0xc] sm:$0x1] %v4000_v21  ;;  %v4030_v51 = vld [vmem:[#allocation3 + $0x14] sm:$0x1]  ;;  %v3770_v6 = vsel %vm10528_vm13, %v3762_v61, %v3769_v47  ;;  %v3945_v4 = vsel %vm10518_vm12, %v3771_v37, %v3944_v34 }
 0x257   : > { %3942 = vst [vmem:[#allocation3 + $0x18] sm:$0xf] %v3941_v22  ;;  %v8654_v29 = vadd.f32 %v8651_v14, %v10514_v38  ;;  %v8671_v50 = vadd.f32 %v10462_v36, %v8062_v63  ;;  %v4031_v13 = vsel %vm10554_vm14, 0, %v4030_v51  ;;  %3943 = vst [vmem:[#allocation3 + $0x1c] sm:$0xf] %v3770_v6  ;;  %v3773_v55 = vshrl.u32 %v7751_v7, 16 }
 0x258   : > { %3946 = vst [vmem:[#allocation3 + $0x20] sm:$0x1] %v3945_v4  ;;  %v7752_v40 = vpack.c.bf16 %v3645_v26, %v3645_v26  ;;  %4032 = vst [vmem:[#allocation3 + $0x14] sm:$0x1] %v4031_v13  ;;  %v8063_v18 = vpop.f32.mrb[80].mxu0  ;;  %v3776_v54 = vshll.u32 %v7751_v7, 16 }
 0x259   : > { %v3626_v48 = vadd.f32 %v8654_v29, %v10495_v45  ;;  %v8674_v60 = vadd.f32 %v8671_v50, %v10532_v56  ;;  %v3775_v0 = vrot.slane %v3773_v55, 7  ;;  %v8064_v28 = vpop.f32.mrb[81].mxu0  ;;  %v3947_v38 = vld [vmem:[#allocation3 + $0x24] sm:$0xf] }
 0x25a   : > { %v3781_v20 = vshrl.u32 %v7752_v40, 16  ;;  %v8065_v58 = vadd.f32 %v8064_v28, %v8063_v18  ;;  %v8066_v24 = vpop.f32.mrb[82].mxu0  ;;  %v3784_v61 = vshll.u32 %v7752_v40, 16 }
 0x25b   : > { %v3646_v27 = vmax.f32 %v3626_v48, 0.0  ;;  %v3627_v36 = vadd.f32 %v8674_v60, %v10495_v45  ;;  %v3778_v53 = vor.u32 %v3776_v54, %v3775_v0  ;;  %v8067_v34 = vpop.f32.mrb[83].mxu0  ;;  %v3779_v37 = vrot.slane %v3775_v0, 4  ;;  %v3954_v60 = vld [vmem:[#allocation3 + $0x30] sm:$0xf] }
 0x25c   : > { %v3783_v31 = vrot.slane %v3781_v20, 7  ;;  %v8641_v56 = vadd.f32 %v10451_v17, %v8065_v58  ;;  %v8068_v5 = vadd.f32 %v8067_v34, %v8066_v24 }
 0x25d   : > { %v7753_v11 = vpack.c.bf16 %v3646_v27, %v3646_v27  ;;  %v3647_v46 = vmax.f32 %v3627_v36, 0.0  ;;  %v3948_v14 = vsel %vm10507_vm10, %v3778_v53, %v3947_v38  ;;  %v3958_v36 = vld [vmem:[#allocation3 + $0x38] sm:$0x1] }
 0x25e   : > { %v4002_v47 = vld [vmem:[#allocation3 + $0x18] sm:$0x1]  ;;  %v3786_v63 = vor.u32 %v3784_v61, %v3783_v31  ;;  %v3788_v21 = vrot.slane %v3783_v31, 4  ;;  %3949 = vst [vmem:[#allocation3 + $0x24] sm:$0xf] %v3948_v14  ;;  %v8644_v29 = vadd.f32 %v8641_v56, %v10511_v35  ;;  %v8661_v40 = vadd.f32 %v10459_v10, %v8068_v5 }
 0x25f   : > { %v4003_v22 = vsel %vm10518_vm12, 0, %v4002_v47  ;;  %v4033_v7 = vld [vmem:[#allocation3 + $0x20] sm:$0x1]  ;;  %v3790_v26 = vshrl.u32 %v7753_v11, 16  ;;  %v7754_v51 = vpack.c.bf16 %v3647_v46, %v3647_v46  ;;  %v3793_v13 = vshll.u32 %v7753_v11, 16 }
 0x260   : > { %4004 = vst [vmem:[#allocation3 + $0x18] sm:$0x1] %v4003_v22  ;;  %v4034_v6 = vsel %vm10554_vm14, 0, %v4033_v7  ;;  %v3787_v17 = vsel %vm10528_vm13, %v3779_v37, %v3786_v63  ;;  %v3952_v4 = vsel %vm10518_vm12, %v3788_v21, %v3951_v39  ;;  %v8069_v48 = vpop.f32.mrb[84].mxu0  ;;  %v3628_v18 = vadd.f32 %v8644_v29, %v10495_v45 }
 0x261   : > { %4035 = vst [vmem:[#allocation3 + $0x20] sm:$0x1] %v4034_v6  ;;  %3950 = vst [vmem:[#allocation3 + $0x28] sm:$0xf] %v3787_v17  ;;  %v3792_v50 = vrot.slane %v3790_v26, 7  ;;  %v3798_v55 = vshrl.u32 %v7754_v51, 16  ;;  %v8664_v38 = vadd.f32 %v8661_v40, %v10522_v42 }
 0x262   : > { %3953 = vst [vmem:[#allocation3 + $0x2c] sm:$0x1] %v3952_v4  ;;  %v8070_v0 = vpop.f32.mrb[85].mxu0  ;;  %v3801_v28 = vshll.u32 %v7754_v51, 16  ;;  %v3648_v58 = vmax.f32 %v3628_v18, 0.0 }
 0x263   : > { %v3795_v54 = vor.u32 %v3793_v13, %v3792_v50  ;;  %v3800_v20 = vrot.slane %v3798_v55, 7  ;;  %v8072_v27 = vpop.f32.mrb[86].mxu0  ;;  %v3796_v35 = vrot.slane %v3792_v50, 4  ;;  %v8071_v24 = vadd.f32 %v8070_v0, %v8069_v48  ;;  %v3961_v50 = vld [vmem:[#allocation3 + $0x3c] sm:$0xf] }
 0x264   : > { %v8073_v53 = vpop.f32.mrb[87].mxu0  ;;  %v3629_v34 = vadd.f32 %v8664_v38, %v10495_v45  ;;  %v7755_v11 = vpack.c.bf16 %v3648_v58, %v3648_v58 }
 0x265   : > { %v3955_v31 = vsel %vm10507_vm10, %v3795_v54, %v3954_v60  ;;  %v3803_v10 = vor.u32 %v3801_v28, %v3800_v20  ;;  %v3805_v61 = vrot.slane %v3800_v20, 4  ;;  %v4005_v39 = vld [vmem:[#allocation3 + $0x24] sm:$0x1]  ;;  %v8691_v46 = vadd.f32 %v10471_v41, %v8071_v24 }
 0x266   : > { %3956 = vst [vmem:[#allocation3 + $0x30] sm:$0xf] %v3955_v31  ;;  %v8074_v56 = vadd.f32 %v8073_v53, %v8072_v27  ;;  %v4006_v42 = vsel %vm10518_vm12, 0, %v4005_v39  ;;  %v3649_v37 = vmax.f32 %v3629_v34, 0.0  ;;  %v3807_v63 = vshrl.u32 %v7755_v11, 16 }
 0x267   : > { %v3804_v5 = vsel %vm10528_vm13, %v3796_v35, %v3803_v10  ;;  %v3959_v47 = vsel %vm10518_vm12, %v3805_v61, %v3958_v36  ;;  %4007 = vst [vmem:[#allocation3 + $0x24] sm:$0x1] %v4006_v42  ;;  %v8694_v21 = vadd.f32 %v8691_v46, %v10544_v1  ;;  %v3810_v6 = vshll.u32 %v7755_v11, 16  ;;  %v3965_v35 = vld [vmem:[#allocation3 + $0x44] sm:$0x1] }
 0x268   : > { %3957 = vst [vmem:[#allocation3 + $0x34] sm:$0xf] %v3804_v5  ;;  %3960 = vst [vmem:[#allocation3 + $0x38] sm:$0x1] %v3959_v47  ;;  %v8711_v41 = vadd.f32 %v10478_v16, %v8074_v56  ;;  %v7756_v7 = vpack.c.bf16 %v3649_v37, %v3649_v37  ;;  %v8075_v26 = vpop.f32.mrb[88].mxu0  ;;  %v3809_v51 = vrot.slane %v3807_v63, 7 }
 0x269   : > { %v4036_v14 = vld [vmem:[#allocation3 + $0x2c] sm:$0x1]  ;;  %v3630_v17 = vadd.f32 %v8694_v21, %v10495_v45  ;;  %v8076_v29 = vpop.f32.mrb[89].mxu0 }
 0x26a   : > { %v4037_v22 = vsel %vm10554_vm14, 0, %v4036_v14  ;;  %v8714_v4 = vadd.f32 %v8711_v41, %v10550_v43  ;;  %v3815_v13 = vshrl.u32 %v7756_v7, 16  ;;  %v8077_v55 = vadd.f32 %v8076_v29, %v8075_v26  ;;  %v8078_v40 = vpop.f32.mrb[90].mxu0  ;;  %v3968_v14 = vld [vmem:[#allocation3 + $0x48] sm:$0xf] }
 0x26b   : > { %4038 = vst [vmem:[#allocation3 + $0x2c] sm:$0x1] %v4037_v22  ;;  %v3812_v1 = vor.u32 %v3810_v6, %v3809_v51  ;;  %v3818_v48 = vshll.u32 %v7756_v7, 16  ;;  %v3650_v16 = vmax.f32 %v3630_v17, 0.0  ;;  %v8079_v18 = vpop.f32.mrb[91].mxu0  ;;  %v3813_v54 = vrot.slane %v3809_v51, 4 }
 0x26c   : > { %v3631_v60 = vadd.f32 %v8714_v4, %v10495_v45  ;;  %v3817_v20 = vrot.slane %v3815_v13, 7  ;;  %v8681_v28 = vadd.f32 %v10468_v49, %v8077_v55  ;;  %v8080_v38 = vadd.f32 %v8079_v18, %v8078_v40  ;;  %v3972_v17 = vld [vmem:[#allocation3 + $0x50] sm:$0x1] }
 0x26d   : > { %v4008_v0 = vld [vmem:[#allocation3 + $0x30] sm:$0x1]  ;;  %v3962_v27 = vsel %vm10507_vm10, %v3812_v1, %v3961_v50  ;;  %v7757_v36 = vpack.c.bf16 %v3650_v16, %v3650_v16 }
 0x26e   : > { %v4009_v43 = vsel %vm10518_vm12, 0, %v4008_v0  ;;  %v3651_v58 = vmax.f32 %v3631_v60, 0.0  ;;  %3963 = vst [vmem:[#allocation3 + $0x3c] sm:$0xf] %v3962_v27  ;;  %v3820_v53 = vor.u32 %v3818_v48, %v3817_v20  ;;  %v3822_v31 = vrot.slane %v3817_v20, 4 }
 0x26f   : > { %4010 = vst [vmem:[#allocation3 + $0x30] sm:$0x1] %v4009_v43  ;;  %v4039_v24 = vld [vmem:[#allocation3 + $0x38] sm:$0x1]  ;;  %v8684_v10 = vadd.f32 %v8681_v28, %v10541_v19  ;;  %v8701_v61 = vadd.f32 %v10475_v59, %v8080_v38  ;;  %v3824_v34 = vshrl.u32 %v7757_v36, 16  ;;  %v3827_v19 = vshll.u32 %v7757_v36, 16 }
 0x270   : > { %v4040_v49 = vsel %vm10554_vm14, 0, %v4039_v24  ;;  %v7758_v39 = vpack.c.bf16 %v3651_v58, %v3651_v58  ;;  %v3821_v11 = vsel %vm10528_vm13, %v3813_v54, %v3820_v53  ;;  %v3966_v46 = vsel %vm10518_vm12, %v3822_v31, %v3965_v35  ;;  %v8081_v5 = vpop.f32.mrb[92].mxu0  ;;  %v3975_v58 = vld [vmem:[#allocation3 + $0x54] sm:$0xf] }
 0x271   : > { %4041 = vst [vmem:[#allocation3 + $0x38] sm:$0x1] %v4040_v49  ;;  %v3632_v56 = vadd.f32 %v8684_v10, %v10495_v45  ;;  %v8704_v42 = vadd.f32 %v8701_v61, %v10546_v2  ;;  %3964 = vst [vmem:[#allocation3 + $0x40] sm:$0xf] %v3821_v11  ;;  %v3826_v59 = vrot.slane %v3824_v34, 7  ;;  %v8082_v37 = vpop.f32.mrb[93].mxu0 }
 0x272   : > { %3967 = vst [vmem:[#allocation3 + $0x44] sm:$0x1] %v3966_v46  ;;  %v3832_v47 = vshrl.u32 %v7758_v39, 16  ;;  %v8083_v41 = vadd.f32 %v8082_v37, %v8081_v5  ;;  %v8084_v22 = vpop.f32.mrb[94].mxu0  ;;  %v3835_v51 = vshll.u32 %v7758_v39, 16 }
 0x273   : > { %v3652_v63 = vmax.f32 %v3632_v56, 0.0  ;;  %v3633_v21 = vadd.f32 %v8704_v42, %v10495_v45  ;;  %v3829_v7 = vor.u32 %v3827_v19, %v3826_v59  ;;  %v8085_v6 = vpop.f32.mrb[95].mxu0  ;;  %v3830_v55 = vrot.slane %v3826_v59, 4  ;;  %v3979_v39 = vld [vmem:[#allocation3 + $0x5c] sm:$0x1] }
 0x274   : > { %v3834_v26 = vrot.slane %v3832_v47, 7  ;;  %v8731_v29 = vadd.f32 %v10485_v3, %v8083_v41  ;;  %v8086_v50 = vadd.f32 %v8085_v6, %v8084_v22 }
 0x275   : > { %v7759_v4 = vpack.c.bf16 %v3652_v63, %v3652_v63  ;;  %v3653_v2 = vmax.f32 %v3633_v21, 0.0  ;;  %v4011_v13 = vld [vmem:[#allocation3 + $0x3c] sm:$0x1]  ;;  %v3969_v40 = vsel %vm10507_vm10, %v3829_v7, %v3968_v14 }
 0x276   : > { %v3837_v1 = vor.u32 %v3835_v51, %v3834_v26  ;;  %v3839_v48 = vrot.slane %v3834_v26, 4  ;;  %v4012_v16 = vsel %vm10518_vm12, 0, %v4011_v13  ;;  %3970 = vst [vmem:[#allocation3 + $0x48] sm:$0xf] %v3969_v40  ;;  %v8734_v54 = vadd.f32 %v8731_v29, %v10573_v8 }
 0x277   : > { %v3841_v60 = vshrl.u32 %v7759_v4, 16  ;;  %v7760_v18 = vpack.c.bf16 %v3653_v2, %v3653_v2  ;;  %4013 = vst [vmem:[#allocation3 + $0x3c] sm:$0x1] %v4012_v16  ;;  %v8751_v20 = vadd.f32 %v10490_v12, %v8086_v50  ;;  %v3844_v43 = vshll.u32 %v7759_v4, 16 }
 0x278   : > { %v3838_v0 = vsel %vm10528_vm13, %v3830_v55, %v3837_v1  ;;  %v3973_v3 = vsel %vm10518_vm12, %v3839_v48, %v3972_v17  ;;  %v8087_v35 = vpop.f32.mrb[96].mxu0  ;;  %v3634_v24 = vadd.f32 %v8734_v54, %v10495_v45 }
 0x279   : > { %v4042_v28 = vld [vmem:[#allocation3 + $0x44] sm:$0x1]  ;;  %3971 = vst [vmem:[#allocation3 + $0x4c] sm:$0xf] %v3838_v0  ;;  %3974 = vst [vmem:[#allocation3 + $0x50] sm:$0x1] %v3973_v3  ;;  %v8754_v53 = vadd.f32 %v8751_v20, %v10579_v62 }
 0x27a   : > { %v3843_v38 = vrot.slane %v3841_v60, 7  ;;  %v3849_v27 = vshrl.u32 %v7760_v18, 16  ;;  %v4043_v36 = vsel %vm10554_vm14, 0, %v4042_v28  ;;  %v8088_v31 = vpop.f32.mrb[97].mxu0  ;;  %v3852_v12 = vshll.u32 %v7760_v18, 16 }
 0x27b   : > { %4044 = vst [vmem:[#allocation3 + $0x44] sm:$0x1] %v4043_v36  ;;  %v8089_v61 = vadd.f32 %v8088_v31, %v8087_v35  ;;  %v8090_v49 = vpop.f32.mrb[98].mxu0  ;;  %v3654_v11 = vmax.f32 %v3634_v24, 0.0  ;;  %v3635_v46 = vadd.f32 %v8754_v53, %v10495_v45  ;;  %v3986_v60 = vld [vmem:[#allocation3 + $0x68] sm:$0x1] }
 0x27c   : > { %v3846_v8 = vor.u32 %v3844_v43, %v3843_v38  ;;  %v3851_v10 = vrot.slane %v3849_v27, 7  ;;  %v3847_v34 = vrot.slane %v3843_v38, 4  ;;  %v8091_v56 = vpop.f32.mrb[99].mxu0  ;;  %v3989_v24 = vld [vmem:[#allocation3 + $0x6c] sm:$0xf] }
 0x27d   : > { %v8721_v62 = vadd.f32 %v10481_v30, %v8089_v61  ;;  %v4014_v19 = vld [vmem:[#allocation3 + $0x48] sm:$0x1]  ;;  %v7761_v47 = vpack.c.bf16 %v3654_v11, %v3654_v11  ;;  %v3655_v37 = vmax.f32 %v3635_v46, 0.0  ;;  %v8092_v14 = vadd.f32 %v8091_v56, %v8090_v49  ;;  %v3993_v49 = vld [vmem:[#allocation3 + $0x74] sm:$0x1] }
 0x27e   : > { %v3976_v42 = vsel %vm10507_vm10, %v3846_v8, %v3975_v58  ;;  %v3854_v5 = vor.u32 %v3852_v12, %v3851_v10  ;;  %v3856_v59 = vrot.slane %v3851_v10, 4  ;;  %v4015_v63 = vsel %vm10518_vm12, 0, %v4014_v19 }
 0x27f   : > { %3977 = vst [vmem:[#allocation3 + $0x54] sm:$0xf] %v3976_v42  ;;  %v8724_v22 = vadd.f32 %v8721_v62, %v10571_v15  ;;  %4016 = vst [vmem:[#allocation3 + $0x48] sm:$0x1] %v4015_v63  ;;  %v3858_v30 = vshrl.u32 %v7761_v47, 16  ;;  %v7762_v26 = vpack.c.bf16 %v3655_v37, %v3655_v37  ;;  %v8741_v51 = vadd.f32 %v10487_v57, %v8092_v14 }
 0x280   : > { %v3855_v21 = vsel %vm10528_vm13, %v3847_v34, %v3854_v5  ;;  %v3980_v41 = vsel %vm10518_vm12, %v3856_v59, %v3979_v39  ;;  %v4045_v7 = vld [vmem:[#allocation3 + $0x50] sm:$0x1]  ;;  %v3861_v2 = vshll.u32 %v7761_v47, 16  ;;  %v3982_v15 = vld [vmem:[#allocation3 + $0x60] sm:$0xf]  ;;  %v4062_v63 = vsel (!%p7548_p5), %vm10507_vm10, 0, %v4061_v44 }
 0x281   : > { %3978 = vst [vmem:[#allocation3 + $0x58] sm:$0xf] %v3855_v21  ;;  %3981 = vst [vmem:[#allocation3 + $0x5c] sm:$0x1] %v3980_v41  ;;  %v4046_v6 = vsel %vm10554_vm14, 0, %v4045_v7  ;;  %v3636_v17 = vadd.f32 %v8724_v22, %v10495_v45  ;;  %v3860_v4 = vrot.slane %v3858_v30, 7  ;;  %v8744_v50 = vadd.f32 %v8741_v51, %v10576_v9 }
 0x282   : > { %4047 = vst [vmem:[#allocation3 + $0x50] sm:$0x1] %v4046_v6  ;;  %v3866_v29 = vshrl.u32 %v7762_v26, 16  ;;  %v3869_v1 = vshll.u32 %v7762_v26, 16  ;;  %v4065_v14 = vld [vmem:[#allocation3 + $0x8] sm:$0x1] (!%p7548_p5) }
 0x283   : > { %v3656_v13 = vmax.f32 %v3636_v17, 0.0  ;;  %v3863_v55 = vor.u32 %v3861_v2, %v3860_v4  ;;  %v3637_v48 = vadd.f32 %v8744_v50, %v10495_v45  ;;  %v3864_v57 = vrot.slane %v3860_v4, 4  ;;  %4063 = vst [vmem:[#allocation3] sm:$0xf] (!%p7548_p5), %v4062_v63 }
 0x284   : > { %v3868_v40 = vrot.slane %v3866_v29, 7  ;;  %v9540_v21 = vmov (!%p7548_p5), 0   ;;  %v4066_v33 = vsel (!%p7548_p5), %vm10518_vm12, 0, %v4065_v14 }
 0x285   : > { %v7763_v18 = vpack.c.bf16 %v3656_v13, %v3656_v13  ;;  %v3983_v3 = vsel %vm10507_vm10, %v3863_v55, %v3982_v15  ;;  %v3657_v38 = vmax.f32 %v3637_v48, 0.0  ;;  %4064 = vst [vmem:[#allocation3 + $0x4] sm:$0xf] (!%p7548_p5), %v9540_v21  ;;  %4067 = vst [vmem:[#allocation3 + $0x8] sm:$0x1] (!%p7548_p5), %v4066_v33 }
 0x286   : > { %v4017_v16 = vld [vmem:[#allocation3 + $0x54] sm:$0x1]  ;;  %v3871_v54 = vor.u32 %v3869_v1, %v3868_v40  ;;  %v3873_v20 = vrot.slane %v3868_v40, 4  ;;  %3984 = vst [vmem:[#allocation3 + $0x60] sm:$0xf] %v3983_v3 }
 0x287   : > { %v4018_v0 = vsel %vm10518_vm12, 0, %v4017_v16  ;;  %v3875_v28 = vshrl.u32 %v7763_v18, 16  ;;  %v3878_v36 = vshll.u32 %v7763_v18, 16  ;;  %v7764_v58 = vpack.c.bf16 %v3657_v38, %v3657_v38 }
 0x288   : > { %4019 = vst [vmem:[#allocation3 + $0x54] sm:$0x1] %v4018_v0  ;;  %v4048_v9 = vld [vmem:[#allocation3 + $0x5c] sm:$0x1]  ;;  %v3872_v43 = vsel %vm10528_vm13, %v3864_v57, %v3871_v54  ;;  %v3987_v27 = vsel %vm10518_vm12, %v3873_v20, %v3986_v60 }
 0x289   : > { %v4049_v45 = vsel %vm10554_vm14, 0, %v4048_v9  ;;  %3985 = vst [vmem:[#allocation3 + $0x64] sm:$0xf] %v3872_v43  ;;  %3988 = vst [vmem:[#allocation3 + $0x68] sm:$0x1] %v3987_v27  ;;  %v3877_v35 = vrot.slane %v3875_v28, 7 }
 0x28a   : > { %4050 = vst [vmem:[#allocation3 + $0x5c] sm:$0x1] %v4049_v45  ;;  %v3883_v31 = vshrl.u32 %v7764_v58, 16  ;;  %v3886_v12 = vshll.u32 %v7764_v58, 16 }
 0x28b   : > { %v3880_v53 = vor.u32 %v3878_v36, %v3877_v35  ;;  %v3881_v39 = vrot.slane %v3877_v35, 4 }
 0x28c   : > { %v3885_v10 = vrot.slane %v3883_v31, 7 }
 0x28d   : > { %v3990_v8 = vsel %vm10507_vm10, %v3880_v53, %v3989_v24  ;;  %v4020_v61 = vld [vmem:[#allocation3 + $0x60] sm:$0x1] }
 0x28e   : > { %3991 = vst [vmem:[#allocation3 + $0x6c] sm:$0xf] %v3990_v8  ;;  %v4021_v34 = vsel %vm10518_vm12, 0, %v4020_v61  ;;  %v3888_v11 = vor.u32 %v3886_v12, %v3885_v10  ;;  %v3890_v46 = vrot.slane %v3885_v10, 4 }
 0x28f   : > { %4022 = vst [vmem:[#allocation3 + $0x60] sm:$0x1] %v4021_v34 }
 0x290   : > { %v4051_v56 = vld [vmem:[#allocation3 + $0x68] sm:$0x1]  ;;  %v3889_v5 = vsel %vm10528_vm13, %v3881_v39, %v3888_v11  ;;  %v3994_v59 = vsel %vm10518_vm12, %v3890_v46, %v3993_v49 }
 0x291   : > { %v4052_v42 = vsel %vm10554_vm14, 0, %v4051_v56  ;;  %3992 = vst [vmem:[#allocation3 + $0x70] sm:$0xf] %v3889_v5  ;;  %3995 = vst [vmem:[#allocation3 + $0x74] sm:$0x1] %v3994_v59 }
 0x292   : > { %4053 = vst [vmem:[#allocation3 + $0x68] sm:$0x1] %v4052_v42 }
 0x294   : > { %4060 = sbr.rel (%p7548_p5) target bundleno = 667 (0x29b), region = 56 }
 0x295   : > { %v4023_v62 = vld [vmem:[#allocation3 + $0x6c] sm:$0x1] }
 0x296   : > { %v4024_v19 = vsel %vm10518_vm12, 0, %v4023_v62 }
 0x297   : > { %4025 = vst [vmem:[#allocation3 + $0x6c] sm:$0x1] %v4024_v19 }
 0x298   : > { %v4054_v47 = vld [vmem:[#allocation3 + $0x74] sm:$0x1] }
 0x299   : > { %v4055_v37 = vsel %vm10554_vm14, 0, %v4054_v47 }
 0x29a   : > { %4056 = vst [vmem:[#allocation3 + $0x74] sm:$0x1] %v4055_v37 }
 0x29b PF: > { %p7549_p9 = scmp.ne.s32.totalorder %s9517_s27, 1 }
 0x29c   : > { %v9541_v30 = vmov (!%p7549_p9), 0  }
 0x29d   : > { %4071 = sbr.rel (%p7549_p9) target bundleno = 676 (0x2a4), region = 60  ;;  %4076 = vst [vmem:[#allocation3 + $0x70] sm:$0xf] (!%p7549_p9), %v9541_v30 }
 0x29e   : > { %v4073_v41 = vld [vmem:[#allocation3 + $0x6c] sm:$0xf] (!%p7549_p9) }
 0x29f   : > { %v4074_v7 = vsel (!%p7549_p9), %vm10507_vm10, 0, %v4073_v41 }
 0x2a0   : > { %4075 = vst [vmem:[#allocation3 + $0x6c] sm:$0xf] (!%p7549_p9), %v4074_v7 }
 0x2a1   : > { %v4077_v22 = vld [vmem:[#allocation3 + $0x74] sm:$0x1] (!%p7549_p9) }
 0x2a2   : > { %v4078_v26 = vsel (!%p7549_p9), %vm10518_vm12, 0, %v4077_v22 }
 0x2a3   : > { %4079 = vst [vmem:[#allocation3 + $0x74] sm:$0x1] (!%p7549_p9), %v4078_v26 }
 0x2a4 PF: > { %v9193_v51 = vld [vmem:[#allocation10 + $0x40] sm:$0xff]   ;;  %v9196_v4 = vld [vmem:[#allocation10 + $0x48] sm:$0xff]   ;;  %v9199_v29 = vld [vmem:[#allocation10 + $0x50] sm:$0xff]   ;;  %s11516_s4 = sld [smem:[#allocation30_spill]] }
 0x2a5   : > { %v9194_v6 = vld [vmem:[#allocation10 + $0x80] sm:$0xff]   ;;  %8111 = vmatprep.subr.bf16.mxu0 %v9193_v51  ;;  %v9197_v2 = vld [vmem:[#allocation10 + $0x88] sm:$0xff]   ;;  %v9200_v50 = vld [vmem:[#allocation10 + $0x90] sm:$0xff]  }
 0x2a6   : > { %v9195_v17 = vld [vmem:[#allocation10] sm:$0xff]   ;;  %8459 = vmatprep.subr.bf16.mxu1 %v9194_v6  ;;  %v9198_v23 = vld [vmem:[#allocation10 + $0x8] sm:$0xff]   ;;  %v9201_v32 = vld [vmem:[#allocation10 + $0x10] sm:$0xff]  }
 0x2a7   : > { %8112 = vmatpush3.bf16.msra.mxu0 %v9195_v17  ;;  %8460 = vmatpush3.bf16.msra.mxu1 %v9194_v6  ;;  %v9202_v15 = vld [vmem:[#allocation10 + $0x58] sm:$0xff]   ;;  %v9205_v40 = vld [vmem:[#allocation10 + $0x60] sm:$0xff]   ;;  %v9208_v16 = vld [vmem:[#allocation10 + $0x68] sm:$0xff]  }
 0x2a8   : > { %8113 = vmatprep.subr.bf16.mxu0 %v9196_v4  ;;  %8461 = vmatprep.subr.bf16.mxu1 %v9197_v2  ;;  %v9203_v13 = vld [vmem:[#allocation10 + $0x98] sm:$0xff]   ;;  %v9206_v1 = vld [vmem:[#allocation10 + $0xa0] sm:$0xff]   ;;  %v9209_v57 = vld [vmem:[#allocation10 + $0xa8] sm:$0xff]  }
 0x2a9   : > { %v9204_v55 = vld [vmem:[#allocation10 + $0x18] sm:$0xff]   ;;  %v9207_v48 = vld [vmem:[#allocation10 + $0x20] sm:$0xff]   ;;  %v9210_v60 = vld [vmem:[#allocation10 + $0x28] sm:$0xff]  }
 0x2aa   : > { %v9211_v18 = vld [vmem:[#allocation10 + $0x70] sm:$0xff]   ;;  %v9214_v54 = vld [vmem:[#allocation10 + $0x78] sm:$0xff]   ;;  %v4152_v9 = vld [vmem:[#allocation3] sm:$0xf] }
 0x2ab   : > { %8114 = vmatpush3.bf16.msra.mxu0 %v9198_v23  ;;  %8462 = vmatpush3.bf16.msra.mxu1 %v9197_v2  ;;  %v9212_v0 = vld [vmem:[#allocation10 + $0xb0] sm:$0xff]   ;;  %v9215_v20 = vld [vmem:[#allocation10 + $0xb8] sm:$0xff]   ;;  %v4153_v28 = vld [vmem:[#allocation3 + $0x4] sm:$0xf]  ;;  %v4177_v45 = vshrl.u32 %v4152_v9, 16  ;;  %v4180_v43 = vshll.u32 %v4152_v9, 16 }
 0x2ac   : > { %8115 = vmatprep.subr.bf16.mxu0 %v9199_v29  ;;  %8463 = vmatprep.subr.bf16.mxu1 %v9200_v50  ;;  %v9213_v3 = vld [vmem:[#allocation10 + $0x30] sm:$0xff]   ;;  %v4186_v27 = vshll.u32 %v4153_v28, 16  ;;  %v4190_v35 = vshrl.u32 %v4153_v28, 16  ;;  %v9216_v58 = vld [vmem:[#allocation10 + $0x38] sm:$0xff]   ;;  %v4408_v34 = vld [vmem:[#allocation3] sm:$0xe] }
 0x2ad   : > { %v4154_v38 = vld [vmem:[#allocation3 + $0x8] sm:$0x1]  ;;  %v5051_v36 = vld [vmem:[#allocation3 + $0xc] sm:$0xf]  ;;  %v5052_v53 = vld [vmem:[#allocation3 + $0x10] sm:$0xf] }
 0x2ae   : > { %v4196_v24 = vshll.u32 %v4154_v38, 16  ;;  %v5053_v31 = vld [vmem:[#allocation3 + $0x14] sm:$0x1]  ;;  %v5076_v8 = vshrl.u32 %v5051_v36, 16  ;;  %v4179_v10 = vrot.slane %v4177_v45, 4  ;;  %v4182_v12 = vrot.slane %v4180_v43, 5 }
 0x2af   : > { %8116 = vmatpush3.bf16.msra.mxu0 %v9201_v32  ;;  %8464 = vmatpush3.bf16.msra.mxu1 %v9200_v50  ;;  %v4188_v61 = vrot.slane %v4186_v27, 5  ;;  %v4192_v49 = vrot.slane %v4190_v35, 4  ;;  %v5079_v46 = vshll.u32 %v5051_v36, 16  ;;  %v5085_v56 = vshll.u32 %v5052_v53, 16  ;;  %v4409_v42 = vld [vmem:[#allocation3 + $0x4] sm:$0xf] }
 0x2b0   : > { %8117 = vmatprep.subr.bf16.mxu0 %v9202_v15  ;;  %8465 = vmatprep.subr.bf16.mxu1 %v9203_v13  ;;  %v4198_v39 = vrot.slane %v4196_v24, 5  ;;  %v5078_v11 = vrot.slane %v5076_v8, 4  ;;  %v4183_v5 = vor.u32 %v4182_v12, %v4179_v10  ;;  %v5089_v62 = vshrl.u32 %v5052_v53, 16  ;;  %v4410_v47 = vld [vmem:[#allocation3 + $0x8] sm:$0x1]  ;;  %v9217_v2 = vld [vmem:[#allocation3] sm:$0xff]  }
 0x2b1   : > { %v4193_v59 = vor.u32 %v4192_v49, %v4188_v61  ;;  %v5095_v19 = vshll.u32 %v5053_v31, 16  ;;  %v5081_v37 = vrot.slane %v5079_v46, 5  ;;  %v5087_v44 = vrot.slane %v5085_v56, 5  ;;  %v9218_v32 = vld [vmem:[#allocation3 + $0xc] sm:$0xff]   ;;  %v9222_v38 = vld [vmem:[#allocation3 + $0x18] sm:$0xff]   ;;  %v9220_v43 = vld [vmem:[#allocation10 + $0x148] sm:$0xff]  }
 0x2b2   : > { %v7566_v14 = vrot.slane %v4408_v34, 9  ;;  %v4458_v63 = vrot.slane %v4409_v42, 5  ;;  %v4184_v21 = vrot.slane %v4183_v5, 4  ;;  %v5091_v41 = vrot.slane %v5089_v62, 4  ;;  %v4411_v15 = vld [vmem:[#allocation3 + $0xc] sm:$0xe] }
 0x2b3   : > { %8118 = vmatpush3.bf16.msra.mxu0 %v9204_v55  ;;  %8466 = vmatpush3.bf16.msra.mxu1 %v9203_v13  ;;  %v4194_v33 = vrot.slane %v4193_v59, 4  ;;  %v5082_v22 = vor.u32 %v5081_v37, %v5078_v11  ;;  %v4461_v26 = vrot.slane %v4410_v47, 5  ;;  %v5097_v4 = vrot.slane %v5095_v19, 5  ;;  %v9219_v13 = vld [vmem:[#allocation10 + $0x140] sm:$0xff]   ;;  %5043 = vst [vmem:[#allocation2] sm:$0xff] %v9218_v32  ;;  %5044 = vst [vmem:[#allocation2 + $0x18] sm:$0xff] %v9222_v38 }
 0x2b4   : > { %8119 = vmatprep.subr.bf16.mxu0 %v9205_v40  ;;  %8467 = vmatprep.subr.bf16.mxu1 %v9206_v1  ;;  %v4459_v7 = vsel %vm10085_vm5, %v7566_v14, %v4458_v63  ;;  %v4460_v30 = vrot.slane %v4458_v63, 4  ;;  %v4189_v51 = vsel %vm9853_vm2, %v4184_v21, %v4188_v61  ;;  %v5092_v17 = vor.u32 %v5091_v41, %v5087_v44  ;;  %v4155_v9 = vld [vmem:[#allocation3 + $0xc] sm:$0xf]  ;;  %v4156_v28 = vld [vmem:[#allocation3 + $0x10] sm:$0xf]  ;;  %v9225_v14 = vld [vmem:[#allocation10 + $0xc0] sm:$0xff]  }
 0x2b5   : > { %v4199_v6 = vsel %vm9853_vm2, %v4194_v33, %v4198_v39  ;;  %v5083_v29 = vrot.slane %v5082_v22, 4  ;;  %v4157_v27 = vld [vmem:[#allocation3 + $0x14] sm:$0x1]  ;;  %v4201_v35 = vshrl.u32 %v4155_v9, 16  ;;  %v4204_v36 = vshll.u32 %v4155_v9, 16  ;;  %v9224_v39 = vld [vmem:[#allocation10 + $0x100] sm:$0xff]  }
 0x2b6   : > { %v7558_v23 = vcombine.low %v4189_v51, %v4199_v6  ;;  %v4462_v50 = vsel %vm10085_vm5, %v4460_v30, %v4461_v26  ;;  %v5093_v55 = vrot.slane %v5092_v17, 4  ;;  %v4214_v53 = vshrl.u32 %v4156_v28, 16  ;;  %v5054_v8 = vld [vmem:[#allocation3 + $0x18] sm:$0xf]  ;;  %v5055_v10 = vld [vmem:[#allocation3 + $0x1c] sm:$0xf] }
 0x2b7   : > { %8120 = vmatpush3.bf16.msra.mxu0 %v9207_v48  ;;  %8468 = vmatpush3.bf16.msra.mxu1 %v9206_v1  ;;  %v7574_v40 = vcombine.low %v4459_v7, %v4462_v50  ;;  %v4412_v1 = vld [vmem:[#allocation3 + $0x10] sm:$0xf]  ;;  %v4413_v48 = vld [vmem:[#allocation3 + $0x14] sm:$0x1]  ;;  %v4220_v31 = vshll.u32 %v4157_v27, 16  ;;  %v4203_v12 = vrot.slane %v4201_v35, 4 }
 0x2b8   : > { %8121 = vmatprep.subr.bf16.mxu0 %v9208_v16  ;;  %8469 = vmatprep.subr.bf16.mxu1 %v9209_v57  ;;  %v5088_v16 = vsel %vm9853_vm2, %v5083_v29, %v5087_v44  ;;  %v4206_v61 = vrot.slane %v4204_v36, 5  ;;  %v5056_v34 = vld [vmem:[#allocation3 + $0x20] sm:$0x1]  ;;  %v10738_v11 = vld [vmem:[#allocation3 + $0x10] sm:$0xf]  ;;  %v4216_v46 = vrot.slane %v4214_v53, 4 }
 0x2b9   : > { %4800 = vmatprep.mubr.bf16.mxu0 %v7558_v23  ;;  %8475 = vmatprep.mubr.bf16.mxu1 %v7574_v40  ;;  %v4222_v56 = vrot.slane %v4220_v31, 5  ;;  %v5100_v42 = vshrl.u32 %v5054_v8, 16  ;;  %v5103_v5 = vshll.u32 %v5054_v8, 16  ;;  %v4414_v59 = vld [vmem:[#allocation3 + $0x18] sm:$0xe]  ;;  %v5109_v19 = vshll.u32 %v5055_v10, 16 }
 0x2ba   : > { %v4207_v62 = vor.u32 %v4206_v61, %v4203_v12  ;;  %v5113_v47 = vshrl.u32 %v5055_v10, 16  ;;  %v5119_v37 = vshll.u32 %v5056_v34, 16  ;;  %v4415_v44 = vld [vmem:[#allocation3 + $0x1c] sm:$0xf]  ;;  %v4416_v41 = vld [vmem:[#allocation3 + $0x20] sm:$0x1] }
 0x2bb   : > { %8122 = vmatpush3.bf16.msra.mxu0 %v9210_v60  ;;  %8470 = vmatpush3.bf16.msra.mxu1 %v9209_v57  ;;  %v7567_v57 = vrot.slane %v4411_v15, 9  ;;  %v5098_v60 = vsel %vm9853_vm2, %v5093_v55, %v5097_v4  ;;  %v5102_v21 = vrot.slane %v5100_v42, 4  ;;  %v5105_v33 = vrot.slane %v5103_v5, 5  ;;  %v9223_v7 = vld [vmem:[#allocation10 + $0x150] sm:$0xff]   ;;  %v10742_v17 = vld [vmem:[#allocation3 + $0x1c] sm:$0xf] }
 0x2bc   : > { %8123 = vmatprep.subr.bf16.mxu0 %v9211_v18  ;;  %8471 = vmatprep.subr.bf16.mxu1 %v9212_v0  ;;  %v4465_v18 = vrot.slane %v4412_v1, 5  ;;  %v7568_v22 = vrot.slane %v4414_v59, 9  ;;  %v10740_v30 = vld [vmem:[#allocation3 + $0xc] sm:$0xe]  ;;  %v4208_v26 = vrot.slane %v4207_v62, 4  ;;  %v5111_v51 = vrot.slane %v5109_v19, 5 }
 0x2bd   : > { %v5115_v6 = vrot.slane %v5113_v47, 4  ;;  %v4472_v23 = vrot.slane %v4415_v44, 5  ;;  %v4475_v29 = vrot.slane %v4416_v41, 5  ;;  %v10744_v50 = vld [vmem:[#allocation3 + $0x14] sm:$0x1]  ;;  %v5357_v32 = vrot.slane %v10738_v11, 5 }
 0x2be   : > { %v10747_v15 = vld [vmem:[#allocation3 + $0x18] sm:$0xe]  ;;  %v5121_v40 = vrot.slane %v5119_v37, 5  ;;  %v9221_v1 = vld [vmem:[#allocation3 + $0xc] sm:$0xff]   ;;  %v4417_v9 = vld [vmem:[#allocation3 + $0x24] sm:$0xe] }
 0x2bf   : > { %8124 = vmatpush3.bf16.msra.mxu0 %v9213_v3  ;;  %8472 = vmatpush3.bf16.msra.mxu1 %v9212_v0  ;;  %v4468_v0 = vrot.slane %v4413_v48, 5  ;;  %v7614_v3 = vcombine.low %v5088_v16, %v5098_v60  ;;  %v5116_v55 = vor.u32 %v5115_v6, %v5111_v51  ;;  %v9226_v48 = vld [vmem:[#allocation10 + $0x158] sm:$0xff]   ;;  %v10751_v16 = vld [vmem:[#allocation3 + $0x20] sm:$0x1]  ;;  %v4419_v27 = vld [vmem:[#allocation3 + $0x2c] sm:$0x1] }
 0x2c0   : > { %8125 = vmatprep.subr.bf16.mxu0 %v9214_v54  ;;  %8473 = vmatprep.subr.bf16.mxu1 %v9215_v20  ;;  %v4466_v54 = vsel %vm10085_vm5, %v7567_v57, %v4465_v18  ;;  %v7569_v35 = vrot.slane %v4417_v9, 9  ;;  %v4482_v53 = vrot.slane %v4419_v27, 5  ;;  %v10767_v31 = vrot.slane %v5357_v32, 4  ;;  %v4158_v5 = vld [vmem:[#allocation3 + $0x18] sm:$0xf] }
 0x2c1   : > { %5299 = vst [vmem:[#allocation2 + $0x8] sm:$0xff] %v7614_v3  ;;  %v7622_v3 = vrot.slane %v10740_v30, 9  ;;  %v5360_v8 = vrot.slane %v10744_v50, 5  ;;  %v7623_v10 = vrot.slane %v10747_v15, 9  ;;  %v5367_v61 = vrot.slane %v10751_v16, 5 }
 0x2c2   : > { %v4159_v59 = vld [vmem:[#allocation3 + $0x1c] sm:$0xf]  ;;  %v4160_v62 = vld [vmem:[#allocation3 + $0x20] sm:$0x1]  ;;  %v4225_v19 = vshrl.u32 %v4158_v5, 16  ;;  %v4228_v47 = vshll.u32 %v4158_v5, 16 }
 0x2c3   : > { %8126 = vmatpush3.bf16.msra.mxu0 %v9216_v58  ;;  %8474 = vmatpush3.bf16.msra.mxu1 %v9215_v20  ;;  %v4467_v20 = vrot.slane %v4465_v18, 4  ;;  %v4210_v58 = vshll.u32 %v4156_v28, 16  ;;  %v4473_v18 = vsel %vm10085_vm5, %v7568_v22, %v4472_v23  ;;  %v5364_v28 = vrot.slane %v10742_v17, 5  ;;  %v5057_v44 = vld [vmem:[#allocation3 + $0x24] sm:$0xf] }
 0x2c4   : > { %8491 = vmatprep.subr.bf16.mxu1 %v9219_v13  ;;  %8191 = vmatprep.subr.bf16.mxu0 %v9224_v39  ;;  %v4234_v37 = vshll.u32 %v4159_v59, 16  ;;  %v5058_v41 = vld [vmem:[#allocation3 + $0x28] sm:$0xf]  ;;  %v5059_v22 = vld [vmem:[#allocation3 + $0x2c] sm:$0x1]  ;;  %v5124_v6 = vshrl.u32 %v5057_v44, 16 }
 0x2c5   : > { %v4469_v45 = vsel %vm10085_vm5, %v4467_v20, %v4468_v0  ;;  %v4212_v49 = vrot.slane %v4210_v58, 5  ;;  %v4474_v0 = vrot.slane %v4472_v23, 4  ;;  %v5117_v20 = vrot.slane %v5116_v55, 4  ;;  %v4421_v55 = vld [vmem:[#allocation3 + $0x34] sm:$0xf] }
 0x2c6   : > { %4801 = vmatmul.mubr.bf16.vlgmr.msra.gmra.mrb[100].mxu0 %v9217_v2  ;;  %v7575_v24 = vcombine.low %v4466_v54, %v4469_v45  ;;  %v5106_v2 = vor.u32 %v5105_v33, %v5102_v21  ;;  %v10776_v39 = vrot.slane %v5364_v28, 4  ;;  %v4238_v21 = vshrl.u32 %v4159_v59, 16  ;;  %v10785_v27 = vld [vmem:[#allocation3 + $0x34] sm:$0xf]  ;;  %v4426_v30 = vld [vmem:[#allocation3 + $0x48] sm:$0xe] }
 0x2c7   : > { %v4217_v63 = vor.u32 %v4216_v46, %v4212_v49  ;;  %8192 = vmatpush3.bf16.msra.mxu0 %v9225_v14  ;;  %v4476_v45 = vsel %vm10085_vm5, %v4474_v0, %v4475_v29  ;;  %v5122_v36 = vsel %vm9853_vm2, %v5117_v20, %v5121_v40  ;;  %v9228_v46 = vld [vmem:[#allocation3 + $0x24] sm:$0xff]   ;;  %v9229_v14 = vld [vmem:[#allocation10 + $0x160] sm:$0xff]   ;;  %v4244_v33 = vshll.u32 %v4160_v62, 16  ;;  %v4427_v50 = vld [vmem:[#allocation3 + $0x4c] sm:$0xf] }
 0x2c8   : > { %8476 = vmatmul.mubr.bf16.vlgmr.msra.gmra.mrb[60].mxu1 %v7575_v24  ;;  %v5107_v60 = vrot.slane %v5106_v2, 4  ;;  %v7576_v58 = vcombine.low %v4473_v18, %v4476_v45  ;;  %5045 = vst [vmem:[#allocation2 + $0x30] sm:$0xff] %v9228_v46  ;;  %v4240_v2 = vrot.slane %v4238_v21, 4  ;;  %v5127_v29 = vshll.u32 %v5057_v44, 16  ;;  %v9230_v18 = vld [vmem:[#allocation10 + $0x108] sm:$0xff]  }
 0x2c9   : > { %8492 = vmatpush3.bf16.msra.mxu1 %v9219_v13  ;;  %v4218_v4 = vrot.slane %v4217_v63, 4  ;;  %v4213_v13 = vsel %vm9853_vm2, %v4208_v26, %v4212_v49  ;;  %v10780_v63 = vld [vmem:[#allocation3 + $0x28] sm:$0xf]  ;;  %v4230_v26 = vrot.slane %v4228_v47, 5  ;;  %v4246_v23 = vrot.slane %v4244_v33, 5  ;;  %v9231_v45 = vld [vmem:[#allocation10 + $0xc8] sm:$0xff]   ;;  %8193 = vmatprep.subr.bf16.mxu0 %v9230_v18 }
 0x2ca   : > { %8493 = vmatprep.subr.bf16.mxu1 %v9220_v43  ;;  %v5112_v38 = vsel %vm9853_vm2, %v5107_v60, %v5111_v51  ;;  %8479 = vmatprep.mubr.bf16.mxu1 %v7576_v58  ;;  %v4236_v51 = vrot.slane %v4234_v37, 5  ;;  %v4422_v60 = vld [vmem:[#allocation3 + $0x38] sm:$0x1]  ;;  %v10782_v0 = vld [vmem:[#allocation3 + $0x24] sm:$0xe]  ;;  %v5129_v20 = vrot.slane %v5127_v29, 5 }
 0x2cb   : > { %v4223_v57 = vsel %vm9853_vm2, %v4218_v4, %v4222_v56  ;;  %v7615_v12 = vcombine.low %v5112_v38, %v5122_v36  ;;  %v4420_v4 = vld [vmem:[#allocation3 + $0x30] sm:$0xe]  ;;  %v4486_v58 = vrot.slane %v4421_v55, 5  ;;  %8194 = vmatpush3.bf16.msra.mxu0 %v9231_v45  ;;  %v10787_v46 = vld [vmem:[#allocation3 + $0x2c] sm:$0x1]  ;;  %v9227_v47 = vld [vmem:[#allocation3 + $0x18] sm:$0xff]  }
 0x2cc   : > { %v7559_v54 = vcombine.low %v4213_v13, %v4223_v57  ;;  %v5133_v13 = vshll.u32 %v5058_v41, 16  ;;  %v5143_v57 = vshll.u32 %v5059_v22, 16  ;;  %v7570_v38 = vrot.slane %v4420_v4, 9  ;;  %v9234_v33 = vld [vmem:[#allocation3 + $0x30] sm:$0xff]   ;;  %v4424_v29 = vld [vmem:[#allocation3 + $0x40] sm:$0xf] }
 0x2cd   : > { %8494 = vmatpush3.bf16.msra.mxu1 %v9220_v43  ;;  %v4418_v43 = vld [vmem:[#allocation3 + $0x28] sm:$0xf]  ;;  %5300 = vst [vmem:[#allocation2 + $0x20] sm:$0xff] %v7615_v12  ;;  %v7624_v37 = vrot.slane %v10782_v0, 9  ;;  %v5378_v44 = vrot.slane %v10785_v27, 5  ;;  %5046 = vst [vmem:[#allocation2 + $0x48] sm:$0xff] %v9234_v33 }
 0x2ce   : > { %8495 = vmatprep.subr.bf16.mxu1 %v9223_v7  ;;  %4808 = vmatprep.mubr.bf16.mxu0 %v7559_v54  ;;  %v4479_v24 = vrot.slane %v4418_v43, 5  ;;  %v4241_v54 = vor.u32 %v4240_v2, %v4236_v51  ;;  %v5135_v9 = vrot.slane %v5133_v13, 5  ;;  %v5371_v43 = vrot.slane %v10780_v63, 5  ;;  %v4425_v13 = vld [vmem:[#allocation3 + $0x44] sm:$0x1]  ;;  %v9236_v55 = vld [vmem:[#allocation10 + $0x110] sm:$0xff]  }
 0x2cf   : > { %4809 = vmatmul.mubr.bf16.gmra.mrb[104].mxu0 %v9221_v1  ;;  %v5126_v1 = vrot.slane %v5124_v6, 4  ;;  %v5145_v12 = vrot.slane %v5143_v57, 5  ;;  %v4487_v62 = vsel %vm10085_vm5, %v7570_v38, %v4486_v58  ;;  %v9235_v6 = vld [vmem:[#allocation10 + $0x170] sm:$0xff]   ;;  %v4493_v57 = vrot.slane %v4424_v29, 5  ;;  %v10818_v45 = vld [vmem:[#allocation3 + $0x44] sm:$0x1]  ;;  %8195 = vmatprep.subr.bf16.mxu0 %v9236_v55 }
 0x2d0   : > { %v4480_v49 = vsel %vm10085_vm5, %v7569_v35, %v4479_v24  ;;  %v4481_v34 = vrot.slane %v4479_v24, 4  ;;  %v4242_v24 = vrot.slane %v4241_v54, 4  ;;  %v10807_v4 = vrot.slane %v5371_v43, 4  ;;  %v9237_v18 = vld [vmem:[#allocation10 + $0xd0] sm:$0xff]   ;;  %v5062_v55 = vld [vmem:[#allocation3 + $0x38] sm:$0x1] }
 0x2d1   : > { %8496 = vmatpush3.bf16.msra.mxu1 %v9223_v7  ;;  %v4227_v7 = vrot.slane %v4225_v19, 4  ;;  %v4488_v19 = vrot.slane %v4486_v58, 4  ;;  %v5374_v54 = vrot.slane %v10787_v46, 5  ;;  %8196 = vmatpush3.bf16.msra.mxu0 %v9237_v18 }
 0x2d2   : > { %8497 = vmatprep.subr.bf16.mxu1 %v9226_v48  ;;  %v4483_v56 = vsel %vm10085_vm5, %v4481_v34, %v4482_v53  ;;  %v5130_v53 = vor.u32 %v5129_v20, %v5126_v1  ;;  %v9232_v34 = vld [vmem:[#allocation10 + $0x168] sm:$0xff]  }
 0x2d3   : > { %v7577_v42 = vcombine.low %v4480_v49, %v4483_v56  ;;  %v4231_v40 = vor.u32 %v4230_v26, %v4227_v7  ;;  %v4489_v49 = vrot.slane %v4422_v60, 5  ;;  %v10789_v56 = vld [vmem:[#allocation3 + $0x30] sm:$0xe]  ;;  %v10803_v26 = vld [vmem:[#allocation3 + $0x3c] sm:$0xe]  ;;  %v4496_v60 = vrot.slane %v4425_v13, 5 }
 0x2d4   : > { %v5131_v21 = vrot.slane %v5130_v53, 4  ;;  %v10813_v1 = vld [vmem:[#allocation3 + $0x40] sm:$0xf]  ;;  %v7625_v20 = vrot.slane %v10789_v56, 9  ;;  %v7626_v53 = vrot.slane %v10803_v26, 9 }
 0x2d5   : > { %8498 = vmatpush3.bf16.msra.mxu1 %v9226_v48  ;;  %v5137_v48 = vshrl.u32 %v5058_v41, 16  ;;  %v4232_v35 = vrot.slane %v4231_v40, 4  ;;  %v4490_v7 = vsel %vm10085_vm5, %v4488_v19, %v4489_v49  ;;  %v5388_v49 = vrot.slane %v10818_v45, 5  ;;  %v4162_v19 = vld [vmem:[#allocation3 + $0x28] sm:$0xf] }
 0x2d6   : > { %8480 = vmatmul.mubr.bf16.gmra.mrb[64].mxu1 %v7577_v42  ;;  %8499 = vmatprep.subr.bf16.mxu1 %v9229_v14  ;;  %v10791_v42 = vld [vmem:[#allocation3 + $0x38] sm:$0x1]  ;;  %v5136_v2 = vsel %vm9853_vm2, %v5131_v21, %v5135_v9  ;;  %v4258_v33 = vshll.u32 %v4162_v19, 16  ;;  %v5061_v13 = vld [vmem:[#allocation3 + $0x34] sm:$0xf] }
 0x2d7   : > { %v5139_v36 = vrot.slane %v5137_v48, 4  ;;  %v4237_v5 = vsel %vm9853_vm2, %v4232_v35, %v4236_v51  ;;  %v4423_v51 = vld [vmem:[#allocation3 + $0x3c] sm:$0xe]  ;;  %v9238_v35 = vld [vmem:[#allocation10 + $0x178] sm:$0xff]   ;;  %v5161_v18 = vshrl.u32 %v5061_v13, 16 }
 0x2d8   : > { %v7571_v48 = vrot.slane %v4423_v51, 9  ;;  %v9241_v51 = vld [vmem:[#allocation10 + $0x1c0] sm:$0xff]  }
 0x2d9   : > { %8500 = vmatpush3.bf16.msra.mxu1 %v9229_v14  ;;  %v5140_v59 = vor.u32 %v5139_v36, %v5135_v9  ;;  %v4247_v14 = vsel %vm9853_vm2, %v4242_v24, %v4246_v23  ;;  %v7578_v23 = vcombine.low %v4487_v62, %v4490_v7  ;;  %v5381_v9 = vrot.slane %v10791_v42, 5  ;;  %v4161_v62 = vld [vmem:[#allocation3 + $0x24] sm:$0xf]  ;;  %v5060_v7 = vld [vmem:[#allocation3 + $0x30] sm:$0xf] }
 0x2da   : > { %8501 = vmatprep.subr.bf16.mxu1 %v9232_v34  ;;  %v7560_v41 = vcombine.low %v4237_v5, %v4247_v14  ;;  %v10822_v36 = vrot.slane %v5378_v44, 4  ;;  %v4494_v58 = vsel %vm10085_vm5, %v7571_v48, %v4493_v57  ;;  %v4495_v24 = vrot.slane %v4493_v57, 4  ;;  %v9240_v5 = vld [vmem:[#allocation3 + $0x3c] sm:$0xff]  }
 0x2db   : > { %v5141_v22 = vrot.slane %v5140_v59, 4  ;;  %8483 = vmatprep.mubr.bf16.mxu1 %v7578_v23  ;;  %v4249_v14 = vshrl.u32 %v4161_v62, 16  ;;  %v4252_v21 = vshll.u32 %v4161_v62, 16  ;;  %5047 = vst [vmem:[#allocation2 + $0x60] sm:$0xff] %v9240_v5  ;;  %v5148_v57 = vshrl.u32 %v5060_v7, 16 }
 0x2dc   : > { %4816 = vmatprep.mubr.bf16.mxu0 %v7560_v41  ;;  %v4262_v41 = vshrl.u32 %v4162_v19, 16  ;;  %v5163_v19 = vrot.slane %v5161_v18, 4 }
 0x2dd   : > { %8502 = vmatpush3.bf16.msra.mxu1 %v9232_v34  ;;  %v5146_v40 = vsel %vm9853_vm2, %v5141_v22, %v5145_v12  ;;  %4817 = vmatmul.mubr.bf16.gmra.mrb[108].mxu0 %v9227_v47  ;;  %v5385_v12 = vrot.slane %v10813_v1, 5  ;;  %v4497_v34 = vsel %vm10085_vm5, %v4495_v24, %v4496_v60  ;;  %v4163_v47 = vld [vmem:[#allocation3 + $0x2c] sm:$0x1]  ;;  %v4251_v23 = vrot.slane %v4249_v14, 4  ;;  %v9243_v24 = vld [vmem:[#allocation10 + $0x118] sm:$0xff]  }
 0x2de   : > { %8503 = vmatprep.subr.bf16.mxu1 %v9235_v6  ;;  %v7616_v38 = vcombine.low %v5136_v2, %v5146_v40  ;;  %v7579_v59 = vcombine.low %v4494_v58, %v4497_v34  ;;  %v4268_v22 = vshll.u32 %v4163_v47, 16  ;;  %v10844_v2 = vsel %vm10085_vm5, %v10767_v31, %v5360_v8  ;;  %v4428_v31 = vld [vmem:[#allocation3 + $0x50] sm:$0x1]  ;;  %v10846_v34 = vld [vmem:[#allocation3 + $0x4c] sm:$0xf]  ;;  %8197 = vmatprep.subr.bf16.mxu0 %v9243_v24 }
 0x2df   : > { %v4254_v29 = vrot.slane %v4252_v21, 5  ;;  %v4260_v40 = vrot.slane %v4258_v33, 5  ;;  %v4264_v48 = vrot.slane %v4262_v41, 4  ;;  %v5167_v58 = vshll.u32 %v5062_v55, 16  ;;  %v10852_v14 = vld [vmem:[#allocation3 + $0x48] sm:$0xe] }
 0x2e0   : > { %5301 = vst [vmem:[#allocation2 + $0x38] sm:$0xff] %v7616_v38  ;;  %8484 = vmatmul.mubr.bf16.gmra.mrb[68].mxu1 %v7579_v59  ;;  %v4270_v11 = vrot.slane %v4268_v22, 5  ;;  %v7572_v8 = vrot.slane %v4426_v30, 9  ;;  %v10850_v47 = vrot.slane %v5385_v12, 4  ;;  %v4500_v33 = vrot.slane %v4427_v50, 5  ;;  %v9233_v22 = vld [vmem:[#allocation3 + $0x24] sm:$0xff]  }
 0x2e1   : > { %8504 = vmatpush3.bf16.msra.mxu1 %v9235_v6  ;;  %v10837_v6 = vsel %vm10085_vm5, %v7622_v3, %v5357_v32  ;;  %v4255_v60 = vor.u32 %v4254_v29, %v4251_v23  ;;  %v5151_v32 = vshll.u32 %v5060_v7, 16  ;;  %v5157_v3 = vshll.u32 %v5061_v13, 16  ;;  %v10856_v13 = vld [vmem:[#allocation3 + $0x58] sm:$0xf]  ;;  %v9244_v55 = vld [vmem:[#allocation10 + $0xd8] sm:$0xff]  }
 0x2e2   : > { %8505 = vmatprep.subr.bf16.mxu1 %v9238_v35  ;;  %v4265_v38 = vor.u32 %v4264_v48, %v4260_v40  ;;  %v4503_v41 = vrot.slane %v4428_v31, 5  ;;  %v5169_v29 = vrot.slane %v5167_v58, 5  ;;  %v10858_v48 = vld [vmem:[#allocation3 + $0x50] sm:$0x1]  ;;  %8198 = vmatpush3.bf16.msra.mxu0 %v9244_v55  ;;  %v7627_v17 = vrot.slane %v10852_v14, 9 }
 0x2e3   : > { %v4256_v5 = vrot.slane %v4255_v60, 4  ;;  %v5153_v59 = vrot.slane %v5151_v32, 5  ;;  %v5159_v62 = vrot.slane %v5157_v3, 5  ;;  %v4501_v60 = vsel %vm10085_vm5, %v7572_v8, %v4500_v33  ;;  %v10865_v3 = vld [vmem:[#allocation3 + $0x54] sm:$0xe] }
 0x2e4   : > { %v4266_v21 = vrot.slane %v4265_v38, 4  ;;  %v4502_v32 = vrot.slane %v4500_v33, 4  ;;  %v4430_v58 = vld [vmem:[#allocation3 + $0x58] sm:$0xf]  ;;  %v4431_v24 = vld [vmem:[#allocation3 + $0x5c] sm:$0x1]  ;;  %v7630_v46 = vcombine.low %v10837_v6, %v10844_v2  ;;  %v10940_v6 = vsel %vm10085_vm5, %v7625_v20, %v5378_v44 }
 0x2e5   : > { %8506 = vmatpush3.bf16.msra.mxu1 %v9238_v35  ;;  %v5150_v35 = vrot.slane %v5148_v57, 4  ;;  %v4261_v7 = vsel %vm9853_vm2, %v4256_v5, %v4260_v40  ;;  %v5164_v23 = vor.u32 %v5163_v19, %v5159_v62  ;;  %v5392_v57 = vrot.slane %v10846_v34, 5  ;;  %v5064_v20 = vld [vmem:[#allocation3 + $0x40] sm:$0xf] }
 0x2e6   : > { %8271 = vmatprep.subr.bf16.mxu1 %v9241_v51  ;;  %v4271_v30 = vsel %vm9853_vm2, %v4266_v21, %v4270_v11  ;;  %v10873_v40 = vsel %vm10085_vm5, %v7623_v10, %v5364_v28  ;;  %v10882_v11 = vsel %vm10085_vm5, %v10776_v39, %v5367_v61  ;;  %v4504_v15 = vsel %vm10085_vm5, %v4502_v32, %v4503_v41  ;;  %v4429_v10 = vld [vmem:[#allocation3 + $0x54] sm:$0xe]  ;;  %v10900_v21 = vld [vmem:[#allocation3 + $0x60] sm:$0xe]  ;;  %v4166_v32 = vld [vmem:[#allocation3 + $0x38] sm:$0x1] }
 0x2e7   : > { %v5154_v51 = vor.u32 %v5153_v59, %v5150_v35  ;;  %v7561_v18 = vcombine.low %v4261_v7, %v4271_v30  ;;  %v5165_v38 = vrot.slane %v5164_v23, 4  ;;  %v10875_v35 = vld [vmem:[#allocation3 + $0x5c] sm:$0x1]  ;;  %v5399_v28 = vrot.slane %v10856_v13, 5  ;;  %v4164_v30 = vld [vmem:[#allocation3 + $0x30] sm:$0xf] }
 0x2e8   : > { %v7580_v8 = vcombine.low %v4501_v60, %v4504_v15  ;;  %v7573_v61 = vrot.slane %v4429_v10, 9  ;;  %v10898_v39 = vsel %vm10085_vm5, %v7624_v37, %v5371_v43  ;;  %v4507_v59 = vrot.slane %v4430_v58, 5  ;;  %v4165_v60 = vld [vmem:[#allocation3 + $0x34] sm:$0xf]  ;;  %v5065_v15 = vld [vmem:[#allocation3 + $0x44] sm:$0x1] }
 0x2e9   : > { %v5155_v50 = vrot.slane %v5154_v51, 4  ;;  %4824 = vmatprep.mubr.bf16.mxu0 %v7561_v18  ;;  %v5170_v16 = vsel %vm9853_vm2, %v5165_v38, %v5169_v29  ;;  %v4510_v19 = vrot.slane %v4431_v24, 5  ;;  %v10906_v33 = vrot.slane %v5392_v57, 4  ;;  %v5063_v38 = vld [vmem:[#allocation3 + $0x3c] sm:$0xf] }
 0x2ea   : > { %4825 = vmatmul.mubr.bf16.gmra.mrb[112].mxu0 %v9233_v22  ;;  %v5395_v63 = vrot.slane %v10858_v48, 5  ;;  %8487 = vmatprep.mubr.bf16.mxu1 %v7580_v8  ;;  %v7628_v0 = vrot.slane %v10865_v3, 9  ;;  %v5402_v43 = vrot.slane %v10875_v35, 5  ;;  %v10916_v37 = vsel %vm10085_vm5, %v10807_v4, %v5374_v54  ;;  %v6239_v8 = vld [vmem:[#allocation3 + $0x1c] sm:$0xf]  ;;  %v9254_v3 = vld [vmem:[#allocation10 + $0x198] sm:$0xff]  }
 0x2eb   : > { %v5160_v31 = vsel %vm9853_vm2, %v5155_v50, %v5159_v62  ;;  %v10902_v62 = vld [vmem:[#allocation3 + $0x64] sm:$0xf]  ;;  %v10920_v41 = vrot.slane %v5399_v28, 4  ;;  %v4508_v22 = vsel %vm10085_vm5, %v7573_v61, %v4507_v59  ;;  %v4509_v7 = vrot.slane %v4507_v59, 4  ;;  %v9242_v59 = vld [vmem:[#allocation10 + $0x180] sm:$0xff]  }
 0x2ec   : > { %v7617_v5 = vcombine.low %v5160_v31, %v5170_v16  ;;  %v7629_v51 = vrot.slane %v10900_v21, 9  ;;  %v5406_v23 = vrot.slane %v10902_v62, 5  ;;  %v7631_v54 = vcombine.low %v10873_v40, %v10882_v11  ;;  %v9251_v40 = vld [vmem:[#allocation10 + $0x120] sm:$0xff]  }
 0x2ed   : > { %v4511_v4 = vsel %vm10085_vm5, %v4509_v7, %v4510_v19  ;;  %v7632_v29 = vcombine.low %v10898_v39, %v10916_v37  ;;  %v4273_v2 = vshrl.u32 %v4164_v30, 16  ;;  %v4276_v18 = vshll.u32 %v4164_v30, 16  ;;  %8199 = vmatprep.subr.bf16.mxu0 %v9251_v40  ;;  %v9252_v19 = vld [vmem:[#allocation10 + $0xe0] sm:$0xff]   ;;  %v9245_v30 = vld [vmem:[#allocation10 + $0x1c8] sm:$0xff]  }
 0x2ee   : > { %5302 = vst [vmem:[#allocation2 + $0x50] sm:$0xff] %v7617_v5  ;;  %v7581_v55 = vcombine.low %v4508_v22, %v4511_v4  ;;  %v4282_v50 = vshll.u32 %v4165_v60, 16  ;;  %v10947_v11 = vsel %vm10085_vm5, %v10822_v36, %v5381_v9  ;;  %v10955_v27 = vsel %vm10085_vm5, %v7626_v53, %v5385_v12  ;;  %v6238_v9 = vld [vmem:[#allocation3 + $0x18] sm:$0xe]  ;;  %v6240_v5 = vld [vmem:[#allocation3 + $0x20] sm:$0x1]  ;;  %8200 = vmatpush3.bf16.msra.mxu0 %v9252_v19 }
 0x2ef   : > { %v4286_v56 = vshrl.u32 %v4165_v60, 16  ;;  %v4292_v44 = vshll.u32 %v4166_v32, 16  ;;  %v4275_v10 = vrot.slane %v4273_v2, 4  ;;  %v4278_v42 = vrot.slane %v4276_v18, 5  ;;  %v9250_v19 = vld [vmem:[#allocation10 + $0x190] sm:$0xff]   ;;  %v9257_v35 = vld [vmem:[#allocation10 + $0x1e0] sm:$0xff]  }
 0x2f0   : > { %8488 = vmatmul.mubr.bf16.gmra.mrb[72].mxu1 %v7581_v55  ;;  %v4284_v58 = vrot.slane %v4282_v50, 5  ;;  %v5172_v31 = vshrl.u32 %v5063_v38, 16  ;;  %v5175_v16 = vshll.u32 %v5063_v38, 16  ;;  %v5181_v26 = vshll.u32 %v5064_v20, 16 }
 0x2f1   : > { %8507 = vmatprep.mubr.bf16.mxu1 %v7630_v46  ;;  %v4288_v36 = vrot.slane %v4286_v56, 4  ;;  %v4294_v1 = vrot.slane %v4292_v44, 5  ;;  %v4279_v24 = vor.u32 %v4278_v42, %v4275_v10  ;;  %v5185_v12 = vshrl.u32 %v5064_v20, 16  ;;  %v9239_v10 = vld [vmem:[#allocation3 + $0x30] sm:$0xff]   ;;  %v6241_v42 = vld [vmem:[#allocation3 + $0x24] sm:$0xe] }
 0x2f2   : > { %v5174_v53 = vrot.slane %v5172_v31, 4  ;;  %v5191_v61 = vshll.u32 %v5065_v15, 16  ;;  %v5177_v7 = vrot.slane %v5175_v16, 5  ;;  %v5183_v4 = vrot.slane %v5181_v26, 5  ;;  %v6242_v31 = vld [vmem:[#allocation3 + $0x28] sm:$0xf] }
 0x2f3   : > { %v4289_v22 = vor.u32 %v4288_v36, %v4284_v58  ;;  %v7678_v55 = vrot.slane %v6238_v9, 9  ;;  %v4280_v46 = vrot.slane %v4279_v24, 4  ;;  %v5187_v60 = vrot.slane %v5185_v12, 4  ;;  %v9246_v16 = vld [vmem:[#allocation10 + $0x188] sm:$0xff]  }
 0x2f4   : > { %v5193_v32 = vrot.slane %v5191_v61, 5  ;;  %v6288_v2 = vrot.slane %v6239_v8, 5  ;;  %v10962_v18 = vsel %vm10085_vm5, %v10850_v47, %v5388_v49  ;;  %v5178_v38 = vor.u32 %v5177_v7, %v5174_v53  ;;  %v6243_v49 = vld [vmem:[#allocation3 + $0x2c] sm:$0x1]  ;;  %v10975_v53 = vld [vmem:[#allocation3 + $0x68] sm:$0x1] }
 0x2f5   : > { %v4290_v50 = vrot.slane %v4289_v22, 4  ;;  %v6291_v40 = vrot.slane %v6240_v5, 5  ;;  %v4285_v56 = vsel %vm9853_vm2, %v4280_v46, %v4284_v58  ;;  %v5188_v44 = vor.u32 %v5187_v60, %v5183_v4  ;;  %v9249_v5 = vld [vmem:[#allocation10 + $0x1d0] sm:$0xff]   ;;  %v9253_v22 = vld [vmem:[#allocation10 + $0x1d8] sm:$0xff]  }
 0x2f6   : > { %v6289_v20 = vsel %vm10085_vm5, %v7678_v55, %v6288_v2  ;;  %v6290_v15 = vrot.slane %v6288_v2, 4  ;;  %v5179_v9 = vrot.slane %v5178_v38, 4  ;;  %v7679_v47 = vrot.slane %v6241_v42, 9  ;;  %v4167_v55 = vld [vmem:[#allocation3 + $0x3c] sm:$0xf] }
 0x2f7   : > { %v4295_v45 = vsel %vm9853_vm2, %v4290_v50, %v4294_v1  ;;  %v6295_v36 = vrot.slane %v6242_v31, 5  ;;  %v5189_v8 = vrot.slane %v5188_v44, 4  ;;  %v6298_v24 = vrot.slane %v6243_v49, 5  ;;  %v5066_v60 = vld [vmem:[#allocation3 + $0x48] sm:$0xf] }
 0x2f8   : > { %8508 = vmatmul.mubr.bf16.vlgmr.msra.gmra.mrb[60].mxu1 %v7631_v54  ;;  %v7562_v26 = vcombine.low %v4285_v56, %v4295_v45  ;;  %v6292_v58 = vsel %vm10085_vm5, %v6290_v15, %v6291_v40  ;;  %v5184_v54 = vsel %vm9853_vm2, %v5179_v9, %v5183_v4  ;;  %v7633_v39 = vcombine.low %v10940_v6, %v10947_v11  ;;  %v11013_v50 = vld [vmem:[#allocation3 + $0x50] sm:$0x1]  ;;  %v6244_v44 = vld [vmem:[#allocation3 + $0x30] sm:$0xe]  ;;  %v9259_v9 = vld [vmem:[#allocation10 + $0x128] sm:$0xff]  }
 0x2f9   : > { %8272 = vmatpush3.bf16.msra.mxu1 %v9242_v59  ;;  %8511 = vmatprep.mubr.bf16.mxu1 %v7632_v29  ;;  %v7686_v1 = vcombine.low %v6289_v20, %v6292_v58  ;;  %v6296_v12 = vsel %vm10085_vm5, %v7679_v47, %v6295_v36  ;;  %v6297_v61 = vrot.slane %v6295_v36, 4  ;;  %v5194_v59 = vsel %vm9853_vm2, %v5189_v8, %v5193_v32 }
 0x2fa   : > { %8273 = vmatprep.subr.bf16.mxu1 %v9245_v30  ;;  %4832 = vmatprep.mubr.bf16.mxu0 %v7562_v26  ;;  %v7618_v37 = vcombine.low %v5184_v54, %v5194_v59  ;;  %v7634_v7 = vcombine.low %v10955_v27, %v10962_v18  ;;  %v10995_v4 = vsel %vm10085_vm5, %v7627_v17, %v5392_v57  ;;  %v4168_v27 = vld [vmem:[#allocation3 + $0x40] sm:$0xf]  ;;  %v4169_v30 = vld [vmem:[#allocation3 + $0x44] sm:$0x1]  ;;  %v4297_v34 = vshrl.u32 %v4167_v55, 16  ;;  %v9258_v26 = vld [vmem:[#allocation10 + $0x1a0] sm:$0xff]  }
 0x2fb   : > { %6374 = vst [vmem:[#allocation2 + $0x10] sm:$0xff] %v7686_v1  ;;  %4833 = vmatmul.mubr.bf16.gmra.mrb[116].mxu0 %v9239_v10  ;;  %v6299_v29 = vsel %vm10085_vm5, %v6297_v61, %v6298_v24  ;;  %v11002_v6 = vsel %vm10085_vm5, %v10906_v33, %v5395_v63  ;;  %v4300_v46 = vshll.u32 %v4167_v55, 16  ;;  %v5409_v14 = vrot.slane %v10975_v53, 5  ;;  %v5067_v18 = vld [vmem:[#allocation3 + $0x4c] sm:$0xf]  ;;  %v9247_v1 = vld [vmem:[#allocation3 + $0x3c] sm:$0xff]   ;;  %8201 = vmatprep.subr.bf16.mxu0 %v9259_v9 }
 0x2fc   : > { %v7687_v11 = vcombine.low %v6296_v12, %v6299_v29  ;;  %5303 = vst [vmem:[#allocation2 + $0x68] sm:$0xff] %v7618_v37  ;;  %v4306_v57 = vshll.u32 %v4168_v27, 16  ;;  %v4310_v17 = vshrl.u32 %v4168_v27, 16  ;;  %v4316_v48 = vshll.u32 %v4169_v30, 16  ;;  %v6245_v10 = vld [vmem:[#allocation3 + $0x34] sm:$0xf] }
 0x2fd   : > { %8274 = vmatpush3.bf16.msra.mxu1 %v9246_v16  ;;  %v7635_v33 = vcombine.low %v10995_v4, %v11002_v6  ;;  %v5400_v63 = vsel %vm10085_vm5, %v7628_v0, %v5399_v28  ;;  %v4299_v32 = vrot.slane %v4297_v34, 4  ;;  %v4302_v2 = vrot.slane %v4300_v46, 5  ;;  %v6247_v61 = vld [vmem:[#allocation3 + $0x3c] sm:$0xe]  ;;  %v6249_v37 = vld [vmem:[#allocation3 + $0x44] sm:$0x1] }
 0x2fe   : > { %8275 = vmatprep.subr.bf16.mxu1 %v9249_v5  ;;  %6375 = vst [vmem:[#allocation2 + $0x28] sm:$0xff] %v7687_v11  ;;  %v5403_v38 = vsel %vm10085_vm5, %v10920_v41, %v5402_v43  ;;  %v4308_v40 = vrot.slane %v4306_v57, 5  ;;  %v4312_v56 = vrot.slane %v4310_v17, 4  ;;  %v5196_v13 = vshrl.u32 %v5066_v60, 16  ;;  %v6246_v43 = vld [vmem:[#allocation3 + $0x38] sm:$0x1] }
 0x2ff   : > { %v5408_v28 = vrot.slane %v5406_v23, 4  ;;  %v4303_v0 = vor.u32 %v4302_v2, %v4299_v32  ;;  %v4318_v20 = vrot.slane %v4316_v48, 5  ;;  %v5199_v15 = vshll.u32 %v5066_v60, 16  ;;  %v9260_v11 = vld [vmem:[#allocation10 + $0xe8] sm:$0xff]   ;;  %v4171_v17 = vld [vmem:[#allocation3 + $0x4c] sm:$0xf] }
 0x300   : > { %8512 = vmatmul.mubr.bf16.gmra.mrb[64].mxu1 %v7633_v39  ;;  %v4313_v42 = vor.u32 %v4312_v56, %v4308_v40  ;;  %v5205_v31 = vshll.u32 %v5067_v18, 16  ;;  %v5209_v45 = vshrl.u32 %v5067_v18, 16  ;;  %v7680_v41 = vrot.slane %v6244_v44, 9  ;;  %v6248_v39 = vld [vmem:[#allocation3 + $0x40] sm:$0xf]  ;;  %8202 = vmatpush3.bf16.msra.mxu0 %v9260_v11 }
 0x301   : > { %8276 = vmatpush3.bf16.msra.mxu1 %v9250_v19  ;;  %8515 = vmatprep.mubr.bf16.mxu1 %v7634_v7  ;;  %v7636_v49 = vcombine.low %v5400_v63, %v5403_v38  ;;  %v4304_v47 = vrot.slane %v4303_v0, 4  ;;  %v11022_v36 = vrot.slane %v5196_v13, 4  ;;  %v5215_v16 = vshll.u32 %v11013_v50, 16  ;;  %v9261_v46 = vld [vmem:[#allocation10 + $0x1e8] sm:$0xff]   ;;  %v4172_v60 = vld [vmem:[#allocation3 + $0x50] sm:$0x1] }
 0x302   : > { %8277 = vmatprep.subr.bf16.mxu1 %v9253_v22  ;;  %v4314_v8 = vrot.slane %v4313_v42, 4  ;;  %v11025_v58 = vrot.slane %v5199_v15, 5  ;;  %v6302_v24 = vrot.slane %v6245_v10, 5  ;;  %v6305_v54 = vrot.slane %v6246_v43, 5  ;;  %v5069_v38 = vld [vmem:[#allocation3 + $0x54] sm:$0xf] }
 0x303   : > { %v4309_v12 = vsel %vm9853_vm2, %v4304_v47, %v4308_v40  ;;  %v7681_v29 = vrot.slane %v6247_v61, 9  ;;  %v11033_v7 = vrot.slane %v5205_v31, 5  ;;  %v11035_v4 = vrot.slane %v5209_v45, 4  ;;  %v5070_v40 = vld [vmem:[#allocation3 + $0x58] sm:$0xf] }
 0x304   : > { %v4319_v5 = vsel %vm9853_vm2, %v4314_v8, %v4318_v20  ;;  %v6303_v59 = vsel %vm10085_vm5, %v7680_v41, %v6302_v24  ;;  %v6304_v19 = vrot.slane %v6302_v24, 4  ;;  %v6309_v6 = vrot.slane %v6248_v39, 5  ;;  %v11053_v0 = vld [vmem:[#allocation3 + $0x5c] sm:$0x1]  ;;  %v6250_v15 = vld [vmem:[#allocation3 + $0x48] sm:$0xe] }
 0x305   : > { %8278 = vmatpush3.bf16.msra.mxu1 %v9254_v3  ;;  %v7563_v22 = vcombine.low %v4309_v12, %v4319_v5  ;;  %v5407_v55 = vsel %vm10085_vm5, %v7629_v51, %v5406_v23  ;;  %v5410_v27 = vsel %vm10085_vm5, %v5408_v28, %v5409_v14  ;;  %v6312_v34 = vrot.slane %v6249_v37, 5  ;;  %v9262_v51 = vld [vmem:[#allocation10 + $0x1a8] sm:$0xff]   ;;  %v4170_v14 = vld [vmem:[#allocation3 + $0x48] sm:$0xf]  ;;  %v6251_v45 = vld [vmem:[#allocation3 + $0x4c] sm:$0xf] }
 0x306   : > { %8279 = vmatprep.subr.bf16.mxu1 %v9257_v35  ;;  %v6306_v30 = vsel %vm10085_vm5, %v6304_v19, %v6305_v54  ;;  %v6310_v21 = vsel %vm10085_vm5, %v7681_v29, %v6309_v6  ;;  %v6311_v62 = vrot.slane %v6309_v6, 4  ;;  %v7637_v23 = vcombine.low %v5407_v55, %v5410_v27  ;;  %v6253_v19 = vld [vmem:[#allocation3 + $0x54] sm:$0xe]  ;;  %v9266_v39 = vld [vmem:[#allocation10 + $0x1f0] sm:$0xff]   ;;  %v6255_v6 = vld [vmem:[#allocation3 + $0x5c] sm:$0x1] }
 0x307   : > { %4840 = vmatprep.mubr.bf16.mxu0 %v7563_v22  ;;  %v7688_v57 = vcombine.low %v6303_v59, %v6306_v30  ;;  %v4324_v63 = vshll.u32 %v4170_v14, 16  ;;  %v4330_v32 = vshll.u32 %v4171_v17, 16  ;;  %v4334_v2 = vshrl.u32 %v4171_v17, 16  ;;  %v6254_v22 = vld [vmem:[#allocation3 + $0x58] sm:$0xf] }
 0x308   : > { %8516 = vmatmul.mubr.bf16.gmra.mrb[68].mxu1 %v7635_v33  ;;  %4841 = vmatmul.mubr.bf16.gmra.mrb[120].mxu0 %v9247_v1  ;;  %v6313_v53 = vsel %vm10085_vm5, %v6311_v62, %v6312_v34  ;;  %v4321_v33 = vshrl.u32 %v4170_v14, 16  ;;  %v4340_v18 = vshll.u32 %v4172_v60, 16  ;;  %v5220_v3 = vshrl.u32 %v5069_v38, 16  ;;  %v6387_v52 = vld [vmem:[#allocation2 + $0x28] sm:$0xff] }
 0x309   : > { %8280 = vmatpush3.bf16.msra.mxu1 %v9258_v26  ;;  %8519 = vmatprep.mubr.bf16.mxu1 %v7636_v49  ;;  %6376 = vst [vmem:[#allocation2 + $0x40] sm:$0xff] %v7688_v57  ;;  %v7689_v48 = vcombine.low %v6310_v21, %v6313_v53  ;;  %v4326_v13 = vrot.slane %v4324_v63, 5  ;;  %v4332_v44 = vrot.slane %v4330_v32, 5  ;;  %v4336_v28 = vrot.slane %v4334_v2, 4  ;;  %v6252_v49 = vld [vmem:[#allocation3 + $0x50] sm:$0x1] }
 0x30a   : > { %8281 = vmatprep.subr.bf16.mxu1 %v9261_v46  ;;  %v4323_v56 = vrot.slane %v4321_v33, 4  ;;  %v5223_v20 = vshll.u32 %v5069_v38, 16  ;;  %v11057_v10 = vrot.slane %v5215_v16, 5  ;;  %v4342_v42 = vrot.slane %v4340_v18, 5  ;;  %v9265_v26 = vld [vmem:[#allocation10 + $0x130] sm:$0xff]  }
 0x30b   : > { %6377 = vst [vmem:[#allocation2 + $0x58] sm:$0xff] %v7689_v48  ;;  %v5229_v31 = vshll.u32 %v5070_v40, 16  ;;  %v4337_v43 = vor.u32 %v4336_v28, %v4332_v44  ;;  %v11059_v41 = vrot.slane %v5220_v3, 4  ;;  %v5233_v9 = vshrl.u32 %v5070_v40, 16  ;;  %v9255_v16 = vld [vmem:[#allocation3 + $0x48] sm:$0xff]   ;;  %8203 = vmatprep.subr.bf16.mxu0 %v9265_v26 }
 0x30c   : > { %v4327_v35 = vor.u32 %v4326_v13, %v4323_v56  ;;  %v7682_v47 = vrot.slane %v6250_v15, 9  ;;  %v5225_v24 = vrot.slane %v5223_v20, 5  ;;  %v5239_v54 = vshll.u32 %v11053_v0, 16  ;;  %v9267_v21 = vld [vmem:[#allocation10 + $0xf0] sm:$0xff]   ;;  %v4173_v33 = vld [vmem:[#allocation3 + $0x54] sm:$0xf] }
 0x30d   : > { %8282 = vmatpush3.bf16.msra.mxu1 %v9262_v51  ;;  %v6316_v1 = vrot.slane %v6251_v45, 5  ;;  %v4338_v12 = vrot.slane %v4337_v43, 4  ;;  %v6319_v50 = vrot.slane %v6252_v49, 5  ;;  %v11070_v29 = vrot.slane %v5229_v31, 5  ;;  %8204 = vmatpush3.bf16.msra.mxu0 %v9267_v21  ;;  %v4174_v63 = vld [vmem:[#allocation3 + $0x58] sm:$0xf] }
 0x30e   : > { %v4328_v8 = vrot.slane %v4327_v35, 4  ;;  %v7683_v11 = vrot.slane %v6253_v19, 9  ;;  %v5235_v27 = vrot.slane %v5233_v9, 4  ;;  %v6323_v34 = vrot.slane %v6254_v22, 5  ;;  %8283 = vmatprep.subr.bf16.mxu1 %v9266_v39  ;;  %v4175_v32 = vld [vmem:[#allocation3 + $0x5c] sm:$0x1] }
 0x30f   : > { %v11066_v5 = vsel %vm10085_vm5, %v7682_v47, %v6316_v1  ;;  %v6318_v59 = vrot.slane %v6316_v1, 4  ;;  %v4343_v37 = vsel %vm9853_vm2, %v4338_v12, %v4342_v42  ;;  %v6326_v57 = vrot.slane %v6255_v6, 5  ;;  %v5072_v38 = vld [vmem:[#allocation3 + $0x60] sm:$0xf]  ;;  %v5073_v42 = vld [vmem:[#allocation3 + $0x64] sm:$0xf] }
 0x310   : > { %8520 = vmatmul.mubr.bf16.gmra.mrb[72].mxu1 %v7637_v23  ;;  %v4333_v61 = vsel %vm9853_vm2, %v4328_v8, %v4332_v44  ;;  %v11080_v62 = vsel %vm10085_vm5, %v7683_v11, %v6323_v34  ;;  %v6325_v51 = vrot.slane %v6323_v34, 4  ;;  %v9268_v23 = vld [vmem:[#allocation10 + $0x1b0] sm:$0xff]   ;;  %v5202_v53 = vor.u32 %v11025_v58, %v11022_v36  ;;  %v6256_v20 = vld [vmem:[#allocation3 + $0x60] sm:$0xe]  ;;  %v6257_v31 = vld [vmem:[#allocation3 + $0x64] sm:$0xf] }
 0x311   : > { %v7564_v55 = vcombine.low %v4333_v61, %v4343_v37  ;;  %v11074_v30 = vsel %vm10085_vm5, %v6318_v59, %v6319_v50  ;;  %8284 = vmatpush3.bf16.msra.mxu1 %v9268_v23  ;;  %v5212_v17 = vor.u32 %v11035_v4, %v11033_v7  ;;  %v5226_v48 = vor.u32 %v5225_v24, %v11059_v41  ;;  %v6258_v49 = vld [vmem:[#allocation3 + $0x68] sm:$0x1]  ;;  %v9263_v61 = vld [vmem:[#allocation3 + $0x54] sm:$0xff]   ;;  %v6259_v6 = vld [vmem:[#allocation3 + $0x6c] sm:$0xe] }
 0x312   : > { %v7690_v46 = vcombine.low %v11066_v5, %v11074_v30  ;;  %v11086_v14 = vsel %vm10085_vm5, %v6325_v51, %v6326_v57  ;;  %v4345_v2 = vshrl.u32 %v4173_v33, 16  ;;  %v4348_v36 = vshll.u32 %v4173_v33, 16  ;;  %v11104_v26 = vld [vmem:[#allocation3 + $0x68] sm:$0x1]  ;;  %v6260_v11 = vld [vmem:[#allocation3 + $0x70] sm:$0xf] }
 0x313   : > { %4848 = vmatprep.mubr.bf16.mxu0 %v7564_v55  ;;  %v7691_v60 = vcombine.low %v11080_v62, %v11086_v14  ;;  %v4354_v58 = vshll.u32 %v4174_v63, 16  ;;  %v4358_v18 = vshrl.u32 %v4174_v63, 16  ;;  %v11093_v40 = vrot.slane %v5202_v53, 4  ;;  %v6261_v57 = vld [vmem:[#allocation3 + $0x74] sm:$0x1] }
 0x314   : > { %4849 = vmatmul.mubr.bf16.gmra.mrb[124].mxu0 %v9255_v16  ;;  %v5236_v56 = vor.u32 %v5235_v27, %v11070_v29  ;;  %v4364_v13 = vshll.u32 %v4175_v32, 16  ;;  %v5244_v44 = vshrl.u32 %v5072_v38, 16  ;;  %v4347_v4 = vrot.slane %v4345_v2, 4  ;;  %v9270_v32 = vld [vmem:[#allocation10 + $0x1f8] sm:$0xff]  }
 0x315   : > { %v4350_v3 = vrot.slane %v4348_v36, 5  ;;  %v4356_v28 = vrot.slane %v4354_v58, 5  ;;  %v4360_v0 = vrot.slane %v4358_v18, 4  ;;  %v11096_v15 = vrot.slane %v5212_v17, 4  ;;  %8285 = vmatprep.subr.bf16.mxu1 %v9270_v32  ;;  %v9271_v58 = vld [vmem:[#allocation10 + $0xf8] sm:$0xff]  }
 0x316   : > { %v11098_v35 = vrot.slane %v5239_v54, 5  ;;  %v11100_v45 = vrot.slane %v5226_v48, 4  ;;  %v4366_v9 = vrot.slane %v4364_v13, 5  ;;  %v11102_v47 = vrot.slane %v5236_v56, 4  ;;  %v9269_v48 = vld [vmem:[#allocation10 + $0x138] sm:$0xff]  }
 0x317   : > { %v4351_v43 = vor.u32 %v4350_v3, %v4347_v4  ;;  %v4361_v41 = vor.u32 %v4360_v0, %v4356_v28  ;;  %v11106_v8 = vrot.slane %v5244_v44, 4  ;;  %v7684_v24 = vrot.slane %v6256_v20, 9  ;;  %8205 = vmatprep.subr.bf16.mxu0 %v9269_v48  ;;  %v9272_v56 = vld [vmem:[#allocation10 + $0x1b8] sm:$0xff]   ;;  %v5452_v44 = vld [vmem:[#allocation2 + $0x8] sm:$0xff] }
 0x318   : > { %v6330_v1 = vrot.slane %v6257_v31, 5  ;;  %v5247_v54 = vshll.u32 %v5072_v38, 16  ;;  %v5253_v16 = vshll.u32 %v5073_v42, 16  ;;  %v6333_v39 = vrot.slane %v6258_v49, 5  ;;  %8206 = vmatpush3.bf16.msra.mxu0 %v9271_v58  ;;  %v5982_v4 = vld [vmem:[#allocation3 + $0x18] sm:$0xf]  ;;  %8286 = vmatpush3.bf16.msra.mxu1 %v9272_v56 }
 0x319   : > { %v4352_v12 = vrot.slane %v4351_v43, 4  ;;  %v4362_v50 = vrot.slane %v4361_v41, 4  ;;  %v5257_v27 = vshrl.u32 %v5073_v42, 16  ;;  %v7685_v21 = vrot.slane %v6259_v6, 9  ;;  %v5983_v3 = vld [vmem:[#allocation3 + $0x1c] sm:$0xf] }
 0x31a   : > { %v11110_v59 = vsel %vm10085_vm5, %v7684_v24, %v6330_v1  ;;  %v6332_v19 = vrot.slane %v6330_v1, 4  ;;  %v5263_v51 = vshll.u32 %v11104_v26, 16  ;;  %v6337_v53 = vrot.slane %v6260_v11, 5  ;;  %v5451_v43 = vld [vmem:[#allocation2] sm:$0xff]  ;;  %v9273_v1 = vld [vmem:[#allocation3 + $0x18] sm:$0xff]  }
 0x31b   : > { %v4357_v37 = vsel %vm9853_vm2, %v4352_v12, %v4356_v28  ;;  %v4367_v22 = vsel %vm9853_vm2, %v4362_v50, %v4366_v9  ;;  %v6340_v17 = vrot.slane %v6261_v57, 5  ;;  %v11127_v2 = vrot.slane %v5247_v54, 5  ;;  %v5984_v28 = vld [vmem:[#allocation3 + $0x20] sm:$0x1]  ;;  %v9274_v12 = vld [vmem:[#allocation10 + $0x200] sm:$0xff]   ;;  %v5455_v54 = vld [vmem:[#allocation2 + $0x20] sm:$0xff] }
 0x31c   : > { %v7565_v55 = vcombine.low %v4357_v37, %v4367_v22  ;;  %v11118_v34 = vsel %vm10085_vm5, %v6332_v19, %v6333_v39  ;;  %v11125_v33 = vsel %vm10085_vm5, %v7685_v21, %v6337_v53  ;;  %v6339_v63 = vrot.slane %v6337_v53, 4  ;;  %5974 = vst [vmem:[#allocation2] sm:$0xff] %v9273_v1  ;;  %8523 = vmatprep.subr.bf16.mxu1 %v9274_v12  ;;  %v5985_v19 = vld [vmem:[#allocation3 + $0x24] sm:$0xf]  ;;  %v5986_v39 = vld [vmem:[#allocation3 + $0x28] sm:$0xf] }
 0x31d   : > { %v7692_v23 = vcombine.low %v11110_v59, %v11118_v34  ;;  %v11133_v18 = vrot.slane %v5253_v16, 5  ;;  %v11137_v13 = vrot.slane %v5257_v27, 4  ;;  %v6007_v25 = vshrl.u32 %v5982_v4, 16  ;;  %v5987_v37 = vld [vmem:[#allocation3 + $0x2c] sm:$0x1]  ;;  %v11139_v27 = vld [vmem:[#allocation3 + $0x24] sm:$0xff]  }
 0x31e   : > { %4856 = vmatprep.mubr.bf16.mxu0 %v7565_v55  ;;  %v11131_v36 = vsel %vm10085_vm5, %v6339_v63, %v6340_v17  ;;  %v6010_v0 = vshll.u32 %v5982_v4, 16  ;;  %v6016_v20 = vshll.u32 %v5983_v3, 16  ;;  %v6020_v42 = vshrl.u32 %v5983_v3, 16  ;;  %v5454_v17 = vld [vmem:[#allocation2 + $0x18] sm:$0xff] }
 0x31f   : > { %4857 = vmatmul.mubr.bf16.gmra.mrb[128].mxu0 %v9263_v61  ;;  %v7693_v38 = vcombine.low %v11125_v33, %v11131_v36  ;;  %v6026_v31 = vshll.u32 %v5984_v28, 16  ;;  %v6009_v41 = vrot.slane %v6007_v25, 4  ;;  %v6031_v22 = vshrl.u32 %v5985_v19, 16  ;;  %5975 = vst [vmem:[#allocation2 + $0x18] sm:$0xff] %v11139_v27  ;;  %v5458_v3 = vld [vmem:[#allocation2 + $0x38] sm:$0xff] }
 0x320   : > { %5699 = vmatprep.mubr.bf16.mxu0 %v5452_v44  ;;  %v6012_v9 = vrot.slane %v6010_v0, 5  ;;  %v6018_v49 = vrot.slane %v6016_v20, 5  ;;  %v6022_v24 = vrot.slane %v6020_v42, 4  ;;  %v6034_v6 = vshll.u32 %v5985_v19, 16  ;;  %v5988_v20 = vld [vmem:[#allocation3 + $0x30] sm:$0xf] }
 0x321   : > { %v6028_v50 = vrot.slane %v6026_v31, 5  ;;  %v6040_v11 = vshll.u32 %v5986_v39, 16  ;;  %v6044_v55 = vshrl.u32 %v5986_v39, 16  ;;  %v6050_v53 = vshll.u32 %v5987_v37, 16  ;;  %v5989_v42 = vld [vmem:[#allocation3 + $0x34] sm:$0xf] }
 0x322   : > { %v6013_v16 = vor.u32 %v6012_v9, %v6009_v41  ;;  %v6023_v61 = vor.u32 %v6022_v24, %v6018_v49  ;;  %v6033_v48 = vrot.slane %v6031_v22, 4  ;;  %v6036_v63 = vrot.slane %v6034_v6, 5  ;;  %v5990_v31 = vld [vmem:[#allocation3 + $0x38] sm:$0x1]  ;;  %v5457_v19 = vld [vmem:[#allocation2 + $0x30] sm:$0xff] }
 0x323   : > { %v6042_v32 = vrot.slane %v6040_v11, 5  ;;  %v6046_v58 = vrot.slane %v6044_v55, 4  ;;  %v6052_v4 = vrot.slane %v6050_v53, 5  ;;  %v6055_v41 = vshrl.u32 %v5988_v20, 16 }
 0x324   : > { %v6014_v57 = vrot.slane %v6013_v16, 4  ;;  %v6024_v21 = vrot.slane %v6023_v61, 4  ;;  %v6037_v25 = vor.u32 %v6036_v63, %v6033_v48  ;;  %v6058_v9 = vshll.u32 %v5988_v20, 16  ;;  %v11146_v16 = vld [vmem:[#allocation3 + $0x30] sm:$0xff]   ;;  %v5991_v48 = vld [vmem:[#allocation3 + $0x3c] sm:$0xf] }
 0x325   : > { %v6047_v0 = vor.u32 %v6046_v58, %v6042_v32  ;;  %v6064_v24 = vshll.u32 %v5989_v42, 16  ;;  %v6057_v39 = vrot.slane %v6055_v41, 4  ;;  %5976 = vst [vmem:[#allocation2 + $0x30] sm:$0xff] %v11146_v16  ;;  %v5992_v63 = vld [vmem:[#allocation3 + $0x40] sm:$0xf]  ;;  %v11155_v20 = vld [vmem:[#allocation2 + $0x48] sm:$0xff] }
 0x326   : > { %v6019_v56 = vsel %vm9853_vm2, %v6014_v57, %v6018_v49  ;;  %v6029_v44 = vsel %vm9853_vm2, %v6024_v21, %v6028_v50  ;;  %v6038_v49 = vrot.slane %v6037_v25, 4  ;;  %v6074_v50 = vshll.u32 %v5990_v31, 16  ;;  %v9278_v21 = vld [vmem:[#allocation10 + $0x210] sm:$0xff]   ;;  %v5993_v58 = vld [vmem:[#allocation3 + $0x44] sm:$0x1]  ;;  %v11153_v25 = vld [vmem:[#allocation3 + $0x3c] sm:$0xff]  }
 0x327   : > { %5700 = vmatmul.mubr.bf16.vlgmr.msra.gmra.mrb[132].mxu0 %v5451_v43  ;;  %v7670_v28 = vcombine.low %v6019_v56, %v6029_v44  ;;  %v9276_v43 = vld [vmem:[#allocation10 + $0x208] sm:$0xff]   ;;  %v6048_v61 = vrot.slane %v6047_v0, 4  ;;  %v6060_v37 = vrot.slane %v6058_v9, 5  ;;  %v6066_v22 = vrot.slane %v6064_v24, 5  ;;  %5977 = vst [vmem:[#allocation2 + $0x48] sm:$0xff] %v11153_v25 }
 0x328   : > { %5707 = vmatprep.mubr.bf16.mxu0 %v5455_v54  ;;  %v6068_v54 = vshrl.u32 %v5989_v42, 16  ;;  %v6043_v11 = vsel %vm9853_vm2, %v6038_v49, %v6042_v32  ;;  %v6076_v57 = vrot.slane %v6074_v50, 5  ;;  %v5461_v56 = vld [vmem:[#allocation2 + $0x50] sm:$0xff]  ;;  %v6079_v44 = vshrl.u32 %v5991_v48, 16 }
 0x329   : > { %6230 = vst [vmem:[#allocation2 + $0x8] sm:$0xff] %v7670_v28  ;;  %6630 = vmatprep.mubr.bf16.mxu1 %v7670_v28  ;;  %v6053_v55 = vsel %vm9853_vm2, %v6048_v61, %v6052_v4  ;;  %v6088_v28 = vshll.u32 %v5992_v63, 16  ;;  %v6098_v0 = vshll.u32 %v5993_v58, 16  ;;  %v9280_v61 = vld [vmem:[#allocation10 + $0x218] sm:$0xff]   ;;  %v9282_v58 = vld [vmem:[#allocation10 + $0x220] sm:$0xff]  }
 0x32a   : > { %6631 = vmatmul.mubr.bf16.vlgmr.msra.gmra.mrb[76].mxu1 %v9273_v1  ;;  %v6070_v6 = vrot.slane %v6068_v54, 4  ;;  %v7671_v53 = vcombine.low %v6043_v11, %v6053_v55  ;;  %v6081_v42 = vrot.slane %v6079_v44, 4  ;;  %v5996_v11 = vld [vmem:[#allocation3 + $0x50] sm:$0x1] }
 0x32b   : > { %8524 = vmatpush3.bf16.msra.mxu1 %v9274_v12  ;;  %v6092_v12 = vshrl.u32 %v5992_v63, 16  ;;  %v6090_v41 = vrot.slane %v6088_v28, 5  ;;  %v6100_v49 = vrot.slane %v6098_v0, 5  ;;  %v6122_v63 = vshll.u32 %v5996_v11, 16 }
 0x32c   : > { %8525 = vmatprep.subr.bf16.mxu1 %v9276_v43  ;;  %v6071_v1 = vor.u32 %v6070_v6, %v6066_v22  ;;  %6231 = vst [vmem:[#allocation2 + $0x20] sm:$0xff] %v7671_v53  ;;  %6638 = vmatprep.mubr.bf16.mxu1 %v7671_v53  ;;  %v5995_v6 = vld [vmem:[#allocation3 + $0x4c] sm:$0xf] }
 0x32d   : > { %v6094_v9 = vrot.slane %v6092_v12, 4 }
 0x32e   : > { %v6072_v4 = vrot.slane %v6071_v1, 4  ;;  %v11163_v1 = vld [vmem:[#allocation2 + $0x60] sm:$0xff] }
 0x32f   : > { %5708 = vmatmul.mubr.bf16.gmra.mrb[136].mxu0 %v5454_v17  ;;  %v6061_v17 = vor.u32 %v6060_v37, %v6057_v39  ;;  %8526 = vmatpush3.bf16.msra.mxu1 %v9276_v43  ;;  %v6095_v37 = vor.u32 %v6094_v9, %v6090_v41  ;;  %v5994_v43 = vld [vmem:[#allocation3 + $0x48] sm:$0xf]  ;;  %v5997_v9 = vld [vmem:[#allocation3 + $0x54] sm:$0xf] }
 0x330   : > { %5715 = vmatprep.mubr.bf16.mxu0 %v5458_v3  ;;  %v6082_v3 = vshll.u32 %v5991_v48, 16  ;;  %v6077_v54 = vsel %vm9853_vm2, %v6072_v4, %v6076_v57  ;;  %8527 = vmatprep.subr.bf16.mxu1 %v9278_v21  ;;  %v6103_v55 = vshrl.u32 %v5994_v43, 16  ;;  %v6106_v53 = vshll.u32 %v5994_v43, 16  ;;  %v11165_v57 = vld [vmem:[#allocation3 + $0x48] sm:$0xff]  }
 0x331   : > { %v6062_v32 = vrot.slane %v6061_v17, 4  ;;  %v6112_v17 = vshll.u32 %v5995_v6, 16  ;;  %v6096_v48 = vrot.slane %v6095_v37, 4  ;;  %5978 = vst [vmem:[#allocation2 + $0x60] sm:$0xff] %v11165_v57  ;;  %v6124_v4 = vrot.slane %v6122_v63, 5  ;;  %v11189_v63 = vld [vmem:[#allocation3 + $0x60] sm:$0xff]  }
 0x332   : > { %v6084_v31 = vrot.slane %v6082_v3, 5  ;;  %6639 = vmatmul.mubr.bf16.gmra.mrb[80].mxu1 %v11139_v27  ;;  %v6105_v44 = vrot.slane %v6103_v55, 4  ;;  %v6108_v3 = vrot.slane %v6106_v53, 5  ;;  %v9284_v55 = vld [vmem:[#allocation10 + $0x228] sm:$0xff]   ;;  %5980 = vst [vmem:[#allocation2 + $0x90] sm:$0xff] %v11189_v63 }
 0x333   : > { %v6067_v24 = vsel %vm9853_vm2, %v6062_v32, %v6066_v22  ;;  %v6116_v22 = vshrl.u32 %v5995_v6, 16  ;;  %8528 = vmatpush3.bf16.msra.mxu1 %v9278_v21  ;;  %v6114_v27 = vrot.slane %v6112_v17, 5  ;;  %v6101_v12 = vsel %vm9853_vm2, %v6096_v48, %v6100_v49  ;;  %v5464_v32 = vld [vmem:[#allocation2 + $0x68] sm:$0xff] }
 0x334   : > { %v7672_v50 = vcombine.low %v6067_v24, %v6077_v54  ;;  %v6085_v39 = vor.u32 %v6084_v31, %v6081_v42  ;;  %8529 = vmatprep.subr.bf16.mxu1 %v9280_v61  ;;  %v11172_v21 = vld [vmem:[#allocation3 + $0x54] sm:$0xff]   ;;  %v6109_v42 = vor.u32 %v6108_v3, %v6105_v44  ;;  %v5999_v54 = vld [vmem:[#allocation3 + $0x5c] sm:$0x1] }
 0x335   : > { %v5998_v24 = vld [vmem:[#allocation3 + $0x58] sm:$0xf]  ;;  %5979 = vst [vmem:[#allocation2 + $0x78] sm:$0xff] %v11172_v21  ;;  %v6146_v11 = vshll.u32 %v5999_v54, 16 }
 0x336   : > { %6232 = vst [vmem:[#allocation2 + $0x38] sm:$0xff] %v7672_v50  ;;  %6646 = vmatprep.mubr.bf16.mxu1 %v7672_v50  ;;  %v6127_v50 = vshrl.u32 %v5997_v9, 16  ;;  %v6136_v37 = vshll.u32 %v5998_v24, 16  ;;  %v6140_v43 = vshrl.u32 %v5998_v24, 16  ;;  %v6110_v49 = vrot.slane %v6109_v42, 4  ;;  %v11192_v24 = vld [vmem:[#allocation3 + $0x6c] sm:$0xff]  }
 0x337   : > { %5716 = vmatmul.mubr.bf16.gmra.mrb[140].mxu0 %v5457_v19  ;;  %v6086_v19 = vrot.slane %v6085_v39, 4  ;;  %8530 = vmatpush3.bf16.msra.mxu1 %v9280_v61  ;;  %v6130_v39 = vshll.u32 %v5997_v9, 16  ;;  %v6148_v48 = vrot.slane %v6146_v11, 5  ;;  %v6004_v11 = vld [vmem:[#allocation3 + $0x70] sm:$0xf]  ;;  %5981 = vst [vmem:[#allocation2 + $0xa8] sm:$0xff] %v11192_v24 }
 0x338   : > { %5723 = vmatprep.mubr.bf16.mxu0 %v5461_v56  ;;  %v6118_v56 = vrot.slane %v6116_v22, 4  ;;  %8531 = vmatprep.subr.bf16.mxu1 %v9282_v58  ;;  %v6129_v61 = vrot.slane %v6127_v50, 4  ;;  %v6138_v17 = vrot.slane %v6136_v37, 5  ;;  %v6142_v22 = vrot.slane %v6140_v43, 4 }
 0x339   : > { %v6091_v28 = vsel %vm9853_vm2, %v6086_v19, %v6090_v41  ;;  %v5208_v41 = vsel %vm9853_vm2, %v11093_v40, %v11033_v7  ;;  %v6132_v53 = vrot.slane %v6130_v39, 5  ;;  %v5218_v19 = vsel %vm9853_vm2, %v11096_v15, %v11057_v10  ;;  %v6002_v10 = vld [vmem:[#allocation3 + $0x68] sm:$0x1] }
 0x33a   : > { %v7673_v0 = vcombine.low %v6091_v28, %v6101_v12  ;;  %v6119_v31 = vor.u32 %v6118_v56, %v6114_v27  ;;  %6647 = vmatmul.mubr.bf16.gmra.mrb[84].mxu1 %v11146_v16  ;;  %v6115_v7 = vsel %vm9853_vm2, %v6110_v49, %v6114_v27  ;;  %v6143_v56 = vor.u32 %v6142_v22, %v6138_v17  ;;  %v6001_v28 = vld [vmem:[#allocation3 + $0x64] sm:$0xf]  ;;  %v9286_v16 = vld [vmem:[#allocation10 + $0x230] sm:$0xff]  }
 0x33b   : > { %8532 = vmatpush3.bf16.msra.mxu1 %v9282_v58  ;;  %v6133_v3 = vor.u32 %v6132_v53, %v6129_v61  ;;  %v6164_v27 = vshrl.u32 %v6001_v28, 16  ;;  %v6170_v42 = vshll.u32 %v6002_v10, 16  ;;  %v5232_v37 = vsel %vm9853_vm2, %v11100_v45, %v11070_v29  ;;  %v6005_v29 = vld [vmem:[#allocation3 + $0x74] sm:$0x1] }
 0x33c   : > { %6233 = vst [vmem:[#allocation2 + $0x50] sm:$0xff] %v7673_v0  ;;  %v6120_v6 = vrot.slane %v6119_v31, 4  ;;  %6654 = vmatprep.mubr.bf16.mxu1 %v7673_v0  ;;  %8533 = vmatprep.subr.bf16.mxu1 %v9284_v55  ;;  %v6144_v9 = vrot.slane %v6143_v56, 4  ;;  %v5242_v43 = vsel %vm9853_vm2, %v11102_v47, %v11098_v35  ;;  %v6184_v47 = vshll.u32 %v6004_v11, 16 }
 0x33d   : > { %v6134_v31 = vrot.slane %v6133_v3, 4  ;;  %v6166_v50 = vrot.slane %v6164_v27, 4  ;;  %v6172_v39 = vrot.slane %v6170_v42, 5  ;;  %v5260_v3 = vor.u32 %v11137_v13, %v11133_v18 }
 0x33e   : > { %v6125_v40 = vsel %vm9853_vm2, %v6120_v6, %v6124_v4  ;;  %v7619_v4 = vcombine.low %v5208_v41, %v5218_v19  ;;  %v6149_v49 = vsel %vm9853_vm2, %v6144_v9, %v6148_v48  ;;  %v6003_v6 = vld [vmem:[#allocation3 + $0x6c] sm:$0xf]  ;;  %v9288_v19 = vld [vmem:[#allocation10 + $0x238] sm:$0xff]   ;;  %v6186_v56 = vrot.slane %v6184_v47, 5 }
 0x33f   : > { %5724 = vmatmul.mubr.bf16.gmra.mrb[144].mxu0 %v11155_v20  ;;  %v6000_v20 = vld [vmem:[#allocation3 + $0x60] sm:$0xf]  ;;  %v7674_v44 = vcombine.low %v6115_v7, %v6125_v40  ;;  %v6139_v41 = vsel %vm9853_vm2, %v6134_v31, %v6138_v17  ;;  %8534 = vmatpush3.bf16.msra.mxu1 %v9284_v55  ;;  %v6175_v45 = vshrl.u32 %v6003_v6, 16  ;;  %v6178_v35 = vshll.u32 %v6003_v6, 16 }
 0x340   : > { %5731 = vmatprep.mubr.bf16.mxu0 %v5464_v32  ;;  %v6151_v15 = vshrl.u32 %v6000_v20, 16  ;;  %v6154_v12 = vshll.u32 %v6000_v20, 16  ;;  %v6160_v32 = vshll.u32 %v6001_v28, 16  ;;  %v7675_v61 = vcombine.low %v6139_v41, %v6149_v49  ;;  %8535 = vmatprep.subr.bf16.mxu1 %v9286_v16 }
 0x341   : > { %6234 = vst [vmem:[#allocation2 + $0x68] sm:$0xff] %v7674_v44  ;;  %v6188_v17 = vshrl.u32 %v6004_v11, 16  ;;  %v6194_v7 = vshll.u32 %v6005_v29, 16  ;;  %v5250_v55 = vor.u32 %v11127_v2, %v11106_v8  ;;  %v6177_v20 = vrot.slane %v6175_v45, 4  ;;  %v9248_v2 = vld [vmem:[#allocation3 + $0x48] sm:$0xff]  }
 0x342   : > { %v6153_v0 = vrot.slane %v6151_v15, 4  ;;  %v6156_v58 = vrot.slane %v6154_v12, 5  ;;  %v6162_v54 = vrot.slane %v6160_v32, 5  ;;  %6655 = vmatmul.mubr.bf16.gmra.mrb[88].mxu1 %v11153_v25  ;;  %6235 = vst [vmem:[#allocation2 + $0x80] sm:$0xff] %v7675_v61  ;;  %v7620_v27 = vcombine.low %v5232_v37, %v5242_v43 }
 0x343   : > { %6662 = vmatprep.mubr.bf16.mxu1 %v7674_v44  ;;  %8536 = vmatpush3.bf16.msra.mxu1 %v9286_v16  ;;  %v6190_v28 = vrot.slane %v6188_v17, 4  ;;  %v6196_v32 = vrot.slane %v6194_v7, 5  ;;  %v5265_v13 = vrot.slane %v5263_v51, 5  ;;  %v5251_v44 = vrot.slane %v5250_v55, 4 }
 0x344   : > { %v6157_v53 = vor.u32 %v6156_v58, %v6153_v0  ;;  %v6167_v22 = vor.u32 %v6166_v50, %v6162_v54  ;;  %8537 = vmatprep.subr.bf16.mxu1 %v9288_v19  ;;  %v5261_v16 = vrot.slane %v5260_v3, 4  ;;  %v9256_v58 = vld [vmem:[#allocation3 + $0x54] sm:$0xff]   ;;  %v9264_v50 = vld [vmem:[#allocation3 + $0x60] sm:$0xff]  }
 0x345   : > { %v6191_v12 = vor.u32 %v6190_v28, %v6186_v56  ;;  %v5256_v26 = vsel %vm9853_vm2, %v5251_v44, %v11133_v18  ;;  %v6390_v18 = vld [vmem:[#allocation2 + $0x40] sm:$0xff] }
 0x346   : > { %v6158_v40 = vrot.slane %v6157_v53, 4  ;;  %v6168_v48 = vrot.slane %v6167_v22, 4  ;;  %v5266_v51 = vsel %vm9853_vm2, %v5261_v16, %v5265_v13 }
 0x347   : > { %5732 = vmatmul.mubr.bf16.gmra.mrb[148].mxu0 %v11163_v1  ;;  %v6180_v1 = vrot.slane %v6178_v35, 5  ;;  %8538 = vmatpush3.bf16.msra.mxu1 %v9288_v19 }
 0x348   : > { %5739 = vmatprep.mubr.bf16.mxu0 %v7619_v4  ;;  %v6163_v10 = vsel %vm9853_vm2, %v6158_v40, %v6162_v54  ;;  %v6173_v8 = vsel %vm9853_vm2, %v6168_v48, %v6172_v39  ;;  %v6192_v4 = vrot.slane %v6191_v12, 4  ;;  %v7621_v54 = vcombine.low %v5256_v26, %v5266_v51  ;;  %v6393_v39 = vld [vmem:[#allocation2 + $0x58] sm:$0xff] }
 0x349   : > { %v7676_v25 = vcombine.low %v6163_v10, %v6173_v8  ;;  %v6181_v15 = vor.u32 %v6180_v1, %v6177_v20 }
 0x34a   : > { %v6197_v9 = vsel %vm9853_vm2, %v6192_v4, %v6196_v32  ;;  %6663 = vmatmul.mubr.bf16.gmra.mrb[92].mxu1 %v11165_v57  ;;  %v6384_v57 = vld [vmem:[#allocation2 + $0x10] sm:$0xff] }
 0x34b   : > { %6236 = vst [vmem:[#allocation2 + $0x98] sm:$0xff] %v7676_v25  ;;  %v6182_v42 = vrot.slane %v6181_v15, 4  ;;  %6670 = vmatprep.mubr.bf16.mxu1 %v7675_v61 }
 0x34d   : > { %v6187_v31 = vsel %vm9853_vm2, %v6182_v42, %v6186_v56 }
 0x34e   : > { %v7677_v0 = vcombine.low %v6187_v31, %v6197_v9 }
 0x34f   : > { %5740 = vmatmul.mubr.bf16.gmra.mrb[152].mxu0 %v9248_v2 }
 0x350   : > { %5747 = vmatprep.mubr.bf16.mxu0 %v7620_v27  ;;  %6237 = vst [vmem:[#allocation2 + $0xb0] sm:$0xff] %v7677_v0 }
 0x352   : > { %6671 = vmatmul.mubr.bf16.gmra.mrb[96].mxu1 %v11172_v21 }
 0x353   : > { %6678 = vmatprep.mubr.bf16.mxu1 %v7676_v25 }
 0x357   : > { %5748 = vmatmul.mubr.bf16.gmra.mrb[156].mxu0 %v9256_v58 }
 0x358   : > { %5755 = vmatprep.mubr.bf16.mxu0 %v7621_v54 }
 0x35a   : > { %6679 = vmatmul.mubr.bf16.gmra.mrb[100].mxu1 %v11189_v63 }
 0x35b   : > { %6686 = vmatprep.mubr.bf16.mxu1 %v7677_v0 }
 0x35f   : > { %5756 = vmatmul.mubr.bf16.gmra.mrb[160].mxu0 %v9264_v50 }
 0x362   : > { %6687 = vmatmul.mubr.bf16.gmra.mrb[104].mxu1 %v11192_v24 }
 0x363   : > { %8539 = vmatprep.mubr.bf16.mxu1 %v6384_v57 }
 0x36a   : > { %8540 = vmatmul.mubr.bf16.vlgmr.msra.gmra.mrb[60].mxu1 %v6387_v52 }
 0x36b   : > { %8543 = vmatprep.mubr.bf16.mxu1 %v6390_v18 }
 0x372   : > { %8544 = vmatmul.mubr.bf16.gmra.mrb[64].mxu1 %v6393_v39 }
 0x373   : > { %8547 = vmatprep.mubr.bf16.mxu1 %v7690_v46 }
 0x37a   : > { %8548 = vmatmul.mubr.bf16.gmra.mrb[68].mxu1 %v7691_v60 }
 0x37b   : > { %8551 = vmatprep.mubr.bf16.mxu1 %v7692_v23 }
 0x382   : > { %8552 = vmatmul.mubr.bf16.gmra.mrb[72].mxu1 %v7693_v38 }
 0x399   : > { %v8127_v21 = vpop.f32.mrb[100].mxu0 }
 0x39a   : > { %v8128_v37 = vpop.f32.mrb[101].mxu0 }
 0x39b   : > { %v8129_v43 = vadd.f32 %v8128_v37, %v8127_v21  ;;  %v8130_v41 = vpop.f32.mrb[102].mxu0 }
 0x39c   : > { %v8131_v63 = vpop.f32.mrb[103].mxu0 }
 0x39d   : > { %v8132_v24 = vadd.f32 %v8131_v63, %v8130_v41 }
 0x3a2   : > { %v8133_v5 = vpop.f32.mrb[104].mxu0 }
 0x3a3   : > { %v8134_v30 = vpop.f32.mrb[105].mxu0 }
 0x3a4   : > { %v8135_v46 = vadd.f32 %v8134_v30, %v8133_v5  ;;  %v8136_v49 = vpop.f32.mrb[106].mxu0 }
 0x3a5   : > { %v8137_v6 = vpop.f32.mrb[107].mxu0 }
 0x3a6   : > { %v8138_v11 = vadd.f32 %v8137_v6, %v8136_v49 }
 0x3b0   : > { %v8139_v61 = vpop.f32.mrb[108].mxu0 }
 0x3b1   : > { %v8140_v53 = vpop.f32.mrb[109].mxu0 }
 0x3b2   : > { %v11244_v22 = vadd.f32 %v8140_v53, %v8139_v61  ;;  %v8142_v62 = vpop.f32.mrb[110].mxu0 }
 0x3b3   : > { %v8143_v14 = vpop.f32.mrb[111].mxu0 }
 0x3b4   : > { %v11246_v60 = vadd.f32 %v8143_v14, %v8142_v62 }
 0x3bd   : > { %v8145_v59 = vpop.f32.mrb[112].mxu0 }
 0x3be   : > { %v8146_v34 = vpop.f32.mrb[113].mxu0 }
 0x3bf   : > { %v11248_v23 = vadd.f32 %v8146_v34, %v8145_v59  ;;  %v8148_v33 = vpop.f32.mrb[114].mxu0 }
 0x3c0   : > { %v8149_v36 = vpop.f32.mrb[115].mxu0 }
 0x3c1   : > { %v11250_v38 = vadd.f32 %v8149_v36, %v8148_v33 }
 0x3ce   : > { %v8151_v29 = vpop.f32.mrb[116].mxu0 }
 0x3cf   : > { %v8152_v45 = vpop.f32.mrb[117].mxu0 }
 0x3d0   : > { %v11252_v19 = vadd.f32 %v8152_v45, %v8151_v29  ;;  %v8154_v35 = vpop.f32.mrb[118].mxu0 }
 0x3d1   : > { %v8155_v47 = vpop.f32.mrb[119].mxu0 }
 0x3d2   : > { %v11254_v17 = vadd.f32 %v8155_v47, %v8154_v35 }
 0x3db   : > { %v8157_v7 = vpop.f32.mrb[120].mxu0 }
 0x3dc   : > { %v8158_v55 = vpop.f32.mrb[121].mxu0 }
 0x3dd   : > { %v11256_v40 = vadd.f32 %v8158_v55, %v8157_v7  ;;  %v8160_v48 = vpop.f32.mrb[122].mxu0 }
 0x3de   : > { %v8161_v20 = vpop.f32.mrb[123].mxu0 }
 0x3df   : > { %v11258_v3 = vadd.f32 %v8161_v20, %v8160_v48 }
 0x3e7   : > { %v8163_v1 = vpop.f32.mrb[124].mxu0 }
 0x3e8   : > { %v8164_v56 = vpop.f32.mrb[125].mxu0 }
 0x3e9   : > { %v11260_v28 = vadd.f32 %v8164_v56, %v8163_v1  ;;  %v8166_v10 = vpop.f32.mrb[126].mxu0 }
 0x3ea   : > { %v8167_v8 = vpop.f32.mrb[127].mxu0 }
 0x3eb   : > { %v11262_v2 = vadd.f32 %v8167_v8, %v8166_v10 }
 0x3f2   : > { %v8169_v25 = vpop.f32.mrb[128].mxu0 }
 0x3f3   : > { %v8170_v15 = vpop.f32.mrb[129].mxu0 }
 0x3f4   : > { %v11264_v12 = vadd.f32 %v8170_v15, %v8169_v25  ;;  %v8172_v32 = vpop.f32.mrb[130].mxu0 }
 0x3f5   : > { %v8173_v27 = vpop.f32.mrb[131].mxu0 }
 0x3f6   : > { %v11266_v13 = vadd.f32 %v8173_v27, %v8172_v32 }
 0x3fa   : > { %v8207_v44 = vpop.f32.mrb[132].mxu0 }
 0x3fb   : > { %v8208_v16 = vpop.f32.mrb[133].mxu0 }
 0x3fc   : > { %v8209_v42 = vadd.f32 %v8208_v16, %v8207_v44  ;;  %v8210_v4 = vpop.f32.mrb[134].mxu0 }
 0x3fd   : > { %v8211_v31 = vpop.f32.mrb[135].mxu0  ;;  %v8287_v58 = vpop.f32.mrb[76].mxu1 }
 0x3fe   : > { %v8766_v9 = vadd.f32 %v8209_v42, %v8129_v43  ;;  %v8212_v0 = vadd.f32 %v8211_v31, %v8210_v4  ;;  %v8288_v50 = vpop.f32.mrb[77].mxu1 }
 0x3ff   : > { %v8289_v18 = vadd.f32 %v8288_v50, %v8287_v58  ;;  %v8290_v39 = vpop.f32.mrb[78].mxu1 }
 0x400   : > { %v8784_v26 = vadd.f32 %v8212_v0, %v8132_v24  ;;  %v8291_v37 = vpop.f32.mrb[79].mxu1 }
 0x401   : > { %v11268_v5 = vadd.f32 %v8766_v9, %v8289_v18  ;;  %v8292_v30 = vadd.f32 %v8291_v37, %v8290_v39 }
 0x402   : > { %v8213_v51 = vpop.f32.mrb[136].mxu0 }
 0x403   : > { %v8214_v54 = vpop.f32.mrb[137].mxu0  ;;  %v11270_v6 = vadd.f32 %v8784_v26, %v8292_v30 }
 0x404   : > { %v8215_v57 = vadd.f32 %v8214_v54, %v8213_v51  ;;  %v8216_v52 = vpop.f32.mrb[138].mxu0 }
 0x405   : > { %v8217_v21 = vpop.f32.mrb[139].mxu0  ;;  %v8293_v24 = vpop.f32.mrb[80].mxu1 }
 0x406   : > { %v8757_v41 = vadd.f32 %v8215_v57, %v8135_v46  ;;  %v8218_v63 = vadd.f32 %v8217_v21, %v8216_v52  ;;  %v8294_v53 = vpop.f32.mrb[81].mxu1 }
 0x407   : > { %v8295_v59 = vadd.f32 %v8294_v53, %v8293_v24  ;;  %v8296_v34 = vpop.f32.mrb[82].mxu1 }
 0x408   : > { %v8775_v49 = vadd.f32 %v8218_v63, %v8138_v11  ;;  %v8297_v36 = vpop.f32.mrb[83].mxu1 }
 0x409   : > { %v11273_v45 = vadd.f32 %v8757_v41, %v8295_v59  ;;  %v8298_v35 = vadd.f32 %v8297_v36, %v8296_v34 }
 0x40a   : > { %v8219_v43 = vpop.f32.mrb[140].mxu0 }
 0x40b   : > { %v8220_v61 = vpop.f32.mrb[141].mxu0  ;;  %v11276_v47 = vadd.f32 %v8775_v49, %v8298_v35 }
 0x40c   : > { %v8221_v62 = vadd.f32 %v8220_v61, %v8219_v43  ;;  %v8222_v14 = vpop.f32.mrb[142].mxu0 }
 0x40d   : > { %v8223_v33 = vpop.f32.mrb[143].mxu0  ;;  %v8299_v55 = vpop.f32.mrb[84].mxu1 }
 0x40e   : > { %v8802_v29 = vadd.f32 %v8221_v62, %v11244_v22  ;;  %v8224_v46 = vadd.f32 %v8223_v33, %v8222_v14  ;;  %v8300_v20 = vpop.f32.mrb[85].mxu1 }
 0x40f   : > { %v8301_v10 = vadd.f32 %v8300_v20, %v8299_v55  ;;  %v8302_v8 = vpop.f32.mrb[86].mxu1 }
 0x410   : > { %v8820_v11 = vadd.f32 %v8224_v46, %v11246_v60  ;;  %v8303_v15 = vpop.f32.mrb[87].mxu1 }
 0x411   : > { %v11279_v27 = vadd.f32 %v8802_v29, %v8301_v10  ;;  %v8304_v44 = vadd.f32 %v8303_v15, %v8302_v8 }
 0x412   : > { %v8225_v7 = vpop.f32.mrb[144].mxu0 }
 0x413   : > { %v8226_v48 = vpop.f32.mrb[145].mxu0  ;;  %v11282_v16 = vadd.f32 %v8820_v11, %v8304_v44 }
 0x414   : > { %v8227_v1 = vadd.f32 %v8226_v48, %v8225_v7  ;;  %v8228_v56 = vpop.f32.mrb[146].mxu0 }
 0x415   : > { %v8229_v25 = vpop.f32.mrb[147].mxu0  ;;  %v8305_v4 = vpop.f32.mrb[88].mxu1 }
 0x416   : > { %v8793_v22 = vadd.f32 %v8227_v1, %v11248_v23  ;;  %v8230_v32 = vadd.f32 %v8229_v25, %v8228_v56  ;;  %v8306_v9 = vpop.f32.mrb[89].mxu1 }
 0x417   : > { %v8307_v51 = vadd.f32 %v8306_v9, %v8305_v4  ;;  %v8308_v58 = vpop.f32.mrb[90].mxu1 }
 0x418   : > { %v8811_v60 = vadd.f32 %v8230_v32, %v11250_v38  ;;  %v8309_v50 = vpop.f32.mrb[91].mxu1 }
 0x419   : > { %v11285_v52 = vadd.f32 %v8793_v22, %v8307_v51  ;;  %v8310_v18 = vadd.f32 %v8309_v50, %v8308_v58 }
 0x41a   : > { %v8231_v42 = vpop.f32.mrb[148].mxu0 }
 0x41b   : > { %v8232_v31 = vpop.f32.mrb[149].mxu0  ;;  %v11288_v39 = vadd.f32 %v8811_v60, %v8310_v18 }
 0x41c   : > { %v8233_v0 = vadd.f32 %v8232_v31, %v8231_v42  ;;  %v8234_v26 = vpop.f32.mrb[150].mxu0 }
 0x41d   : > { %v8235_v54 = vpop.f32.mrb[151].mxu0  ;;  %v8311_v37 = vpop.f32.mrb[92].mxu1 }
 0x41e   : > { %v8838_v23 = vadd.f32 %v8233_v0, %v11252_v19  ;;  %v8236_v57 = vadd.f32 %v8235_v54, %v8234_v26  ;;  %v8312_v63 = vpop.f32.mrb[93].mxu1 }
 0x41f   : > { %v8313_v43 = vadd.f32 %v8312_v63, %v8311_v37  ;;  %v8314_v24 = vpop.f32.mrb[94].mxu1 }
 0x420   : > { %v8856_v38 = vadd.f32 %v8236_v57, %v11254_v17  ;;  %v8315_v53 = vpop.f32.mrb[95].mxu1 }
 0x421   : > { %v11291_v14 = vadd.f32 %v8838_v23, %v8313_v43  ;;  %v8316_v59 = vadd.f32 %v8315_v53, %v8314_v24 }
 0x422   : > { %v8237_v21 = vpop.f32.mrb[152].mxu0 }
 0x423   : > { %v8238_v41 = vpop.f32.mrb[153].mxu0  ;;  %v11294_v34 = vadd.f32 %v8856_v38, %v8316_v59 }
 0x424   : > { %v8239_v30 = vadd.f32 %v8238_v41, %v8237_v21  ;;  %v8240_v49 = vpop.f32.mrb[154].mxu0 }
 0x425   : > { %v8241_v61 = vpop.f32.mrb[155].mxu0  ;;  %v8317_v36 = vpop.f32.mrb[96].mxu1 }
 0x426   : > { %v8829_v19 = vadd.f32 %v8239_v30, %v11256_v40  ;;  %v8242_v62 = vadd.f32 %v8241_v61, %v8240_v49  ;;  %v8318_v46 = vpop.f32.mrb[97].mxu1  ;;  %v7718_v30 = vld [vmem:[%s11516_s4] ss:$0 sm:$0xff] }
 0x427   : > { %v8319_v7 = vadd.f32 %v8318_v46, %v8317_v36  ;;  %v8320_v55 = vpop.f32.mrb[98].mxu1 }
 0x428   : > { %v8847_v17 = vadd.f32 %v8242_v62, %v11258_v3  ;;  %v8321_v20 = vpop.f32.mrb[99].mxu1 }
 0x429   : > { %v8832_v56 = vadd.f32 %v8829_v19, %v8319_v7  ;;  %v8322_v10 = vadd.f32 %v8321_v20, %v8320_v55 }
 0x42a   : > { %v8243_v33 = vpop.f32.mrb[156].mxu0 }
 0x42b   : > { %v8244_v29 = vpop.f32.mrb[157].mxu0  ;;  %v11298_v3 = vadd.f32 %v8847_v17, %v8322_v10 }
 0x42c   : > { %v8245_v35 = vadd.f32 %v8244_v29, %v8243_v33  ;;  %v8246_v11 = vpop.f32.mrb[158].mxu0 }
 0x42d   : > { %v8247_v48 = vpop.f32.mrb[159].mxu0  ;;  %v8323_v15 = vpop.f32.mrb[100].mxu1 }
 0x42e   : > { %v8874_v40 = vadd.f32 %v8245_v35, %v11260_v28  ;;  %v8248_v1 = vadd.f32 %v8247_v48, %v8246_v11  ;;  %v8324_v32 = vpop.f32.mrb[101].mxu1 }
 0x42f   : > { %v8325_v42 = vadd.f32 %v8324_v32, %v8323_v15  ;;  %v8326_v4 = vpop.f32.mrb[102].mxu1 }
 0x430   : > { %v8892_v8 = vadd.f32 %v8248_v1, %v11262_v2  ;;  %v8327_v9 = vpop.f32.mrb[103].mxu1 }
 0x431   : > { %v11301_v26 = vadd.f32 %v8874_v40, %v8325_v42  ;;  %v8328_v51 = vadd.f32 %v8327_v9, %v8326_v4 }
 0x432   : > { %v8249_v25 = vpop.f32.mrb[160].mxu0 }
 0x433   : > { %v8250_v22 = vpop.f32.mrb[161].mxu0  ;;  %v11304_v58 = vadd.f32 %v8892_v8, %v8328_v51 }
 0x434   : > { %v8251_v44 = vadd.f32 %v8250_v22, %v8249_v25  ;;  %v8252_v60 = vpop.f32.mrb[162].mxu0 }
 0x435   : > { %v8253_v31 = vpop.f32.mrb[163].mxu0  ;;  %v8329_v54 = vpop.f32.mrb[104].mxu1 }
 0x436   : > { %v8865_v0 = vadd.f32 %v8251_v44, %v11264_v12  ;;  %v8254_v28 = vadd.f32 %v8253_v31, %v8252_v60  ;;  %v8330_v50 = vpop.f32.mrb[105].mxu1 }
 0x437   : > { %v8331_v23 = vadd.f32 %v8330_v50, %v8329_v54  ;;  %v8332_v57 = vpop.f32.mrb[106].mxu1 }
 0x438   : > { %v8883_v2 = vadd.f32 %v8254_v28, %v11266_v13  ;;  %v8333_v18 = vpop.f32.mrb[107].mxu1 }
 0x439   : > { %v8868_v38 = vadd.f32 %v8865_v0, %v8331_v23  ;;  %v8334_v21 = vadd.f32 %v8333_v18, %v8332_v57  ;;  %v9542_v57 = vmov (!%p7548_p5), 0.0  }
 0x43a   : > { %6962 = vst [vmem:[%s10706_s6] sm:$0x1] (!%p7548_p5), %v9542_v57 }
 0x43b   : > { %v8886_v37 = vadd.f32 %v8883_v2, %v8334_v21 }
 0x43d   : > { %v8541_v41 = vpop.f32.mrb[60].mxu1 }
 0x43e   : > { %v8763_v12 = vadd.f32 %v11273_v45, %v8541_v41  ;;  %v6729_v63 = vpop.f32.mrb[61].mxu1 }
 0x43f   : > { %v8772_v13 = vadd.f32 %v11268_v5, %v6729_v63  ;;  %v8542_v49 = vpop.f32.mrb[62].mxu1 }
 0x440   : > { %v8781_v43 = vadd.f32 %v11276_v47, %v8542_v49  ;;  %v6732_v24 = vpop.f32.mrb[63].mxu1  ;;  %v6865_v53 = vadd.f32 %v8763_v12, %v7718_v30 }
 0x441   : > { %v8790_v61 = vadd.f32 %v11270_v6, %v6732_v24  ;;  %v6863_v62 = vadd.f32 %v8772_v13, %v7718_v30 }
 0x442   : > { %v6866_v19 = vadd.f32 %v8781_v43, %v7718_v30 }
 0x443   : > { %v6864_v59 = vadd.f32 %v8790_v61, %v7718_v30 }
 0x444   : > { %v7790_v17 = vpack.c.bf16 %v6866_v19, %v6865_v53 }
 0x445   : > { %v7785_v45 = vpack.c.bf16 %v6864_v59, %v6863_v62  ;;  %v8545_v33 = vpop.f32.mrb[64].mxu1 }
 0x446   : > { %7822 = vst [vmem:[%s10702_s15 + $0x8] sm:$0xff] %v7790_v17   ;;  %v8799_v36 = vadd.f32 %v11285_v52, %v8545_v33  ;;  %v6745_v29 = vpop.f32.mrb[65].mxu1 }
 0x447   : > { %7786 = vst [vmem:[%s10702_s15] sm:$0xff] %v7785_v45   ;;  %v8808_v5 = vadd.f32 %v11279_v27, %v6745_v29  ;;  %v8546_v47 = vpop.f32.mrb[66].mxu1 }
 0x448   : > { %v8817_v46 = vadd.f32 %v11288_v39, %v8546_v47  ;;  %v6748_v6 = vpop.f32.mrb[67].mxu1  ;;  %v6869_v11 = vadd.f32 %v8799_v36, %v7718_v30 }
 0x449   : > { %v8826_v35 = vadd.f32 %v11282_v16, %v6748_v6  ;;  %v6867_v55 = vadd.f32 %v8808_v5, %v7718_v30 }
 0x44a   : > { %v6870_v7 = vadd.f32 %v8817_v46, %v7718_v30 }
 0x44b   : > { %v6868_v48 = vadd.f32 %v8826_v35, %v7718_v30 }
 0x44c   : > { %v7800_v20 = vpack.c.bf16 %v6870_v7, %v6869_v11 }
 0x44d   : > { %v7795_v40 = vpack.c.bf16 %v6868_v48, %v6867_v55  ;;  %v8549_v1 = vpop.f32.mrb[68].mxu1 }
 0x44e   : > { %7824 = vst [vmem:[%s10702_s15 + $0x18] sm:$0xff] %v7800_v20   ;;  %v8835_v52 = vadd.f32 %v8832_v56, %v8549_v1  ;;  %v6761_v10 = vpop.f32.mrb[69].mxu1 }
 0x44f   : > { %7823 = vst [vmem:[%s10702_s15 + $0x10] sm:$0xff] %v7795_v40   ;;  %v8844_v27 = vadd.f32 %v11291_v14, %v6761_v10  ;;  %v8550_v8 = vpop.f32.mrb[70].mxu1 }
 0x450   : > { %v8853_v39 = vadd.f32 %v11298_v3, %v8550_v8  ;;  %v6764_v25 = vpop.f32.mrb[71].mxu1  ;;  %v6873_v15 = vadd.f32 %v8835_v52, %v7718_v30 }
 0x451   : > { %v8862_v16 = vadd.f32 %v11294_v34, %v6764_v25  ;;  %v6871_v32 = vadd.f32 %v8844_v27, %v7718_v30 }
 0x452   : > { %v6874_v22 = vadd.f32 %v8853_v39, %v7718_v30 }
 0x453   : > { %v6872_v44 = vadd.f32 %v8862_v16, %v7718_v30 }
 0x454   : > { %v7810_v60 = vpack.c.bf16 %v6874_v22, %v6873_v15 }
 0x455   : > { %v7805_v42 = vpack.c.bf16 %v6872_v44, %v6871_v32  ;;  %v8553_v4 = vpop.f32.mrb[72].mxu1 }
 0x456   : > { %7826 = vst [vmem:[%s10702_s15 + $0x28] sm:$0xff] %v7810_v60   ;;  %v8871_v56 = vadd.f32 %v8868_v38, %v8553_v4  ;;  %v6777_v31 = vpop.f32.mrb[73].mxu1 }
 0x457   : > { %7825 = vst [vmem:[%s10702_s15 + $0x20] sm:$0xff] %v7805_v42   ;;  %v8880_v14 = vadd.f32 %v11301_v26, %v6777_v31  ;;  %v8554_v9 = vpop.f32.mrb[74].mxu1 }
 0x458   : > { %v8889_v3 = vadd.f32 %v8886_v37, %v8554_v9  ;;  %v6780_v0 = vpop.f32.mrb[75].mxu1  ;;  %v6877_v28 = vadd.f32 %v8871_v56, %v7718_v30 }
 0x459   : > { %v8898_v34 = vadd.f32 %v11304_v58, %v6780_v0  ;;  %v6875_v2 = vadd.f32 %v8880_v14, %v7718_v30  ;;  %6961 = sbr.rel (%p7548_p5) target bundleno = 1120 (0x460), region = 64 }
 0x45a   : > { %v6878_v51 = vadd.f32 %v8889_v3, %v7718_v30 }
 0x45b   : > { %v6876_v54 = vadd.f32 %v8898_v34, %v7718_v30 }
 0x45c   : > { %v7820_v50 = vpack.c.bf16 %v6878_v51, %v6877_v28 }
 0x45d   : > { %v7815_v23 = vpack.c.bf16 %v6876_v54, %v6875_v2 }
 0x45e   : > { %7828 = vst [vmem:[%s10702_s15 + $0x38] sm:$0xff] %v7820_v50  }
 0x45f   : > { %7827 = vst [vmem:[%s10702_s15 + $0x30] sm:$0xff] %v7815_v23  }
 0x460 PF: > { %v6964_v26 = vadd.f32 %v6864_v59, %v6863_v62 }
 0x462   : > { %v6965_v18 = vadd.f32 %v6964_v26, %v6865_v53 }
 0x464   : > { %v6966_v38 = vadd.f32 %v6965_v18, %v6866_v19  ;;  %v6963_v19 = vld [vmem:[%s10706_s6] sm:$0x1] }
 0x466   : > { %v6967_v21 = vadd.f32 %v6966_v38, %v6867_v55 }
 0x468   : > { %v6968_v58 = vadd.f32 %v6967_v21, %v6868_v48 }
 0x46a   : > { %v6969_v37 = vadd.f32 %v6968_v58, %v6869_v11 }
 0x46c   : > { %v6970_v41 = vadd.f32 %v6969_v37, %v6870_v7 }
 0x46e   : > { %v6971_v12 = vadd.f32 %v6970_v41, %v6871_v32 }
 0x470   : > { %v6972_v63 = vadd.f32 %v6971_v12, %v6872_v44 }
 0x472   : > { %v6973_v30 = vadd.f32 %v6972_v63, %v6873_v15 }
 0x474   : > { %v6974_v13 = vadd.f32 %v6973_v30, %v6874_v22 }
 0x476   : > { %v6975_v49 = vadd.f32 %v6974_v13, %v6875_v2 }
 0x478   : > { %v6976_v43 = vadd.f32 %v6975_v49, %v6876_v54 }
 0x47a   : > { %v6977_v24 = vadd.f32 %v6976_v43, %v6877_v28 }
 0x47c   : > { %v6978_v61 = vadd.f32 %v6977_v24, %v6878_v51 }
 0x47e   : > { %v6979_v17 = vrot.slane %v6978_v61, 4 }
 0x480   : > { %v6980_v45 = vadd.f32 %v6979_v17, %v6978_v61 }
 0x482   : > { %v6981_v33 = vrot.slane %v6980_v45, 2 }
 0x484   : > { %v6982_v62 = vadd.f32 %v6981_v33, %v6980_v45 }
 0x486   : > { %v6983_v53 = vrot.slane %v6982_v62, 1  ;;  %6989 = sbr.rel (%p7549_p9) target bundleno = 1175 (0x497), region = 68 }
 0x488   : > { %v6984_v59 = vadd.f32 %v6983_v53, %v6982_v62 }
 0x48a   : > { %v6985_v36 = vadd.f32 %v6984_v59, %v6963_v19 }
 0x48c   : > { %6986 = vst [vmem:[%s10706_s6] sm:$0x1] %v6985_v36 }
 0x493   : > { %v6990_v29 = vld [vmem:[%s10706_s6] sm:$0x1] }
 0x494   : > { %v6991_v5 = vmul.f32 0.00390625, %v6990_v29 }
 0x496   : > { %6992 = vst [vmem:[%s10706_s6] sm:$0x1] %v6991_v5 }
 0x497 PF: > { %s11517_s5 = sld [smem:[#allocation20_spill]]  ;;  %s7781_s14 = sshll.u32 %s9517_s27, 4 }
 0x498   : > { %s7014_s18 = sshll.u32 %s10702_s15, 4  ;;  %s11518_s10 = sld [smem:[#allocation31_spill]]  ;;  %s11342_s18 = int_to_ptr.vmem [resolvable:$true] %s7014_s18 }
 0x499   : > { %s6994_s1 = scalar_lea.sflag [#allocation7], %s9829_s11  ;;  %s9375_s19 = scalar_lea.vmem %s11342_s18, 1024 }
 0x49a   : > { %p9376_p11 = scmp.ne.s32.totalorder %s11342_s18, %s9375_s19  ;;  %s9543_s27 = smov [#allocation11]  }
 0x49b   : > { %s9379_s15 = sshll.u32 %s9543_s27, 4  ;;  %s9380_s15 = int_to_ptr.vmem [resolvable:$false] %s9379_s15 }
 0x49c   : > { %p9377_p12 = pnand %p9376_p11, %p9756_p0  ;;  %p9382_p8 = scmp.lt.s32.totalorder %s11342_s18, %s9380_s15 }
 0x49d   : > { %s7740_s24 = sshll.u32 %s11517_s5, 5 }
 0x49e   : > { %s7011_s21 = sadd.s32 %s7781_s14, %s7740_s24  ;;  %p9378_p3 = pneg %p9377_p12 }
 0x49f   : > { %s7741_s8 = sshll.u32 %s7011_s21, 6  ;;  %s9381_s14 = scalar_lea.vmem %s9380_s15, 2048 }
 0x4a0   : > { %s11347_s12 = scalar_lea.hbm %s11518_s10, %s7741_s8  ;;  %p9383_p13 = scmp.lt.s32.totalorder %s9381_s14, %s9375_s19 }
 0x4a2   : > { %p9384_p1 = por %p9383_p13, %p9382_p8 }
 0x4a4   : > { %p9385_p2 = pnand %p9384_p1, %p9378_p3 }
 0x4a6   : > { %9388 = shalt.err (!%p9385_p2)
}
 0x4a7   : > { %s9389_s24 = scalar_lea.hbm %s11347_s12, 1024  ;;  %s9393_s16 = scalar_lea.hbm %s11518_s10, 4096 }
 0x4a8   : > { %p9390_p4 = scmp.ne.s32.totalorder %s11347_s12, %s9389_s24  ;;  %p9394_p7 = scmp.lt.u32.totalorder %s11347_s12, %s11518_s10 }
 0x4a9   : > { %p9395_p5 = scmp.lt.u32.totalorder %s9393_s16, %s9389_s24  ;;  %p9397_p11 = scmp.lt.u32.totalorder %s9389_s24, %s11347_s12 }
 0x4aa   : > { %p9391_p10 = pnand %p9390_p4, %p9756_p0 }
 0x4ab   : > { %p9396_p9 = por %p9395_p5, %p9394_p7 }
 0x4ac   : > { %p9392_p6 = pneg %p9391_p10 }
 0x4ad   : > { %p9398_p12 = por %p9397_p11, %p9396_p9 }
 0x4af   : > { %p9399_p3 = pnand %p9398_p12, %p9392_p6 }
 0x4b1   : > { %9402 = shalt.err (!%p9399_p3)
}
 0x4b2   : > { %s9544_s19 = smov 64   ;;  %s11519_s15 = sld [smem:[#allocation22_spill]] }
 0x4b3   : > { %s9545_s14 = smov 4   ;;  %s7742_s21 = sshll.u32 %s11517_s5, 4 }
 0x4b4   : > { %8965 = dma.vmem_to_hbm [thread:$0]  (%p9756_p0), %s11342_s18, 1024, %s11347_s12, %s6994_s1, %s9544_s19, %s9544_s19, %s9545_s14  }
 0x4b5   : > { %s11520_s24 = sld [smem:[#allocation32_spill]]  ;;  %s7030_s17 = sshll.u32 %s10706_s6, 4  ;;  %s7031_s17 = int_to_ptr.vmem [resolvable:$true] %s7030_s17 }
 0x4b6   : > { %s11522_s0 = sand.u32 1, %s9497_s22   ;;  %s9403_s4 = scalar_lea.vmem %s7031_s17, 16 }
 0x4b7   : > { %s6999_s2 = scalar_lea.sflag [#allocation13], %s11522_s0  ;;  %p9404_p8 = scmp.ne.s32.totalorder %s7031_s17, %s9403_s4 }
 0x4b8   : > { %p11523_p13 = scmp.ne.s32.totalorder %s11519_s15, 0  ;;  %s9546_s10 = smov [#allocation12]  }
 0x4b9   : > { %s9407_s20 = sshll.u32 %s9546_s10, 4  ;;  %s9408_s20 = int_to_ptr.vmem [resolvable:$false] %s9407_s20 }
 0x4ba   : > { %p9405_p1 = pnand %p9404_p8, %p11523_p13  ;;  %s9409_s9 = scalar_lea.vmem %s9408_s20, 32 }
 0x4bb   : > { %s11521_s3 = smov %s11520_s24  ;;  %s11377_s27 = scalar_lea.hbm %s11520_s24, %s7742_s21 }
 0x4bc   : > { %p9406_p2 = pneg %p9405_p1  ;;  %p9410_p0 = scmp.lt.s32.totalorder %s7031_s17, %s9408_s20 }
 0x4bd   : > { %p9411_p4 = scmp.lt.s32.totalorder %s9409_s9, %s9403_s4 }
 0x4bf   : > { %p9412_p10 = por %p9411_p4, %p9410_p0 }
 0x4c1   : > { %p9413_p6 = pnand %p9412_p10, %p9406_p2 }
 0x4c3   : > { %9416 = shalt.err (!%p9413_p6)
}
 0x4c4   : > { %s9417_s0 = scalar_lea.hbm %s11377_s27, 16  ;;  %s9421_s5 = scalar_lea.hbm %s11521_s3, 32 }
 0x4c5   : > { %p9418_p7 = scmp.ne.s32.totalorder %s11377_s27, %s9417_s0  ;;  %p9422_p11 = scmp.lt.u32.totalorder %s11377_s27, %s11521_s3 }
 0x4c6   : > { %p9423_p12 = scmp.lt.u32.totalorder %s9421_s5, %s9417_s0  ;;  %p9425_p8 = scmp.lt.u32.totalorder %s9417_s0, %s11377_s27 }
 0x4c7   : > { %p9419_p5 = pnand %p9418_p7, %p11523_p13 }
 0x4c8   : > { %p9424_p3 = por %p9423_p12, %p9422_p11 }
 0x4c9   : > { %p9420_p9 = pneg %p9419_p5 }
 0x4ca   : > { %p9426_p1 = por %p9425_p8, %p9424_p3 }
 0x4cc   : > { %p9427_p2 = pnand %p9426_p1, %p9420_p9 }
 0x4ce   : > { %9430 = shalt.err (!%p9427_p2)
}
 0x4cf   : > { %8966 = dma.vmem_to_hbm [thread:$0]  (%p11523_p13), %s7031_s17, 16, %s11377_s27, %s6999_s2  }
 0x4d0 PF: > { %s11524_s4 = sld [smem:[#allocation19_spill]]  ;;  %s11525_s10 = sld [smem:[#allocation21_spill]] }
 0x4d1   : > { %p8992_p0 = scmp.ge.s32.totalorder %s9533_s7, 2 }
 0x4d6   : > { %s7042_s12 = sand.u32 1, %s11524_s4   ;;  %p11526_p4 = scmp.ne.s32.totalorder %s11525_s10, 0 }
 0x4d7   : > { %s7043_s1 = scalar_lea.sflag [#allocation7], %s7042_s12 }
 0x4d8   : > { %p8981_p10 = pnand %p8992_p0, %p11526_p4 }
 0x4da   : > { %9484 = dma.done.wait (!%p8981_p10), %s7043_s1, 1024  }
 0x4db   : > { %9486 = vsyncadd (!%p8981_p10), %s7043_s1, 4294966272  ;;  %s11527_s19 = sld [smem:[#allocation18_spill]]  ;;  %s11528_s14 = sld [smem:[#allocation23_spill]] }
 0x4e1   : > { %s7051_s21 = sand.u32 1, %s11527_s19   ;;  %p11529_p6 = scmp.ne.s32.totalorder %s11528_s14, 0 }
 0x4e2   : > { %s7052_s8 = scalar_lea.sflag [#allocation13], %s7051_s21 }
 0x4e3   : > { %p8984_p7 = pnand %p8992_p0, %p11529_p6 }
 0x4e5   : > { %9488 = dma.done.wait (!%p8984_p7), %s7052_s8, 16  }
 0x4e6   : > { %9490 = vsyncadd (!%p8984_p7), %s7052_s8, 4294967280  ;;  %s27_s7 = sadd.s32 1, %s9533_s7   ;;  %s11530_s2 = sld [smem:[#allocation24_spill]] }
 0x4e7   : > { %p24_p13 = scmp.ge.s32.totalorder %s27_s7, 6   ;;  %s11531_s17 = sld [smem:[#allocation25_spill]] }
 0x4e8   : > { %s11532_s21 = smov %s9497_s22  ;;  %s11533_s22 = smov %s9501_s23 }
 0x4e9   : > { %s11534_s23 = smov %s9774_s28  ;;  %s11535_s24 = smov %s9509_s25 }
 0x4ea   : > { %s11536_s25 = smov %s9513_s26  ;;  %s11537_s26 = smov %s9777_s13 }
 0x4eb   : > { %s11538_s27 = smov %s9525_s29  ;;  %s11539_s28 = smov %s9529_s30 }
 0x4ec   : > { %s11540_s29 = smov %s11530_s2  ;;  %26 = sbr.rel (!%p24_p13) target bundleno = 20 (0x14), region = 131 }
 0x4ed   : > { %s11541_s30 = smov %s11531_s17 }
 0x4f3   :  { %7056 = vsyncpa [#allocation6], 1 }
 0x4f4   :  { %7058 = vsyncpa [#allocation6 + $0x1], 1 }
 0x4f5   :  { %7059 = vsyncpa [#allocation9], 1 }
 0x4f6   :  { %7060 = vsyncpa [#allocation7], 1 }
 0x4f7   :  { %7062 = vsyncpa [#allocation7 + $0x1], 1 }
 0x4f8   :  { %7063 = vsyncpa [#allocation13], 1 }
 0x4f9   :  { %7065 = vsyncpa [#allocation13 + $0x1], 1 }

</bundles_post_ra>
